<compile_context>
chip_gen: v5e
topology: v5e:2x2
jax: 0.10.0
libtpu: 0.0.40
codegen_flags: <defaults>
</compile_context>

<pallas_src>
import jax
import jax.numpy as jnp
from jax.experimental import pallas as pl
from jax.experimental.pallas import tpu as pltpu


# Packed parameter-vector rows (one (16, Cp) DMA instead of ~10 tiny ones).
_ROW_B1, _ROW_G1, _ROW_BE1 = 0, 1, 2
_ROW_B2, _ROW_G2, _ROW_BE2 = 3, 4, 5
_ROW_LNG, _ROW_LNB = 6, 7
_ROW_SKIPB, _ROW_MASK = 8, 9
_N_PVEC_ROWS = 16  # padded to a sublane multiple


def _round_up(v, m):
    return ((v + m - 1) // m) * m


# ----------------------------------------------------------------------------------
# Fused ResidualGraphBlock kernel
# ----------------------------------------------------------------------------------
def _make_res_block_kernel(has_skip: bool, c_true: int):
    """Kernel factory; `has_skip` and the true channel count are static."""

    def kernel(l_ref, x_ref, w1_ref, w2_ref, *rest):
        if has_skip:
            ws_ref, pv_ref, o_ref = rest
        else:
            pv_ref, o_ref = rest

        eps = 1e-5
        l_bf = l_ref[...]                 # (Gb, N, N)   bf16, pre-cast on host
        x = x_ref[...]                    # (Gb, N, Cp_in) f32 (zero-padded lanes)
        gb, n, cp_in = x.shape
        cp_out = o_ref.shape[-1]

        def pv(i):                        # packed (1, 1, Cp_out) parameter row
            return pv_ref[i:i + 1, :][None]

        # --- skip connection ---------------------------------------------------
        if has_skip:
            res = jnp.dot(x.reshape(gb * n, cp_in).astype(jnp.bfloat16),
                          ws_ref[...],
                          preferred_element_type=jnp.float32).reshape(gb, n, cp_out)
            res = res + pv(_ROW_SKIPB)
        else:
            res = x                       # nn.Identity: no matmul, no weight DMA at all

        # --- ChebConv(K=3): batched L matmuls + ONE wide-K weight matmul --------
        def cheb(t0, w_ref, b):
            t0b = t0.astype(jnp.bfloat16)
            t1 = jnp.einsum('gij,gjc->gic', l_bf, t0b,
                            preferred_element_type=jnp.float32)
            t1b = t1.astype(jnp.bfloat16)
            t2 = 2.0 * jnp.einsum('gij,gjc->gic', l_bf, t1b,
                                  preferred_element_type=jnp.float32) - t0
            # bf16 BEFORE the lane concat; chunks are 128-lane aligned.
            t_cat = jnp.concatenate([t0b, t1b, t2.astype(jnp.bfloat16)], axis=-1)
            cw = t_cat.shape[-1]
            out = jnp.dot(t_cat.reshape(gb * n, cw), w_ref[...],
                          preferred_element_type=jnp.float32)
            return out.reshape(gb, n, cp_out) + b

        # --- BatchNorm1d: training-mode batch stats over nodes, per graph -------
        # Two-pass variance (no E[x^2]-mu^2 cancellation).
        # TODO(synk): eval-mode running statistics are not modeled (reference uses
        # training-mode batch stats over the node axis).
        def batchnorm(h, g, b):
            inv_n = 1.0 / jnp.float32(n)
            mu = jnp.sum(h, axis=1, keepdims=True) * inv_n
            d = h - mu
            var = jnp.sum(d * d, axis=1, keepdims=True) * inv_n
            return d * jax.lax.rsqrt(var + eps) * g + b

        h = jnp.maximum(batchnorm(cheb(x, w1_ref, pv(_ROW_B1)),
                                  pv(_ROW_G1), pv(_ROW_BE1)), 0.0)
        h = batchnorm(cheb(h, w2_ref, pv(_ROW_B2)),
                      pv(_ROW_G2), pv(_ROW_BE2)) + res

        # --- LayerNorm over the TRUE C features + final ReLU ---------------------
        # Padded lanes hold exact zeros, so the sum needs no mask; the centered
        # residual does (d = -mu in padded lanes), hence the mask row.
        mask = pv(_ROW_MASK)
        inv_c = 1.0 / jnp.float32(c_true)
        mu = jnp.sum(h, axis=-1, keepdims=True) * inv_c
        d = (h - mu) * mask
        var = jnp.sum(d * d, axis=-1, keepdims=True) * inv_c
        h = d * jax.lax.rsqrt(var + eps) * pv(_ROW_LNG) + pv(_ROW_LNB)
        o_ref[...] = jnp.maximum(h, 0.0)

    return kernel


def _pad_cheb_weight(w, c_in, cp_in, c_out, cp_out):
    """Pad a vstacked ChebConv weight [W0;W1;W2] per-K-block and cast to bf16."""
    w3 = w.reshape(3, c_in, c_out)
    w3p = jnp.zeros((3, cp_in, cp_out), jnp.float32).at[:, :c_in, :c_out].set(w3)
    return w3p.reshape(3 * cp_in, cp_out).astype(jnp.bfloat16)


def residual_graph_block(params, l_hat, x, *, graphs_per_block=None):
    """Batched ResidualGraphBlock forward.

    l_hat : (G, N, N)  dense Chebyshev-scaled Laplacian per graph
    x     : (G, N, Cin) node features per graph (float32)
    returns (G, N, Cout) float32
    """
    G, N, Cin = x.shape
    Cout = params["bn1_g"].shape[-1]
    has_skip = "skip_w" in params          # Cin != Cout -> Linear skip
    if not has_skip:
        assert Cin == Cout

    cp_in = _round_up(Cin, 128)            # lane-dense feature axes
    cp_out = _round_up(Cout, 128)

    # ---- graphs per grid step: weight-matmul M >= 128, and >= 2 grid steps ------
    if graphs_per_block is None:
        gb = min(G, max(1, pl.cdiv(128, N)))
        if G >= 2:
            gb = min(gb, G // 2)           # keep both v7x TensorCores busy
        gb = max(gb, 1)
        while G % gb:
            gb -= 1
    else:
        gb = graphs_per_block
        assert G % gb == 0
    steps = G // gb

    # ---- host-side padding / bf16 pre-casts --------------------------------------
    l_bf = l_hat.astype(jnp.bfloat16)      # halves L's DMA bytes + VMEM footprint
    x_p = jnp.zeros((G, N, cp_in), jnp.float32).at[:, :, :Cin].set(x)
    w1_p = _pad_cheb_weight(params["w1"], Cin, cp_in, Cout, cp_out)
    w2_p = _pad_cheb_weight(params["w2"], Cout, cp_out, Cout, cp_out)

    def _padvec(v):
        return jnp.zeros((cp_out,), jnp.float32).at[:Cout].set(jnp.asarray(v).reshape(-1))

    pvec = jnp.zeros((_N_PVEC_ROWS, cp_out), jnp.float32)
    pvec = pvec.at[_ROW_B1].set(_padvec(params["b1"]))
    pvec = pvec.at[_ROW_G1].set(_padvec(params["bn1_g"]))
    pvec = pvec.at[_ROW_BE1].set(_padvec(params["bn1_b"]))
    pvec = pvec.at[_ROW_B2].set(_padvec(params["b2"]))
    pvec = pvec.at[_ROW_G2].set(_padvec(params["bn2_g"]))
    pvec = pvec.at[_ROW_BE2].set(_padvec(params["bn2_b"]))
    pvec = pvec.at[_ROW_LNG].set(_padvec(params["ln_g"]))
    pvec = pvec.at[_ROW_LNB].set(_padvec(params["ln_b"]))
    if has_skip:
        pvec = pvec.at[_ROW_SKIPB].set(_padvec(params["skip_b"]))
    pvec = pvec.at[_ROW_MASK].set(_padvec(jnp.ones((Cout,), jnp.float32)))

    rep = lambda arr: pl.BlockSpec(arr.shape, lambda g, nd=arr.ndim: (0,) * nd)
    args = [l_bf, x_p, w1_p, w2_p]
    in_specs = [pl.BlockSpec((gb, N, N), lambda g: (g, 0, 0)),
                pl.BlockSpec((gb, N, cp_in), lambda g: (g, 0, 0)),
                rep(w1_p), rep(w2_p)]
    if has_skip:
        ws_p = (jnp.zeros((cp_in, cp_out), jnp.float32)
                .at[:Cin, :Cout].set(params["skip_w"]).astype(jnp.bfloat16))
        args.append(ws_p)
        in_specs.append(rep(ws_p))
    args.append(pvec)
    in_specs.append(rep(pvec))

    # ---- VMEM limit sized from the actual block footprint ------------------------
    def _buf_bytes(shape, dtype):
        item = jnp.dtype(dtype).itemsize
        s = list(shape)
        s[-1] = _round_up(s[-1], 128)
        if len(s) >= 2:
            s[-2] = _round_up(s[-2], max(8, 32 // item))
        n_el = 1
        for d in s:
            n_el *= d
        return n_el * item

    est = 2 * sum(_buf_bytes(a.shape, a.dtype) for a in args)       # double-buffered
    est += 2 * _buf_bytes((gb, N, cp_out), jnp.float32)             # output block
    vmem_limit = int(min(64 << 20, max(16 << 20, 6 * est)))         # headroom for temps

    flops = G * (2 * 2 * N * N * cp_in                 # conv1: L@T0, L@T1
                 + 2 * N * 3 * cp_in * cp_out          # conv1 weight matmul
                 + 2 * 2 * N * N * cp_out              # conv2: L@T0, L@T1
                 + 2 * N * 3 * cp_out * cp_out         # conv2 weight matmul
                 + (2 * N * cp_in * cp_out if has_skip else 0))
    bytes_accessed = int(sum(int(a.size) * a.dtype.itemsize for a in args)
                         + G * N * cp_out * 4)
    cost = pl.CostEstimate(flops=int(flops),
                           transcendentals=int(G * (N + 2 * cp_out)),
                           bytes_accessed=bytes_accessed)

    out = pl.pallas_call(
        _make_res_block_kernel(has_skip, Cout),
        out_shape=jax.ShapeDtypeStruct((G, N, cp_out), jnp.float32),
        grid=(steps,),
        in_specs=in_specs,
        out_specs=pl.BlockSpec((gb, N, cp_out), lambda g: (g, 0, 0)),
        compiler_params=pltpu.CompilerParams(
            dimension_semantics=("parallel",),          # 2x on v7x (2 TCs), neutral v5e/v6e
            vmem_limit_bytes=vmem_limit),
        cost_estimate=cost,
    )(*args)
    return out[:, :, :Cout]


# ----------------------------------------------------------------------------------
# Graph-structure glue (plain JAX): ChebConv 'sym' norm with lambda_max = 2
# ----------------------------------------------------------------------------------
def cheb_scaled_laplacian(edge_index, num_nodes):
    # PyG ChebConv defaults lambda_max=2.0; with 'sym' normalization this gives
    # L_hat = -D^{-1/2} A D^{-1/2}  (zero diagonal).
    src, dst = edge_index[0], edge_index[1]
    a = jnp.zeros((num_nodes, num_nodes), jnp.float32).at[dst, src].add(1.0)
    a = a * (1.0 - jnp.eye(num_nodes, dtype=jnp.float32))   # remove self-loops
    deg = jnp.sum(a, axis=1)
    dinv = jnp.where(deg > 0, 1.0 / jnp.sqrt(deg), 0.0)
    return -(dinv[:, None] * a * dinv[None, :])


# ----------------------------------------------------------------------------------
# Parameter init / reference / data
# ----------------------------------------------------------------------------------
def _glorot(key, shape, fan_in):
    return jax.random.normal(key, shape, jnp.float32) / jnp.sqrt(jnp.float32(fan_in))


def init_block_params(key, cin, cout):
    ks = jax.random.split(key, 3)
    p = {
        # ChebConv K=3 weights stacked vertically: concat_k(T_k x) @ vstack_k(W_k)
        "w1": _glorot(ks[0], (3 * cin, cout), cin),
        "b1": jnp.zeros((1, cout), jnp.float32),
        "bn1_g": jnp.ones((1, cout), jnp.float32),
        "bn1_b": jnp.zeros((1, cout), jnp.float32),
        "w2": _glorot(ks[1], (3 * cout, cout), cout),
        "b2": jnp.zeros((1, cout), jnp.float32),
        "bn2_g": jnp.ones((1, cout), jnp.float32),
        "bn2_b": jnp.zeros((1, cout), jnp.float32),
        "ln_g": jnp.ones((1, cout), jnp.float32),
        "ln_b": jnp.zeros((1, cout), jnp.float32),
    }
    if cin != cout:
        p["skip_w"] = _glorot(ks[2], (cin, cout), cin)
        p["skip_b"] = jnp.zeros((1, cout), jnp.float32)
    return p


def _reference_block(params, l_hat, x):
    """Pure-f32 JAX reference of ResidualGraphBlock.forward for one graph."""
    eps = 1e-5

    def cheb(t0, w, b):
        t1 = l_hat @ t0
        t2 = 2.0 * (l_hat @ t1) - t0
        return jnp.concatenate([t0, t1, t2], axis=1) @ w + b

    def bn(h, g, b):
        mu = h.mean(0, keepdims=True)
        var = ((h - mu) ** 2).mean(0, keepdims=True)
        return (h - mu) / jnp.sqrt(var + eps) * g + b

    residual = (x @ params["skip_w"] + params["skip_b"]) if "skip_w" in params else x
    h = jax.nn.relu(bn(cheb(x, params["w1"], params["b1"]),
                       params["bn1_g"], params["bn1_b"]))
    h = bn(cheb(h, params["w2"], params["b2"]),
           params["bn2_g"], params["bn2_b"]) + residual
    mu = h.mean(1, keepdims=True)
    var = ((h - mu) ** 2).mean(1, keepdims=True)
    h = (h - mu) / jnp.sqrt(var + eps) * params["ln_g"] + params["ln_b"]
    return jax.nn.relu(h)


def make_edge_index(n_nodes, chord):
    src = jnp.arange(n_nodes, dtype=jnp.int32)
    dst = (src + 1) % n_nodes
    # undirected ring + one per-graph chord (0 <-> chord)
    e_src = jnp.concatenate([src, dst, jnp.array([0, chord], jnp.int32)])
    e_dst = jnp.concatenate([dst, src, jnp.array([chord, 0], jnp.int32)])
    return jnp.stack([e_src, e_dst])


# ----------------------------------------------------------------------------------
if __name__ == "__main__":
    key = jax.random.PRNGKey(0)
    k_x, k_a, k_b = jax.random.split(key, 3)

    num_graphs = 16           # 8 graphs per grid step -> weight-matmul M = 128, 2 steps
    n_nodes = 16
    cin = 32
    cout = 20

    # Deterministic inputs.
    x = jax.random.normal(k_x, (num_graphs, n_nodes, cin), jnp.float32)
    l_hat = jnp.stack([
        cheb_scaled_laplacian(make_edge_index(n_nodes, 2 + (g % (n_nodes - 3))), n_nodes)
        for g in range(num_graphs)])                                  # (G, N, N)

    # Block A: Cin != Cout -> Linear skip.   Block B: Cin == Cout -> Identity skip
    # (chained, exercising both kernel variants, as the original model chains blocks).
    params_a = init_block_params(k_a, cin, cout)
    params_b = init_block_params(k_b, cout, cout)

    out_a = residual_graph_block(params_a, l_hat, x)
    out_b = residual_graph_block(params_b, l_hat, out_a)
    jax.block_until_ready(out_b)

    assert out_a.shape == (num_graphs, n_nodes, cout)
    assert out_b.shape == (num_graphs, n_nodes, cout)
    assert jnp.isfinite(out_a).all() and jnp.isfinite(out_b).all()

    # Loose check against a pure-f32 JAX reference (kernel matmuls run in bf16).
    ref_a = jax.vmap(lambda l, xx: _reference_block(params_a, l, xx))(l_hat, x)
    ref_b = jax.vmap(lambda l, xx: _reference_block(params_b, l, xx))(l_hat, ref_a)
    err = float(jnp.max(jnp.abs(out_b - ref_b)))
    assert err < 0.2, err

    print("KERNEL_OK")
</pallas_src>

<mosaic_0001>
module attributes {stable_mosaic.version = 11 : i64} {
  func.func @kernel(%arg0: i32, %arg1: memref<8x16x16xbf16, #tpu.memory_space<vmem>>, %arg2: memref<8x16x128xf32, #tpu.memory_space<vmem>>, %arg3: memref<384x128xbf16, #tpu.memory_space<vmem>>, %arg4: memref<384x128xbf16, #tpu.memory_space<vmem>>, %arg5: memref<128x128xbf16, #tpu.memory_space<vmem>>, %arg6: memref<16x128xf32, #tpu.memory_space<vmem>>, %arg7: memref<8x16x128xf32, #tpu.memory_space<vmem>>) attributes {dimension_semantics = [#tpu.dimension_semantics<parallel>], iteration_bounds = array<i64: 2>, scalar_prefetch = 0 : i64, scratch_operands = 0 : i64, tpu.core_type = #tpu.core_type<tc>, window_params = [{transform_indices = @transform_0, window_bounds = array<i64: 8, 16, 16>}, {transform_indices = @transform_1, window_bounds = array<i64: 8, 16, 128>}, {pipeline_mode = #tpu.pipeline_mode<synchronous>, transform_indices = @transform_2, window_bounds = array<i64: 384, 128>}, {pipeline_mode = #tpu.pipeline_mode<synchronous>, transform_indices = @transform_3, window_bounds = array<i64: 384, 128>}, {pipeline_mode = #tpu.pipeline_mode<synchronous>, transform_indices = @transform_4, window_bounds = array<i64: 128, 128>}, {pipeline_mode = #tpu.pipeline_mode<synchronous>, transform_indices = @transform_5, window_bounds = array<i64: 16, 128>}, {transform_indices = @transform_6, window_bounds = array<i64: 8, 16, 128>}]} {
    %c0 = arith.constant 0 : index
    %c0_0 = arith.constant 0 : index
    %c0_1 = arith.constant 0 : index
    %0 = vector.load %arg1[%c0, %c0_0, %c0_1] : memref<8x16x16xbf16, #tpu.memory_space<vmem>>, vector<8x16x16xbf16>
    %c0_2 = arith.constant 0 : index
    %c0_3 = arith.constant 0 : index
    %c0_4 = arith.constant 0 : index
    %1 = vector.load %arg2[%c0_2, %c0_3, %c0_4] : memref<8x16x128xf32, #tpu.memory_space<vmem>>, vector<8x16x128xf32>
    %2 = vector.shape_cast %1 : vector<8x16x128xf32> to vector<128x128xf32>
    %3 = arith.truncf %2 : vector<128x128xf32> to vector<128x128xbf16>
    %c0_5 = arith.constant 0 : index
    %c0_6 = arith.constant 0 : index
    %4 = vector.load %arg5[%c0_5, %c0_6] : memref<128x128xbf16, #tpu.memory_space<vmem>>, vector<128x128xbf16>
    %cst = arith.constant dense<0.000000e+00> : vector<128x128xf32>
    %5 = tpu.matmul %3, %4, %cst {dimension_numbers = #tpu.dot_dimension_numbers<[1], [0], [0], [1], [0, 0, 1, 1], [], []>} : vector<128x128xbf16>, vector<128x128xbf16>, vector<128x128xf32> -> vector<128x128xf32>
    %6 = vector.shape_cast %5 : vector<128x128xf32> to vector<8x16x128xf32>
    %c8 = arith.constant 8 : index
    %c0_7 = arith.constant 0 : index
    %7 = vector.load %arg6[%c8, %c0_7] : memref<16x128xf32, #tpu.memory_space<vmem>>, vector<1x128xf32>
    %8 = vector.shape_cast %7 : vector<1x128xf32> to vector<1x1x128xf32>
    %9 = vector.broadcast %8 : vector<1x1x128xf32> to vector<8x16x128xf32>
    %10 = arith.addf %6, %9 : vector<8x16x128xf32>
    %c0_8 = arith.constant 0 : index
    %c0_9 = arith.constant 0 : index
    %11 = vector.load %arg6[%c0_8, %c0_9] : memref<16x128xf32, #tpu.memory_space<vmem>>, vector<1x128xf32>
    %12 = vector.shape_cast %11 : vector<1x128xf32> to vector<1x1x128xf32>
    %13 = arith.truncf %1 : vector<8x16x128xf32> to vector<8x16x128xbf16>
    "tpu.trace_start"() <{level = 10 : i32, message = "gij,gjc->gic"}> : () -> ()
    %cst_10 = arith.constant dense<0.000000e+00> : vector<8x16x128xf32>
    %14 = tpu.matmul %0, %13, %cst_10 {dimension_numbers = #tpu.dot_dimension_numbers<[2], [1], [1], [2], [0, 0, 0, 1, 1, 2], [0], [0]>} : vector<8x16x16xbf16>, vector<8x16x128xbf16>, vector<8x16x128xf32> -> vector<8x16x128xf32>
    "tpu.trace_stop"() : () -> ()
    %15 = arith.truncf %14 : vector<8x16x128xf32> to vector<8x16x128xbf16>
    "tpu.trace_start"() <{level = 10 : i32, message = "gij,gjc->gic"}> : () -> ()
    %cst_11 = arith.constant dense<0.000000e+00> : vector<8x16x128xf32>
    %16 = tpu.matmul %0, %15, %cst_11 {dimension_numbers = #tpu.dot_dimension_numbers<[2], [1], [1], [2], [0, 0, 0, 1, 1, 2], [0], [0]>} : vector<8x16x16xbf16>, vector<8x16x128xbf16>, vector<8x16x128xf32> -> vector<8x16x128xf32>
    "tpu.trace_stop"() : () -> ()
    %cst_12 = arith.constant 2.000000e+00 : f32
    %17 = vector.broadcast %cst_12 : f32 to vector<8x16x128xf32>
    %18 = arith.mulf %17, %16 : vector<8x16x128xf32>
    %19 = arith.subf %18, %1 : vector<8x16x128xf32>
    %20 = arith.truncf %19 : vector<8x16x128xf32> to vector<8x16x128xbf16>
    %21 = tpu.concatenate %13, %15, %20 in 2 : vector<8x16x128xbf16>, vector<8x16x128xbf16>, vector<8x16x128xbf16> -> vector<8x16x384xbf16>
    %22 = vector.shape_cast %21 : vector<8x16x384xbf16> to vector<128x384xbf16>
    %c0_13 = arith.constant 0 : index
    %c0_14 = arith.constant 0 : index
    %23 = vector.load %arg3[%c0_13, %c0_14] : memref<384x128xbf16, #tpu.memory_space<vmem>>, vector<384x128xbf16>
    %cst_15 = arith.constant dense<0.000000e+00> : vector<128x128xf32>
    %24 = tpu.matmul %22, %23, %cst_15 {dimension_numbers = #tpu.dot_dimension_numbers<[1], [0], [0], [1], [0, 0, 1, 1], [], []>} : vector<128x384xbf16>, vector<384x128xbf16>, vector<128x128xf32> -> vector<128x128xf32>
    %25 = vector.shape_cast %24 : vector<128x128xf32> to vector<8x16x128xf32>
    %26 = vector.broadcast %12 : vector<1x1x128xf32> to vector<8x16x128xf32>
    %27 = arith.addf %25, %26 : vector<8x16x128xf32>
    %c1 = arith.constant 1 : index
    %c0_16 = arith.constant 0 : index
    %28 = vector.load %arg6[%c1, %c0_16] : memref<16x128xf32, #tpu.memory_space<vmem>>, vector<1x128xf32>
    %29 = vector.shape_cast %28 : vector<1x128xf32> to vector<1x1x128xf32>
    %c2 = arith.constant 2 : index
    %c0_17 = arith.constant 0 : index
    %30 = vector.load %arg6[%c2, %c0_17] : memref<16x128xf32, #tpu.memory_space<vmem>>, vector<1x128xf32>
    %31 = vector.shape_cast %30 : vector<1x128xf32> to vector<1x1x128xf32>
    %cst_18 = arith.constant 1.000000e+00 : f32
    %cst_19 = arith.constant 1.600000e+01 : f32
    %32 = arith.divf %cst_18, %cst_19 : f32
    %cst_20 = arith.constant dense<0.000000e+00> : vector<8x128xf32>
    %33 = vector.multi_reduction <add>, %27, %cst_20 [1] : vector<8x16x128xf32> to vector<8x128xf32>
    %34 = vector.shape_cast %33 : vector<8x128xf32> to vector<8x1x128xf32>
    %35 = vector.broadcast %32 : f32 to vector<8x1x128xf32>
    %36 = arith.mulf %34, %35 : vector<8x1x128xf32>
    %37 = vector.broadcast %36 : vector<8x1x128xf32> to vector<8x16x128xf32>
    %38 = arith.subf %27, %37 : vector<8x16x128xf32>
    %39 = arith.mulf %38, %38 : vector<8x16x128xf32>
    %cst_21 = arith.constant dense<0.000000e+00> : vector<8x128xf32>
    %40 = vector.multi_reduction <add>, %39, %cst_21 [1] : vector<8x16x128xf32> to vector<8x128xf32>
    %41 = vector.shape_cast %40 : vector<8x128xf32> to vector<8x1x128xf32>
    %42 = vector.broadcast %32 : f32 to vector<8x1x128xf32>
    %43 = arith.mulf %41, %42 : vector<8x1x128xf32>
    %cst_22 = arith.constant 9.99999974E-6 : f32
    %44 = vector.broadcast %cst_22 : f32 to vector<8x1x128xf32>
    %45 = arith.addf %43, %44 : vector<8x1x128xf32>
    %46 = math.rsqrt %45 : vector<8x1x128xf32>
    %47 = vector.broadcast %46 : vector<8x1x128xf32> to vector<8x16x128xf32>
    %48 = arith.mulf %38, %47 : vector<8x16x128xf32>
    %49 = vector.broadcast %29 : vector<1x1x128xf32> to vector<8x16x128xf32>
    %50 = arith.mulf %48, %49 : vector<8x16x128xf32>
    %51 = vector.broadcast %31 : vector<1x1x128xf32> to vector<8x16x128xf32>
    %52 = arith.addf %50, %51 : vector<8x16x128xf32>
    %cst_23 = arith.constant 0.000000e+00 : f32
    %53 = vector.broadcast %cst_23 : f32 to vector<8x16x128xf32>
    %54 = arith.maximumf %52, %53 : vector<8x16x128xf32>
    %c3 = arith.constant 3 : index
    %c0_24 = arith.constant 0 : index
    %55 = vector.load %arg6[%c3, %c0_24] : memref<16x128xf32, #tpu.memory_space<vmem>>, vector<1x128xf32>
    %56 = vector.shape_cast %55 : vector<1x128xf32> to vector<1x1x128xf32>
    %57 = arith.truncf %54 : vector<8x16x128xf32> to vector<8x16x128xbf16>
    "tpu.trace_start"() <{level = 10 : i32, message = "gij,gjc->gic"}> : () -> ()
    %cst_25 = arith.constant dense<0.000000e+00> : vector<8x16x128xf32>
    %58 = tpu.matmul %0, %57, %cst_25 {dimension_numbers = #tpu.dot_dimension_numbers<[2], [1], [1], [2], [0, 0, 0, 1, 1, 2], [0], [0]>} : vector<8x16x16xbf16>, vector<8x16x128xbf16>, vector<8x16x128xf32> -> vector<8x16x128xf32>
    "tpu.trace_stop"() : () -> ()
    %59 = arith.truncf %58 : vector<8x16x128xf32> to vector<8x16x128xbf16>
    "tpu.trace_start"() <{level = 10 : i32, message = "gij,gjc->gic"}> : () -> ()
    %cst_26 = arith.constant dense<0.000000e+00> : vector<8x16x128xf32>
    %60 = tpu.matmul %0, %59, %cst_26 {dimension_numbers = #tpu.dot_dimension_numbers<[2], [1], [1], [2], [0, 0, 0, 1, 1, 2], [0], [0]>} : vector<8x16x16xbf16>, vector<8x16x128xbf16>, vector<8x16x128xf32> -> vector<8x16x128xf32>
    "tpu.trace_stop"() : () -> ()
    %cst_27 = arith.constant 2.000000e+00 : f32
    %61 = vector.broadcast %cst_27 : f32 to vector<8x16x128xf32>
    %62 = arith.mulf %61, %60 : vector<8x16x128xf32>
    %63 = arith.subf %62, %54 : vector<8x16x128xf32>
    %64 = arith.truncf %63 : vector<8x16x128xf32> to vector<8x16x128xbf16>
    %65 = tpu.concatenate %57, %59, %64 in 2 : vector<8x16x128xbf16>, vector<8x16x128xbf16>, vector<8x16x128xbf16> -> vector<8x16x384xbf16>
    %66 = vector.shape_cast %65 : vector<8x16x384xbf16> to vector<128x384xbf16>
    %c0_28 = arith.constant 0 : index
    %c0_29 = arith.constant 0 : index
    %67 = vector.load %arg4[%c0_28, %c0_29] : memref<384x128xbf16, #tpu.memory_space<vmem>>, vector<384x128xbf16>
    %cst_30 = arith.constant dense<0.000000e+00> : vector<128x128xf32>
    %68 = tpu.matmul %66, %67, %cst_30 {dimension_numbers = #tpu.dot_dimension_numbers<[1], [0], [0], [1], [0, 0, 1, 1], [], []>} : vector<128x384xbf16>, vector<384x128xbf16>, vector<128x128xf32> -> vector<128x128xf32>
    %69 = vector.shape_cast %68 : vector<128x128xf32> to vector<8x16x128xf32>
    %70 = vector.broadcast %56 : vector<1x1x128xf32> to vector<8x16x128xf32>
    %71 = arith.addf %69, %70 : vector<8x16x128xf32>
    %c4 = arith.constant 4 : index
    %c0_31 = arith.constant 0 : index
    %72 = vector.load %arg6[%c4, %c0_31] : memref<16x128xf32, #tpu.memory_space<vmem>>, vector<1x128xf32>
    %73 = vector.shape_cast %72 : vector<1x128xf32> to vector<1x1x128xf32>
    %c5 = arith.constant 5 : index
    %c0_32 = arith.constant 0 : index
    %74 = vector.load %arg6[%c5, %c0_32] : memref<16x128xf32, #tpu.memory_space<vmem>>, vector<1x128xf32>
    %75 = vector.shape_cast %74 : vector<1x128xf32> to vector<1x1x128xf32>
    %cst_33 = arith.constant 1.000000e+00 : f32
    %cst_34 = arith.constant 1.600000e+01 : f32
    %76 = arith.divf %cst_33, %cst_34 : f32
    %cst_35 = arith.constant dense<0.000000e+00> : vector<8x128xf32>
    %77 = vector.multi_reduction <add>, %71, %cst_35 [1] : vector<8x16x128xf32> to vector<8x128xf32>
    %78 = vector.shape_cast %77 : vector<8x128xf32> to vector<8x1x128xf32>
    %79 = vector.broadcast %76 : f32 to vector<8x1x128xf32>
    %80 = arith.mulf %78, %79 : vector<8x1x128xf32>
    %81 = vector.broadcast %80 : vector<8x1x128xf32> to vector<8x16x128xf32>
    %82 = arith.subf %71, %81 : vector<8x16x128xf32>
    %83 = arith.mulf %82, %82 : vector<8x16x128xf32>
    %cst_36 = arith.constant dense<0.000000e+00> : vector<8x128xf32>
    %84 = vector.multi_reduction <add>, %83, %cst_36 [1] : vector<8x16x128xf32> to vector<8x128xf32>
    %85 = vector.shape_cast %84 : vector<8x128xf32> to vector<8x1x128xf32>
    %86 = vector.broadcast %76 : f32 to vector<8x1x128xf32>
    %87 = arith.mulf %85, %86 : vector<8x1x128xf32>
    %cst_37 = arith.constant 9.99999974E-6 : f32
    %88 = vector.broadcast %cst_37 : f32 to vector<8x1x128xf32>
    %89 = arith.addf %87, %88 : vector<8x1x128xf32>
    %90 = math.rsqrt %89 : vector<8x1x128xf32>
    %91 = vector.broadcast %90 : vector<8x1x128xf32> to vector<8x16x128xf32>
    %92 = arith.mulf %82, %91 : vector<8x16x128xf32>
    %93 = vector.broadcast %73 : vector<1x1x128xf32> to vector<8x16x128xf32>
    %94 = arith.mulf %92, %93 : vector<8x16x128xf32>
    %95 = vector.broadcast %75 : vector<1x1x128xf32> to vector<8x16x128xf32>
    %96 = arith.addf %94, %95 : vector<8x16x128xf32>
    %97 = arith.addf %96, %10 : vector<8x16x128xf32>
    %c9 = arith.constant 9 : index
    %c0_38 = arith.constant 0 : index
    %98 = vector.load %arg6[%c9, %c0_38] : memref<16x128xf32, #tpu.memory_space<vmem>>, vector<1x128xf32>
    %99 = vector.shape_cast %98 : vector<1x128xf32> to vector<1x1x128xf32>
    %cst_39 = arith.constant 1.000000e+00 : f32
    %cst_40 = arith.constant 2.000000e+01 : f32
    %100 = arith.divf %cst_39, %cst_40 : f32
    %cst_41 = arith.constant dense<0.000000e+00> : vector<8x16xf32>
    %101 = vector.multi_reduction <add>, %97, %cst_41 [2] : vector<8x16x128xf32> to vector<8x16xf32>
    %102 = vector.shape_cast %101 : vector<8x16xf32> to vector<8x16x1xf32>
    %103 = vector.broadcast %100 : f32 to vector<8x16x1xf32>
    %104 = arith.mulf %102, %103 : vector<8x16x1xf32>
    %105 = vector.broadcast %104 : vector<8x16x1xf32> to vector<8x16x128xf32>
    %106 = arith.subf %97, %105 : vector<8x16x128xf32>
    %107 = vector.broadcast %99 : vector<1x1x128xf32> to vector<8x16x128xf32>
    %108 = arith.mulf %106, %107 : vector<8x16x128xf32>
    %109 = arith.mulf %108, %108 : vector<8x16x128xf32>
    %cst_42 = arith.constant dense<0.000000e+00> : vector<8x16xf32>
    %110 = vector.multi_reduction <add>, %109, %cst_42 [2] : vector<8x16x128xf32> to vector<8x16xf32>
    %111 = vector.shape_cast %110 : vector<8x16xf32> to vector<8x16x1xf32>
    %112 = vector.broadcast %100 : f32 to vector<8x16x1xf32>
    %113 = arith.mulf %111, %112 : vector<8x16x1xf32>
    %cst_43 = arith.constant 9.99999974E-6 : f32
    %114 = vector.broadcast %cst_43 : f32 to vector<8x16x1xf32>
    %115 = arith.addf %113, %114 : vector<8x16x1xf32>
    %116 = math.rsqrt %115 : vector<8x16x1xf32>
    %117 = vector.broadcast %116 : vector<8x16x1xf32> to vector<8x16x128xf32>
    %118 = arith.mulf %108, %117 : vector<8x16x128xf32>
    %c6 = arith.constant 6 : index
    %c0_44 = arith.constant 0 : index
    %119 = vector.load %arg6[%c6, %c0_44] : memref<16x128xf32, #tpu.memory_space<vmem>>, vector<1x128xf32>
    %120 = vector.shape_cast %119 : vector<1x128xf32> to vector<1x1x128xf32>
    %121 = vector.broadcast %120 : vector<1x1x128xf32> to vector<8x16x128xf32>
    %122 = arith.mulf %118, %121 : vector<8x16x128xf32>
    %c7 = arith.constant 7 : index
    %c0_45 = arith.constant 0 : index
    %123 = vector.load %arg6[%c7, %c0_45] : memref<16x128xf32, #tpu.memory_space<vmem>>, vector<1x128xf32>
    %124 = vector.shape_cast %123 : vector<1x128xf32> to vector<1x1x128xf32>
    %125 = vector.broadcast %124 : vector<1x1x128xf32> to vector<8x16x128xf32>
    %126 = arith.addf %122, %125 : vector<8x16x128xf32>
    %cst_46 = arith.constant 0.000000e+00 : f32
    %127 = vector.broadcast %cst_46 : f32 to vector<8x16x128xf32>
    %128 = arith.maximumf %126, %127 : vector<8x16x128xf32>
    %c0_47 = arith.constant 0 : index
    %c0_48 = arith.constant 0 : index
    %c0_49 = arith.constant 0 : index
    %129 = vector.load %arg7[%c0_47, %c0_48, %c0_49] : memref<8x16x128xf32, #tpu.memory_space<vmem>>, vector<8x16x128xf32>
    tpu.vector_store %arg7[%c0_47, %c0_48, %c0_49], %128 {strides = array<i32>} : memref<8x16x128xf32, #tpu.memory_space<vmem>>, vector<8x16x128xf32>,
    return
  }
  func.func @transform_0(%arg0: i32) -> (i32, i32, i32) {
    %c0_i32 = arith.constant 0 : i32
    %c0_i32_0 = arith.constant 0 : i32
    %c0_i32_1 = arith.constant 0 : i32
    return %arg0, %c0_i32, %c0_i32_0 : i32, i32, i32
  }
  func.func @transform_1(%arg0: i32) -> (i32, i32, i32) {
    %c0_i32 = arith.constant 0 : i32
    %c0_i32_0 = arith.constant 0 : i32
    %c0_i32_1 = arith.constant 0 : i32
    return %arg0, %c0_i32, %c0_i32_0 : i32, i32, i32
  }
  func.func @transform_2(%arg0: i32) -> (i32, i32) {
    %c0_i32 = arith.constant 0 : i32
    %c0_i32_0 = arith.constant 0 : i32
    %c0_i32_1 = arith.constant 0 : i32
    return %c0_i32, %c0_i32_0 : i32, i32
  }
  func.func @transform_3(%arg0: i32) -> (i32, i32) {
    %c0_i32 = arith.constant 0 : i32
    %c0_i32_0 = arith.constant 0 : i32
    %c0_i32_1 = arith.constant 0 : i32
    return %c0_i32, %c0_i32_0 : i32, i32
  }
  func.func @transform_4(%arg0: i32) -> (i32, i32) {
    %c0_i32 = arith.constant 0 : i32
    %c0_i32_0 = arith.constant 0 : i32
    %c0_i32_1 = arith.constant 0 : i32
    return %c0_i32, %c0_i32_0 : i32, i32
  }
  func.func @transform_5(%arg0: i32) -> (i32, i32) {
    %c0_i32 = arith.constant 0 : i32
    %c0_i32_0 = arith.constant 0 : i32
    %c0_i32_1 = arith.constant 0 : i32
    return %c0_i32, %c0_i32_0 : i32, i32
  }
  func.func @transform_6(%arg0: i32) -> (i32, i32, i32) {
    %c0_i32 = arith.constant 0 : i32
    %c0_i32_0 = arith.constant 0 : i32
    %c0_i32_1 = arith.constant 0 : i32
    return %arg0, %c0_i32, %c0_i32_0 : i32, i32, i32
  }
}

</mosaic_0001>

<bundles_post_ra>
// kernel: tpu_custom_call.1
= control target key start
LH: loop header
LB: loop body
LE: loop exit
PB: predicated region body
PF: predicated region fallthrough
CT: control target
= control target key end

     0   :  { %s5690_s0 = inlined_call_operand.hbm [shape: bf16[16,16,16], index: 0, kind: input, shape index: {}]   ;;  %s5691_s1 = inlined_call_operand.hbm [shape: f32[16,16,128], index: 1, kind: input, shape index: {}]   ;;  %s5692_s2 = inlined_call_operand.hbm [shape: bf16[384,128], index: 2, kind: input, shape index: {}]   ;;  %s5693_s3 = inlined_call_operand.hbm [shape: bf16[384,128], index: 3, kind: input, shape index: {}]   ;;  %s5694_s4 = inlined_call_operand.hbm [shape: bf16[128,128], index: 4, kind: input, shape index: {}]   ;;  %s5695_s5 = inlined_call_operand.hbm [shape: f32[16,128], index: 5, kind: input, shape index: {}]   ;;  %s5696_s6 = inlined_call_operand.hbm [shape: f32[16,16,128], index: 6, kind: output, shape index: {}]  }
   0x1   :  { %5701 = sst [smem:[#allocation23_spill]] %s5692_s2 }
   0x2   :  { %5702 = sst [smem:[#allocation24_spill]] %s5693_s3 }
   0x3   :  { %5703 = sst [smem:[#allocation25_spill]] %s5694_s4 }
   0x4   :  { %5704 = sst [smem:[#allocation26_spill]] %s5695_s5 }
   0x5   :  { %11 = vsyncpa [#allocation3], 0 }
   0x6   :  { %13 = vsyncpa [#allocation3 + $0x1], 0 }
   0x7   :  { %14 = vsyncpa [#allocation6], 0 }
   0x8   :  { %16 = vsyncpa [#allocation6 + $0x1], 0 }
   0x9   :  { %17 = vsyncpa [#allocation9], 0 }
   0xa   :  { %18 = vsyncpa [#allocation12], 0 }
   0xb   :  { %19 = vsyncpa [#allocation4], 0 }
   0xc   :  { %21 = vsyncpa [#allocation4 + $0x1], 0  ;;  %s4321_s21 = smov 0   ;;  %s4323_s22 = smov 0  }
   0xd   :  { %s4325_s23 = smov 0   ;;  %s4327_s24 = smov 0  }
   0xe LB: > { %s4342_s25 = sadd.s32 4294967295, %s4274_s24   ;;  %s3421_s26 = sadd.s32 4294967294, %s4274_s24   ;;  %s4274_s24 = sphi %s4327_s24, %s5729_s24   ;;  %s4270_s23 = sphi %s4325_s23, %s5728_s23   ;;  %s4266_s22 = sphi %s4323_s22, %s5727_s22   ;;  %s4262_s21 = sphi %s4321_s21, %s5726_s21  }
   0xf   : > { %p47_p0 = scmp.ne.s32.totalorder %s4266_s22, %s4262_s21  ;;  %p48_p1 = scmp.eq.s32.totalorder %s4342_s25, 0 }
  0x10   : > { %p181_p2 = scmp.eq.s32.totalorder %s4342_s25, 1  ;;  %p187_p3 = scmp.eq.s32.totalorder %s3421_s26, 1 }
  0x11   : > { %p4351_p4 = por %p48_p1, %p47_p0  ;;  %p3422_p5 = scmp.ge.s32.totalorder %s4274_s24, 1 }
  0x12   : > { %p4356_p6 = por %p187_p3, %p47_p0  ;;  %p194_p7 = scmp.lt.s32.totalorder %s4274_s24, 3 }
  0x13   : > { %s5707_s2 = sld [smem:[#allocation23_spill]]  ;;  %s4276_s9 = smov [#allocation7]  }
  0x14   : > { %p4364_p8 = pnand %p3422_p5, %p194_p7  ;;  %s207_s10 = sshll.u32 %s4276_s9, 4  ;;  %s208_s10 = int_to_ptr.vmem [resolvable:$true] %s207_s10 }
  0x15   : > { %s5710_s3 = sld [smem:[#allocation24_spill]]  ;;  %s5699_s15 = smov 64  }
  0x16   : > { %p3854_p9 = pneg %p4364_p8  ;;  %s5700_s16 = smov 4  }
  0x17   : > { %s4279_s17 = smov [#allocation8]   ;;  %s5711_s4 = sld [smem:[#allocation25_spill]] }
  0x18   : > { %p4372_p10 = pnand %p3854_p9, %p48_p1  ;;  %s221_s18 = sshll.u32 %s4279_s17, 4  ;;  %s222_s18 = int_to_ptr.vmem [resolvable:$true] %s221_s18 }
  0x19   : > { %s205_s7 = sshll.u32 %s5707_s2, 4  ;;  %s5712_s5 = sld [smem:[#allocation26_spill]]  ;;  %s206_s7 = int_to_ptr.hbm [resolvable:$true] %s205_s7 }
  0x1a   : > { %3857 = dma.hbm_to_vmem [thread:$0]  (!%p4372_p10), %s206_s7, 3072, %s208_s10, [#allocation6], %s5699_s15, %s5699_s15, %s5700_s16  }
  0x1b   : > { %s219_s14 = sshll.u32 %s5710_s3, 4  ;;  %s4280_s9 = smov [#allocation10]   ;;  %s220_s14 = int_to_ptr.hbm [resolvable:$true] %s219_s14 }
  0x1c   : > { %3860 = dma.hbm_to_vmem [thread:$0]  (!%p4372_p10), %s220_s14, 3072, %s222_s18, [#allocation9], %s5699_s15, %s5699_s15, %s5700_s16  }
  0x1d   : > { %s233_s26 = sshll.u32 %s5711_s4, 4  ;;  %s235_s10 = sshll.u32 %s4280_s9, 4  ;;  %s234_s26 = int_to_ptr.hbm [resolvable:$true] %s233_s26  ;;  %s236_s10 = int_to_ptr.vmem [resolvable:$true] %s235_s10 }
  0x1e   : > { %3863 = dma.hbm_to_vmem [thread:$0]  (!%p4372_p10), %s234_s26, 1024, %s236_s10, [#allocation9], %s5699_s15, %s5699_s15, %s5700_s16  }
  0x1f   : > { %s247_s7 = sshll.u32 %s5712_s5, 4  ;;  %s4281_s12 = smov [#allocation11]   ;;  %s248_s7 = int_to_ptr.hbm [resolvable:$true] %s247_s7 }
  0x20   : > { %s249_s13 = sshll.u32 %s4281_s12, 4  ;;  %s5697_s14 = smov 128   ;;  %s250_s13 = int_to_ptr.vmem [resolvable:$true] %s249_s13 }
  0x21   : > { %s5698_s17 = smov 8   ;;  %s4407_s18 = sadd.s32 1, %s4274_s24  }
  0x22   : > { %3866 = dma.hbm_to_vmem [thread:$0]  (!%p4372_p10), %s248_s7, 256, %s250_s13, [#allocation12], %s5697_s14, %s5697_s14, %s5698_s17  }
  0x23   : > { %s31_s19 = ssub.s32 %s4274_s24, %s4407_s18  ;;  %s34_s20 = sadd.s32 1, %s4270_s23 }
  0x24   : > { %p32_p12 = scmp.eq.s32.totalorder %s31_s19, 0  ;;  %p41_p13 = scmp.ne.s32.totalorder %s4270_s23, %s4266_s22 }
  0x25   : > { %p42_p0 = scmp.eq.s32.totalorder %s4274_s24, 0  ;;  %p3882_p7 = scmp.lt.s32.totalorder %s4274_s24, 2 }
  0x26   : > { %s4416_s26 = scalar_select %p32_p12, %s4270_s23, %s34_s20  }
  0x27   : > { %p43_p3 = por %p42_p0, %p41_p13  ;;  %p4420_p5 = por %p181_p2, %p41_p13 }
  0x28   : > { %5713 = sst [smem:[#allocation20_spill]] %s4416_s26  ;;  %s4426_s11 = sand.u32 1, %s4270_s23  }
  0x29   : > { %s3428_s30 = sshll.u32 %s4426_s11, 6  ;;  %s3739_s7 = sshll.u32 %s4274_s24, 6 }
  0x2a   : > { %s273_s12 = scalar_lea.hbm %s5690_s0, %s3739_s7  ;;  %s267_s13 = scalar_lea.vmem [#allocation2], %s3428_s30 }
  0x2b   : > { %s276_s19 = sshll.u32 %s267_s13, 4  ;;  %s274_s20 = sshll.u32 %s273_s12, 4  ;;  %s277_s19 = int_to_ptr.vmem [resolvable:$true] %s276_s19  ;;  %s275_s20 = int_to_ptr.hbm [resolvable:$true] %s274_s20 }
  0x2c   : > { %p4433_p2 = pnand %p3882_p7, %p43_p3  ;;  %s286_s17 = sand.u32 1, %s4274_s24  }
  0x2d   : > { %s3432_s15 = sshll.u32 %s4426_s11, 7  ;;  %s264_s16 = scalar_lea.sflag [#allocation3], %s4426_s11 }
  0x2e   : > { %s4132_s2 = sshra.s32 %s275_s20, 4  ;;  %p4136_p10 = pneg %p4433_p2  ;;  %s4133_s2 = int_to_ptr.hbm [resolvable:$true] %s4132_s2 }
  0x2f   : > { %s4134_s3 = scalar_lea.hbm %s4133_s2, 64  ;;  %s4139_s9 = scalar_lea.hbm %s5690_s0, 128 }
  0x30   : > { %p4135_p9 = scmp.ne.s32.totalorder %s4133_s2, %s4134_s3  ;;  %p4140_p0 = scmp.lt.s32.totalorder %s4133_s2, %s5690_s0 }
  0x31   : > { %p4141_p3 = scmp.lt.s32.totalorder %s4139_s9, %s4134_s3 }
  0x32   : > { %p4137_p12 = pnand %p4136_p10, %p4135_p9 }
  0x33   : > { %p4142_p7 = por %p4141_p3, %p4140_p0 }
  0x34   : > { %p4138_p13 = pneg %p4137_p12 }
  0x36   : > { %p4143_p11 = pnand %p4142_p7, %p4138_p13 }
  0x38   : > { %4146 = shalt.err (!%p4143_p11)
}
  0x39   : > { %s5716_s11 = smov 4   ;;  %s5717_s13 = smov 64  }
  0x3a   : > { %3870 = dma.hbm_to_vmem [thread:$0]  (!%p4433_p2), %s275_s20, 1024, %s277_s19, %s264_s16, %s5717_s13, %s5717_s13, %s5716_s11  }
  0x3b   : > { %s3741_s4 = sshll.u32 %s4274_s24, 7  ;;  %s290_s26 = scalar_lea.vmem [#allocation5], %s3432_s15 }
  0x3c   : > { %s296_s7 = scalar_lea.hbm %s5691_s1, %s3741_s4  ;;  %s299_s10 = sshll.u32 %s290_s26, 4  ;;  %s300_s10 = int_to_ptr.vmem [resolvable:$true] %s299_s10 }
  0x3d   : > { %s297_s2 = sshll.u32 %s296_s7, 4  ;;  %s287_s3 = scalar_lea.sflag [#allocation6], %s286_s17  ;;  %s298_s2 = int_to_ptr.hbm [resolvable:$true] %s297_s2 }
  0x3e   : > { %s4162_s9 = sshra.s32 %s298_s2, 4  ;;  %s4169_s20 = scalar_lea.hbm %s5691_s1, 256  ;;  %s4163_s9 = int_to_ptr.hbm [resolvable:$true] %s4162_s9 }
  0x3f   : > { %s4164_s12 = scalar_lea.hbm %s4163_s9, 128  ;;  %p4170_p13 = scmp.lt.s32.totalorder %s4163_s9, %s5691_s1 }
  0x40   : > { %p4165_p11 = scmp.ne.s32.totalorder %s4163_s9, %s4164_s12  ;;  %p4171_p0 = scmp.lt.s32.totalorder %s4169_s20, %s4164_s12 }
  0x42   : > { %p4167_p9 = pnand %p4165_p11, %p4136_p10  ;;  %p4172_p3 = por %p4171_p0, %p4170_p13 }
  0x44   : > { %p4168_p12 = pneg %p4167_p9 }
  0x46   : > { %p4173_p7 = pnand %p4172_p3, %p4168_p12 }
  0x48   : > { %4176 = shalt.err (!%p4173_p7)
}
  0x49   : > { %s5718_s15 = smov 8   ;;  %s5719_s17 = smov 128  }
  0x4a   : > { %3873 = dma.hbm_to_vmem [thread:$0]  (!%p4433_p2), %s298_s2, 2048, %s300_s10, %s287_s3, %s5719_s17, %s5719_s17, %s5718_s15  }
  0x4b   : > { %311 = sbr.rel (%p4364_p8) target bundleno = 1498 (0x5da), region = 44 }
  0x50   : > { %s4477_s26 = sand.u32 1, %s4266_s22  }
  0x51   : > { %s3437_s11 = sshll.u32 %s4477_s26, 6  ;;  %s314_s13 = scalar_lea.sflag [#allocation3], %s4477_s26 }
  0x52   : > { %s4481_s30 = scalar_lea.vmem [#allocation2], %s3437_s11 }
  0x53   : > { %4237 = dma.done.wait (%p4351_p4), %s314_s13, 1024  }
  0x54   : > { %4239 = vsyncadd (%p4351_p4), %s314_s13, 4294966272  ;;  %s323_s8 = sand.u32 1, %s4342_s25   ;;  %s3438_s14 = sshll.u32 %s4477_s26, 7 }
  0x55   : > { %s324_s7 = scalar_lea.sflag [#allocation6], %s323_s8  ;;  %s4491_s10 = scalar_lea.vmem [#allocation5], %s3438_s14 }
  0x56   : > { %4241 = dma.done.wait (%p4351_p4), %s324_s7, 2048  }
  0x57   : > { %4243 = vsyncadd (%p4351_p4), %s324_s7, 4294965248 }
  0x58   : > { %4245 = dma.done.wait (%p48_p1), [#allocation6], 3072  }
  0x59   : > { %4247 = vsyncadd (%p48_p1), [#allocation6], 4294964224 }
  0x5a   : > { %4249 = dma.done.wait (%p48_p1), [#allocation9], 4096  }
  0x5b   : > { %4251 = vsyncadd (%p48_p1), [#allocation9], 4294963200 }
  0x5c   : > { %4253 = dma.done.wait (%p48_p1), [#allocation12], 256  }
  0x5d   : > { %4255 = vsyncadd (%p48_p1), [#allocation12], 4294967040  ;;  %v3757_v0 = vld [vmem:[#allocation10 + $0x38] sm:$0xff]  ;;  %v4510_v1 = vld [vmem:[%s4491_s10] sm:$0xff]  ;;  %vm585_vm0 = vcmask 130048   ;;  %s5592_s27 = scalar_lea.vmem [#allocation13], %s3438_s14 }
  0x5e   : > { %v4513_v2 = vld [vmem:[%s4491_s10 + $0x8] sm:$0xff]  ;;  %v558_v3 = vpack.c.bf16 %v4510_v1, %v4510_v1  ;;  %v4518_v4 = vld [vmem:[%s4491_s10 + $0x20] sm:$0xff]  ;;  %490 = vmatpush.bf16.msra.mxu0 %v3757_v0  ;;  %v3756_v6 = vld [vmem:[#allocation10 + $0x30] sm:$0xff]  ;;  %s3807_s2 = sshll.u32 %s4342_s25, 7  ;;  %s3284_s25 = sshll.u32 %s5592_s27, 4  ;;  %s3285_s25 = int_to_ptr.vmem [resolvable:$true] %s3284_s25 }
  0x5f   : > { %v4521_v5 = vld [vmem:[%s4491_s10 + $0x28] sm:$0xff]  ;;  %v559_v7 = vpack.c.bf16 %v4513_v2, %v4513_v2  ;;  %v562_v8 = vpack.c.bf16 %v4518_v4, %v4518_v4  ;;  %v4530_v14 = vld [vmem:[%s4491_s10 + $0x10] sm:$0xff]  ;;  %v4533_v15 = vld [vmem:[%s4491_s10 + $0x18] sm:$0xff]  ;;  %v418_v63 = vpack.c.bf16 %v4513_v2, %v4510_v1  ;;  %s3283_s12 = scalar_lea.hbm %s5696_s6, %s3807_s2  ;;  %s3271_s19 = scalar_lea.sflag [#allocation4], %s4477_s26 }
  0x60   : > { %v563_v9 = vpack.c.bf16 %v4521_v5, %v4521_v5  ;;  %v581_v10 = vunpack.c.l.b16 %v558_v3  ;;  %v4536_v16 = vld [vmem:[%s4491_s10 + $0x30] sm:$0xff]  ;;  %v560_v17 = vpack.c.bf16 %v4530_v14, %v4530_v14  ;;  %v561_v18 = vpack.c.bf16 %v4533_v15, %v4533_v15  ;;  %v4543_v19 = vld [vmem:[%s4491_s10 + $0x38] sm:$0xff]  ;;  %v4552_v23 = vld [vmem:[%s4481_s30] sm:$0xff]  ;;  %s3286_s16 = sshll.u32 %s3283_s12, 4  ;;  %s4212_s17 = scalar_lea.hbm %s5696_s6, 256  ;;  %s3287_s16 = int_to_ptr.hbm [resolvable:$true] %s3286_s16 }
  0x61   : > { %v582_v11 = vunpack.c.l.b16 %v559_v7  ;;  %v638_v12 = vunpack.c.l.b16 %v562_v8  ;;  %v564_v20 = vpack.c.bf16 %v4536_v16, %v4536_v16  ;;  %v3755_v24 = vld [vmem:[#allocation10 + $0x28] sm:$0xff]  ;;  %v565_v25 = vpack.c.bf16 %v4543_v19, %v4543_v19  ;;  %v4557_v26 = vld [vmem:[%s4491_s10 + $0x50] sm:$0xff]  ;;  %v4563_v31 = vld [vmem:[%s4491_s10 + $0x58] sm:$0xff]  ;;  %s4206_s20 = sshra.s32 %s3287_s16, 4  ;;  %s4207_s20 = int_to_ptr.hbm [resolvable:$true] %s4206_s20 }
  0x62   : > { %v639_v13 = vunpack.c.l.b16 %v563_v9  ;;  %491 = vmatpush.bf16.msra.mxu0 %v3756_v6  ;;  %v4560_v27 = vld [vmem:[%s4481_s30 + $0x10] sm:$0xff]  ;;  %v610_v28 = vunpack.c.l.b16 %v560_v17  ;;  %v611_v29 = vunpack.c.l.b16 %v561_v18  ;;  %v568_v32 = vpack.c.bf16 %v4557_v26, %v4557_v26  ;;  %v4568_v33 = vld [vmem:[%s4491_s10 + $0x60] sm:$0xff]  ;;  %v4575_v37 = vld [vmem:[%s4491_s10 + $0x68] sm:$0xff]  ;;  %s4208_s5 = scalar_lea.hbm %s4207_s20, 128  ;;  %p4213_p2 = scmp.lt.s32.totalorder %s4207_s20, %s5696_s6 }
  0x63   : > { %v4547_v21 = vpack.c.b16 %v582_v11, %v581_v10  ;;  %v666_v30 = vunpack.c.l.b16 %v564_v20  ;;  %v3754_v34 = vld [vmem:[#allocation10 + $0x20] sm:$0xff]  ;;  %v667_v35 = vunpack.c.l.b16 %v565_v25  ;;  %v569_v36 = vpack.c.bf16 %v4563_v31, %v4563_v31  ;;  %v4587_v43 = vld [vmem:[%s4491_s10 + $0x48] sm:$0xff]  ;;  %v3753_v55 = vld [vmem:[#allocation10 + $0x18] sm:$0xff]  ;;  %p4209_p1 = scmp.ne.s32.totalorder %s4207_s20, %s4208_s5  ;;  %p4214_p10 = scmp.lt.s32.totalorder %s4212_s17, %s4208_s5 }
  0x64   : > { %v4549_v22 = vpack.c.b16 %v639_v13, %v638_v12  ;;  %v570_v38 = vpack.c.bf16 %v4568_v33, %v4568_v33  ;;  %v4580_v39 = vld [vmem:[%s4491_s10 + $0x40] sm:$0xff]  ;;  %v4582_v40 = vpack.c.b16 %v611_v29, %v610_v28  ;;  %v722_v41 = vunpack.c.l.b16 %v568_v32  ;;  %v4600_v49 = vld [vmem:[%s4481_s30 + $0x8] sm:$0xff]  ;;  %v3752_v57 = vld [vmem:[#allocation10 + $0x10] sm:$0xff] }
  0x65   : > { %596 = vmatpush.bf16.msra.mxu1 %v4547_v21  ;;  %v571_v42 = vpack.c.bf16 %v4575_v37, %v4575_v37  ;;  %v566_v44 = vpack.c.bf16 %v4580_v39, %v4580_v39  ;;  %v4591_v45 = vpack.c.b16 %v667_v35, %v666_v30  ;;  %v723_v46 = vunpack.c.l.b16 %v569_v36  ;;  %v3751_v58 = vld [vmem:[#allocation10 + $0x8] sm:$0xff]  ;;  %v4616_v59 = vld [vmem:[%s4481_s30 + $0x18] sm:$0xff]  ;;  %v3750_v61 = vld [vmem:[#allocation10] sm:$0xff]  ;;  %p4210_p4 = pnand %p4209_p1, %p4420_p5  ;;  %p4215_p11 = por %p4214_p10, %p4213_p2 }
  0x66   : > { %652 = vmatpush.bf16.msra.mxu3 %v4549_v22  ;;  %492 = vmatpush.bf16.msra.mxu0 %v3755_v24  ;;  %v750_v47 = vunpack.c.l.b16 %v570_v38  ;;  %v567_v48 = vpack.c.bf16 %v4587_v43, %v4587_v43  ;;  %v4619_v60 = vld [vmem:[%s4481_s30 + $0x28] sm:$0xff]  ;;  %v4626_v62 = vld [vmem:[%s4481_s30 + $0x20] sm:$0xff]  ;;  %v4633_v0 = vld [vmem:[%s4481_s30 + $0x30] sm:$0xff]  ;;  %v419_v3 = vpack.c.bf16 %v4533_v15, %v4530_v14  ;;  %v420_v17 = vpack.c.bf16 %v4521_v5, %v4518_v4 }
  0x67   : > { %v751_v50 = vunpack.c.l.b16 %v571_v42  ;;  %v694_v51 = vunpack.c.l.b16 %v566_v44  ;;  %624 = vmatpush.bf16.msra.mxu2 %v4582_v40  ;;  %v4604_v52 = vpack.c.b16 %v723_v46, %v722_v41  ;;  %v4640_v6 = vld [vmem:[%s4491_s10 + $0x70] sm:$0xff]  ;;  %v4643_v7 = vld [vmem:[%s4491_s10 + $0x78] sm:$0xff]  ;;  %v421_v18 = vpack.c.bf16 %v4543_v19, %v4536_v16  ;;  %v4669_v28 = vld [vmem:[#allocation7 + $0x28] sm:$0xff]  ;;  %p4211_p8 = pneg %p4210_p4 }
  0x68   : > { %3480 = vmatmul.msk.bf16.vlgmr.msra.gmra.mxu1 %vm585_vm0, %v4552_v23  ;;  %v695_v53 = vunpack.c.l.b16 %v567_v48  ;;  %v572_v8 = vpack.c.bf16 %v4640_v6, %v4640_v6  ;;  %v573_v9 = vpack.c.bf16 %v4643_v7, %v4643_v7  ;;  %v4652_v13 = vld [vmem:[%s4481_s30 + $0x38] sm:$0xff]  ;;  %v422_v20 = vpack.c.bf16 %v4587_v43, %v4580_v39  ;;  %v4666_v25 = vld [vmem:[#allocation7 + $0x30] sm:$0xff]  ;;  %v4674_v30 = vld [vmem:[#allocation7 + $0x20] sm:$0xff] }
  0x69   : > { %3490 = vmatmul.msk.bf16.vlgmr.msra.gmra.mxu3 %vm585_vm0, %v4560_v27  ;;  %680 = vmatpush.bf16.msrb.mxu1 %v4591_v45  ;;  %v4606_v54 = vpack.c.b16 %v751_v50, %v750_v47  ;;  %v4663_v24 = vld [vmem:[#allocation7 + $0x38] sm:$0xff]  ;;  %v423_v29 = vpack.c.bf16 %v4563_v31, %v4557_v26  ;;  %v4683_v35 = vld [vmem:[#allocation7 + $0x8] sm:$0xff]  ;;  %v424_v36 = vpack.c.bf16 %v4575_v37, %v4568_v33  ;;  %v4688_v38 = vld [vmem:[#allocation7] sm:$0xff]  ;;  %p4216_p9 = pnand %p4215_p11, %p4211_p8 }
  0x6a   : > { %493 = vmatpush.bf16.msra.mxu0 %v3754_v34  ;;  %736 = vmatpush.bf16.msrb.mxu3 %v4604_v52  ;;  %v4609_v56 = vpack.c.b16 %v695_v53, %v694_v51  ;;  %v778_v10 = vunpack.c.l.b16 %v572_v8  ;;  %v779_v11 = vunpack.c.l.b16 %v573_v9  ;;  %v4677_v32 = vld [vmem:[#allocation7 + $0x18] sm:$0xff]  ;;  %v4680_v34 = vld [vmem:[#allocation7 + $0x10] sm:$0xff]  ;;  %v4697_v46 = vld [vmem:[#allocation7 + $0x68] sm:$0xff]  ;;  %v425_v47 = vpack.c.bf16 %v4643_v7, %v4640_v6 }
  0x6b   : > { %3485 = vmatmul.msk.bf16.vlgmr.msra.gmra.mxu2 %vm585_vm0, %v4600_v49  ;;  %v4691_v41 = vld [vmem:[#allocation7 + $0x78] sm:$0xff]  ;;  %v4694_v42 = vld [vmem:[#allocation7 + $0x70] sm:$0xff]  ;;  %v4702_v48 = vld [vmem:[#allocation7 + $0x60] sm:$0xff] }
  0x6c   : > { %708 = vmatpush.bf16.msrb.mxu2 %v4609_v56  ;;  %v4649_v12 = vpack.c.b16 %v779_v11, %v778_v10  ;;  %v4710_v9 = vld [vmem:[#allocation7 + $0x50] sm:$0xff] }
  0x6d   : > { %764 = vmatpush.bf16.msra.mxu1 %v4606_v54 }
  0x6e   : > { %494 = vmatpush.bf16.msra.mxu0 %v3753_v55 }
  0x70   : > { %792 = vmatpush.bf16.msra.mxu2 %v4649_v12 }
  0x72   : > { %495 = vmatpush.bf16.msra.mxu0 %v3752_v57  ;;  %v4705_v57 = vld [vmem:[#allocation7 + $0x58] sm:$0xff] }
  0x76   : > { %496 = vmatpush.bf16.msra.mxu0 %v3751_v58 }
  0x78   : > { %3495 = vmatmul.msk.bf16.vlgmr.msrb.gmra.mxu1 %vm585_vm0, %v4616_v59 }
  0x79   : > { %3505 = vmatmul.msk.bf16.vlgmr.msrb.gmra.mxu3 %vm585_vm0, %v4619_v60 }
  0x7a   : > { %497 = vmatpush.bf16.msra.mxu0 %v3750_v61 }
  0x7b   : > { %3500 = vmatmul.msk.bf16.vlgmr.msrb.gmra.mxu2 %vm585_vm0, %v4626_v62 }
  0x7d   : > { %498 = vmatmul.bf16.vlgmr.msra.gmra.mxu0 %v418_v63 }
  0x7e   : > { %1263 = vmatpush.bf16.msrb.mxu0 %v4663_v24 }
  0x82   : > { %1264 = vmatpush.bf16.msrb.mxu0 %v4666_v25 }
  0x86   : > { %1265 = vmatpush.bf16.msrb.mxu0 %v4669_v28 }
  0x88   : > { %3510 = vmatmul.msk.bf16.vlgmr.msra.gmra.mxu1 %vm585_vm0, %v4633_v0 }
  0x8a   : > { %1266 = vmatpush.bf16.msrb.mxu0 %v4674_v30 }
  0x8b   : > { %3515 = vmatmul.msk.bf16.vlgmr.msra.gmra.mxu2 %vm585_vm0, %v4652_v13 }
  0x8d   : > { %503 = vmatmul.bf16.gmra.mxu0 %v419_v3 }
  0x8e   : > { %1267 = vmatpush.bf16.msrb.mxu0 %v4677_v32 }
  0x92   : > { %1268 = vmatpush.bf16.msrb.mxu0 %v4680_v34 }
  0x96   : > { %1269 = vmatpush.bf16.msrb.mxu0 %v4683_v35 }
  0x9a   : > { %1270 = vmatpush.bf16.msrb.mxu0 %v4688_v38 }
  0x9d   : > { %508 = vmatmul.bf16.gmra.mxu0 %v420_v17 }
  0x9e   : > { %1312 = vmatpush.bf16.msra.mxu0 %v4691_v41 }
  0xa2   : > { %1313 = vmatpush.bf16.msra.mxu0 %v4694_v42 }
  0xa6   : > { %1314 = vmatpush.bf16.msra.mxu0 %v4697_v46 }
  0xaa   : > { %1315 = vmatpush.bf16.msra.mxu0 %v4702_v48 }
  0xad   : > { %513 = vmatmul.bf16.gmra.mxu0 %v421_v18 }
  0xae   : > { %1316 = vmatpush.bf16.msra.mxu0 %v4705_v57 }
  0xb2   : > { %1317 = vmatpush.bf16.msra.mxu0 %v4710_v9 }
  0xbd   : > { %518 = vmatmul.bf16.gmra.mxu0 %v422_v20 }
  0xcd   : > { %523 = vmatmul.bf16.gmra.mxu0 %v423_v29 }
  0xdd   : > { %528 = vmatmul.bf16.gmra.mxu0 %v424_v36  ;;  %v4714_v36 = vld [vmem:[#allocation7 + $0x48] sm:$0xff] }
  0xde   : > { %1318 = vmatpush.bf16.msra.mxu0 %v4714_v36 }
  0xe5   : > { %v598_v44 = vpop.f32.mrf.mxu1 }
  0xe6   : > { %v799_v51 = vpack.c.bf16 %v598_v44, %v598_v44 }
  0xe8   : > { %v817_v61 = vunpack.c.l.b16 %v799_v51 }
  0xec   : > { %v654_v50 = vpop.f32.mrf.mxu3 }
  0xed   : > { %v600_v53 = vpop.f32.mrf.mxu1  ;;  %533 = vmatmul.bf16.gmra.mxu0 %v425_v47  ;;  %v803_v63 = vpack.c.bf16 %v654_v50, %v654_v50 }
  0xee   : > { %v800_v55 = vpack.c.bf16 %v600_v53, %v600_v53  ;;  %v626_v58 = vpop.f32.mrf.mxu2 }
  0xef   : > { %v857_v11 = vunpack.c.l.b16 %v803_v63  ;;  %v801_v18 = vpack.c.bf16 %v626_v58, %v626_v58  ;;  %v4722_v58 = vld [vmem:[#allocation7 + $0x40] sm:$0xff] }
  0xf0   : > { %v818_v3 = vunpack.c.l.b16 %v800_v55  ;;  %1319 = vmatpush.bf16.msra.mxu0 %v4722_v58 }
  0xf1   : > { %v837_v50 = vunpack.c.l.b16 %v801_v18 }
  0xf2   : > { %v4708_v8 = vpack.c.b16 %v818_v3, %v817_v61 }
  0xf4   : > { %v656_v10 = vpop.f32.mrf.mxu3  ;;  %828 = vmatpush.bf16.msra.mxu3 %v4708_v8 }
  0xf5   : > { %v804_v17 = vpack.c.bf16 %v656_v10, %v656_v10  ;;  %v682_v20 = vpop.f32.mrf.mxu1 }
  0xf6   : > { %v628_v44 = vpop.f32.mrf.mxu2  ;;  %v805_v53 = vpack.c.bf16 %v682_v20, %v682_v20 }
  0xf7   : > { %v858_v29 = vunpack.c.l.b16 %v804_v17  ;;  %3516 = vmatmul.msk.bf16.vlgmr.msra.gmra.mxu3 %vm585_vm0, %v4552_v23  ;;  %v802_v51 = vpack.c.bf16 %v628_v44, %v628_v44 }
  0xf8   : > { %v877_v23 = vunpack.c.l.b16 %v805_v53 }
  0xf9   : > { %v4718_v47 = vpack.c.b16 %v858_v29, %v857_v11  ;;  %v838_v55 = vunpack.c.l.b16 %v802_v51 }
  0xfb   : > { %868 = vmatpush.bf16.msrb.mxu2 %v4718_v47  ;;  %v4724_v63 = vpack.c.b16 %v838_v55, %v837_v50 }
  0xfc   : > { %v738_v61 = vpop.f32.mrf.mxu3 }
  0xfd   : > { %v684_v3 = vpop.f32.mrf.mxu1  ;;  %1271 = vmatmul.bf16.vlgmr.msrb.gmra.mxu0 %v4547_v21  ;;  %848 = vmatpush.bf16.msrb.mxu1 %v4724_v63  ;;  %v809_v18 = vpack.c.bf16 %v738_v61, %v738_v61 }
  0xfe   : > { %3518 = vmatmul.msk.bf16.vlgmr.msrb.gmra.mxu2 %vm585_vm0, %v4560_v27  ;;  %v806_v10 = vpack.c.bf16 %v684_v3, %v684_v3  ;;  %v710_v11 = vpop.f32.mrf.mxu2 }
  0xff   : > { %v917_v44 = vunpack.c.l.b16 %v809_v18  ;;  %v807_v51 = vpack.c.bf16 %v710_v11, %v710_v11 }
 0x100   : > { %v878_v17 = vunpack.c.l.b16 %v806_v10  ;;  %3517 = vmatmul.msk.bf16.vlgmr.msrb.gmra.mxu1 %vm585_vm0, %v4600_v49 }
 0x101   : > { %v897_v3 = vunpack.c.l.b16 %v807_v51 }
 0x102   : > { %v879_v20 = vpack.c.b16 %v878_v17, %v877_v23 }
 0x104   : > { %v740_v29 = vpop.f32.mrf.mxu3  ;;  %888 = vmatpush.bf16.msrb.mxu3 %v879_v20 }
 0x105   : > { %v810_v50 = vpack.c.bf16 %v740_v29, %v740_v29  ;;  %v766_v55 = vpop.f32.mrf.mxu1 }
 0x106   : > { %v712_v21 = vpop.f32.mrf.mxu2  ;;  %v811_v61 = vpack.c.bf16 %v766_v55, %v766_v55 }
 0x107   : > { %v918_v27 = vunpack.c.l.b16 %v810_v50  ;;  %3519 = vmatmul.msk.bf16.vlgmr.msrb.gmra.mxu3 %vm585_vm0, %v4616_v59  ;;  %v808_v10 = vpack.c.bf16 %v712_v21, %v712_v21 }
 0x108   : > { %v937_v11 = vunpack.c.l.b16 %v811_v61 }
 0x109   : > { %v4735_v53 = vpack.c.b16 %v918_v27, %v917_v44  ;;  %v898_v49 = vunpack.c.l.b16 %v808_v10 }
 0x10b   : > { %928 = vmatpush.bf16.msra.mxu2 %v4735_v53  ;;  %v899_v23 = vpack.c.b16 %v898_v49, %v897_v3 }
 0x10d   : > { %v768_v17 = vpop.f32.mrf.mxu1  ;;  %1276 = vmatmul.bf16.gmra.mxu0 %v4582_v40  ;;  %908 = vmatpush.bf16.msra.mxu1 %v899_v23  ;;  %v4755_v40 = vpop.f32.mrf.mxu0 }
 0x10e   : > { %3521 = vmatmul.msk.bf16.vlgmr.msra.gmra.mxu2 %vm585_vm0, %v4619_v60  ;;  %v812_v18 = vpack.c.bf16 %v768_v17, %v768_v17  ;;  %v794_v60 = vpop.f32.mrf.mxu2 }
 0x10f   : > { %3808 = vmatpush.bf16.msrb.mxu2 %v4663_v24 }
 0x110   : > { %v938_v59 = vunpack.c.l.b16 %v812_v18  ;;  %3520 = vmatmul.msk.bf16.vlgmr.msra.gmra.mxu1 %vm585_vm0, %v4626_v62  ;;  %v813_v62 = vpack.c.bf16 %v794_v60, %v794_v60 }
 0x112   : > { %v4745_v29 = vpack.c.b16 %v938_v59, %v937_v11 }
 0x113   : > { %3809 = vmatpush.bf16.msrb.mxu2 %v4666_v25 }
 0x114   : > { %948 = vmatpush.bf16.msra.mxu3 %v4745_v29 }
 0x116   : > { %v796_v24 = vpop.f32.mrf.mxu2 }
 0x117   : > { %3810 = vmatpush.bf16.msrb.mxu2 %v4669_v28  ;;  %3522 = vmatmul.msk.bf16.vlgmr.msra.gmra.mxu3 %vm585_vm0, %v4633_v0  ;;  %v957_v0 = vunpack.c.l.b16 %v813_v62  ;;  %v814_v25 = vpack.c.bf16 %v796_v24, %v796_v24  ;;  %v4763_v28 = vpop.f32.mrf.mxu0 }
 0x118   : > { %3816 = vmatpush.bf16.msrb.mxu3 %v4691_v41 }
 0x11b   : > { %3811 = vmatpush.bf16.msrb.mxu2 %v4674_v30  ;;  %v958_v30 = vunpack.c.l.b16 %v814_v25 }
 0x11c   : > { %3817 = vmatpush.bf16.msrb.mxu3 %v4694_v42  ;;  %v3779_v42 = vld [vmem:[#allocation7 + $0xa8] sm:$0xff] }
 0x11d   : > { %1320 = vmatmul.bf16.vlgmr.msra.gmra.mxu0 %v4708_v8  ;;  %v3775_v8 = vld [vmem:[#allocation7 + $0x88] sm:$0xff] }
 0x11f   : > { %3812 = vmatpush.bf16.msrb.mxu2 %v4677_v32  ;;  %v959_v32 = vpack.c.b16 %v958_v30, %v957_v0 }
 0x120   : > { %3818 = vmatpush.bf16.msrb.mxu3 %v4697_v46 }
 0x121   : > { %968 = vmatpush.bf16.msrb.mxu1 %v959_v32 }
 0x123   : > { %3813 = vmatpush.bf16.msrb.mxu2 %v4680_v34  ;;  %v4772_v34 = vpop.f32.mrf.mxu0 }
 0x124   : > { %3819 = vmatpush.bf16.msrb.mxu3 %v4702_v48  ;;  %3523 = vmatmul.msk.bf16.vlgmr.msrb.gmra.mxu1 %vm585_vm0, %v4652_v13  ;;  %v3780_v13 = vld [vmem:[#allocation7 + $0xb0] sm:$0xff] }
 0x125   : > { %v3776_v48 = vld [vmem:[#allocation7 + $0x90] sm:$0xff] }
 0x127   : > { %3814 = vmatpush.bf16.msrb.mxu2 %v4683_v35 }
 0x128   : > { %3820 = vmatpush.bf16.msrb.mxu3 %v4705_v57 }
 0x12b   : > { %3815 = vmatpush.bf16.msrb.mxu2 %v4688_v38  ;;  %v4776_v35 = vpop.f32.mrf.mxu0 }
 0x12c   : > { %3821 = vmatpush.bf16.msrb.mxu3 %v4710_v9  ;;  %v3774_v9 = vld [vmem:[#allocation7 + $0x80] sm:$0xff] }
 0x12d   : > { %1325 = vmatmul.bf16.gmra.mxu0 %v4724_v63 }
 0x12e   : > { %1281 = vmatmul.bf16.vlgmr.msrb.gmra.mxu2 %v4549_v22  ;;  %v3781_v22 = vld [vmem:[#allocation7 + $0xb8] sm:$0xff] }
 0x12f   : > { %1361 = vmatpush.bf16.msrb.mxu0 %v3781_v22  ;;  %3824 = vmatpush.bf16.msra.mxu1 %v3781_v22 }
 0x130   : > { %3822 = vmatpush.bf16.msrb.mxu3 %v4714_v36 }
 0x133   : > { %v4779_v38 = vpop.f32.mrf.mxu0  ;;  %1362 = vmatpush.bf16.msrb.mxu0 %v3780_v13  ;;  %3825 = vmatpush.bf16.msra.mxu1 %v3780_v13 }
 0x134   : > { %3823 = vmatpush.bf16.msrb.mxu3 %v4722_v58 }
 0x137   : > { %1330 = vmatmul.bf16.vlgmr.msrb.gmra.mxu3 %v4718_v47  ;;  %1363 = vmatpush.bf16.msrb.mxu0 %v3779_v42 }
 0x138   : > { %3826 = vmatpush.bf16.msra.mxu1 %v3779_v42 }
 0x13b   : > { %v4782_v41 = vpop.f32.mrf.mxu0 }
 0x13e   : > { %1286 = vmatmul.bf16.gmra.mxu2 %v4591_v45  ;;  %v3778_v45 = vld [vmem:[#allocation7 + $0xa0] sm:$0xff] }
 0x13f   : > { %1364 = vmatpush.bf16.msrb.mxu0 %v3778_v45  ;;  %3827 = vmatpush.bf16.msra.mxu1 %v3778_v45 }
 0x143   : > { %v4784_v46 = vpop.f32.mrf.mxu0 }
 0x147   : > { %1335 = vmatmul.bf16.gmra.mxu3 %v879_v20 }
 0x14b   : > { %v4787_v57 = vpop.f32.mrf.mxu0 }
 0x14e   : > { %1291 = vmatmul.bf16.gmra.mxu2 %v4609_v56  ;;  %v3777_v56 = vld [vmem:[#allocation7 + $0x98] sm:$0xff] }
 0x14f   : > { %1365 = vmatpush.bf16.msrb.mxu0 %v3777_v56  ;;  %3828 = vmatpush.bf16.msra.mxu1 %v3777_v56 }
 0x153   : > { %1366 = vmatpush.bf16.msrb.mxu0 %v3776_v48  ;;  %3829 = vmatpush.bf16.msra.mxu1 %v3776_v48 }
 0x157   : > { %1340 = vmatmul.bf16.gmra.mxu3 %v899_v23  ;;  %1367 = vmatpush.bf16.msrb.mxu0 %v3775_v8 }
 0x158   : > { %3830 = vmatpush.bf16.msra.mxu1 %v3775_v8 }
 0x15b   : > { %1368 = vmatpush.bf16.msrb.mxu0 %v3774_v9 }
 0x15c   : > { %3831 = vmatpush.bf16.msra.mxu1 %v3774_v9 }
 0x15e   : > { %1296 = vmatmul.bf16.gmra.mxu2 %v4604_v52  ;;  %v4791_v52 = vpop.f32.mrf.mxu0 }
 0x166   : > { %v4794_v36 = vpop.f32.mrf.mxu0 }
 0x167   : > { %1345 = vmatmul.bf16.gmra.mxu3 %v4735_v53 }
 0x16e   : > { %1301 = vmatmul.bf16.gmra.mxu2 %v4606_v54  ;;  %v4797_v20 = vpop.f32.mrf.mxu0 }
 0x176   : > { %v4802_v11 = vpop.f32.mrf.mxu0 }
 0x177   : > { %1350 = vmatmul.bf16.gmra.mxu3 %v4745_v29 }
 0x17a   : > { %v830_v47 = vpop.f32.mrf.mxu3 }
 0x17b   : > { %v975_v58 = vmul.f32 2.0, %v830_v47 }
 0x17d   : > { %v850_v63 = vpop.f32.mrf.mxu1  ;;  %v991_v50 = vsub.f32 %v975_v58, %v4510_v1 }
 0x17e   : > { %1306 = vmatmul.bf16.gmra.mxu2 %v4649_v12  ;;  %v977_v29 = vmul.f32 2.0, %v850_v63  ;;  %v4808_v56 = vpop.f32.mrf.mxu0 }
 0x17f   : > { %v1007_v27 = vpack.c.bf16 %v991_v50, %v991_v50 }
 0x181   : > { %v870_v44 = vpop.f32.mrf.mxu2  ;;  %v1039_v12 = vunpack.c.l.b16 %v1007_v27 }
 0x182   : > { %v979_v51 = vmul.f32 2.0, %v870_v44  ;;  %v832_v54 = vpop.f32.mrf.mxu3 }
 0x183   : > { %v976_v55 = vmul.f32 2.0, %v832_v54 }
 0x184   : > { %v995_v21 = vsub.f32 %v979_v51, %v4518_v4 }
 0x185   : > { %v992_v53 = vsub.f32 %v976_v55, %v4513_v2  ;;  %v852_v61 = vpop.f32.mrf.mxu1  ;;  %v993_v2 = vsub.f32 %v977_v29, %v4530_v14 }
 0x186   : > { %v1011_v49 = vpack.c.bf16 %v995_v21, %v995_v21  ;;  %v978_v60 = vmul.f32 2.0, %v852_v61  ;;  %v4811_v50 = vpop.f32.mrf.mxu0 }
 0x187   : > { %1355 = vmatmul.bf16.gmra.mxu3 %v959_v32  ;;  %v1008_v3 = vpack.c.bf16 %v992_v53, %v992_v53  ;;  %v1009_v13 = vpack.c.bf16 %v993_v2, %v993_v2 }
 0x188   : > { %v1043_v62 = vunpack.c.l.b16 %v1011_v49  ;;  %v994_v25 = vsub.f32 %v978_v60, %v4533_v15 }
 0x189   : > { %v872_v10 = vpop.f32.mrf.mxu2  ;;  %v1040_v23 = vunpack.c.l.b16 %v1008_v3  ;;  %v1041_v8 = vunpack.c.l.b16 %v1009_v13 }
 0x18a   : > { %v980_v17 = vmul.f32 2.0, %v872_v10  ;;  %v890_v18 = vpop.f32.mrf.mxu3  ;;  %v1010_v45 = vpack.c.bf16 %v994_v25, %v994_v25 }
 0x18b   : > { %v1055_v1 = vpack.c.b16 %v1040_v23, %v1039_v12  ;;  %v981_v0 = vmul.f32 2.0, %v890_v18 }
 0x18c   : > { %v996_v59 = vsub.f32 %v980_v17, %v4521_v5  ;;  %v1042_v47 = vunpack.c.l.b16 %v1010_v45 }
 0x18d   : > { %1369 = vmatmul.bf16.vlgmr.msrb.gmra.mxu0 %v1055_v1  ;;  %v910_v22 = vpop.f32.mrf.mxu1  ;;  %v997_v42 = vsub.f32 %v981_v0, %v4536_v16 }
 0x18e   : > { %v1012_v24 = vpack.c.bf16 %v996_v59, %v996_v59  ;;  %v1056_v58 = vpack.c.b16 %v1042_v47, %v1041_v8  ;;  %v983_v51 = vmul.f32 2.0, %v910_v22  ;;  %v4815_v3 = vpop.f32.mrf.mxu0 }
 0x18f   : > { %v1013_v9 = vpack.c.bf16 %v997_v42, %v997_v42  ;;  %5720 = vst [vmem:[#allocation21_spill] sm:$0xff] %v4815_v3 }
 0x190   : > { %v1044_v4 = vunpack.c.l.b16 %v1012_v24  ;;  %v999_v55 = vsub.f32 %v983_v51, %v4580_v39 }
 0x191   : > { %v1045_v63 = vunpack.c.l.b16 %v1013_v9 }
 0x192   : > { %v1057_v30 = vpack.c.b16 %v1044_v4, %v1043_v62  ;;  %v892_v32 = vpop.f32.mrf.mxu3  ;;  %v1015_v21 = vpack.c.bf16 %v999_v55, %v999_v55 }
 0x193   : > { %v982_v5 = vmul.f32 2.0, %v892_v32 }
 0x194   : > { %1379 = vmatmul.bf16.vlgmr.msra.gmra.mxu1 %v1057_v30  ;;  %v1047_v10 = vunpack.c.l.b16 %v1015_v21 }
 0x195   : > { %v998_v48 = vsub.f32 %v982_v5, %v4543_v19  ;;  %v912_v44 = vpop.f32.mrf.mxu1  ;;  %v930_v19 = vpop.f32.mrf.mxu2 }
 0x196   : > { %v984_v54 = vmul.f32 2.0, %v912_v44  ;;  %v985_v49 = vmul.f32 2.0, %v930_v19  ;;  %v4817_v18 = vpop.f32.mrf.mxu0 }
 0x197   : > { %v1014_v14 = vpack.c.bf16 %v998_v48, %v998_v48  ;;  %5721 = vst [vmem:[#allocation22_spill] sm:$0xff] %v4817_v18  ;;  %v3789_v18 = vld [vmem:[#allocation8 + $0x38] sm:$0xff] }
 0x198   : > { %v1000_v27 = vsub.f32 %v984_v54, %v4587_v43  ;;  %v1001_v1 = vsub.f32 %v985_v49, %v4557_v26 }
 0x199   : > { %v1046_v15 = vunpack.c.l.b16 %v1014_v14 }
 0x19a   : > { %v1016_v53 = vpack.c.bf16 %v1000_v27, %v1000_v27  ;;  %v950_v59 = vpop.f32.mrf.mxu3  ;;  %v1017_v43 = vpack.c.bf16 %v1001_v1, %v1001_v1 }
 0x19b   : > { %v1058_v16 = vpack.c.b16 %v1046_v15, %v1045_v63  ;;  %v987_v2 = vmul.f32 2.0, %v950_v59 }
 0x19c   : > { %v1048_v61 = vunpack.c.l.b16 %v1016_v53  ;;  %v1049_v60 = vunpack.c.l.b16 %v1017_v43 }
 0x19d   : > { %1374 = vmatmul.bf16.gmra.mxu0 %v1056_v58  ;;  %v932_v12 = vpop.f32.mrf.mxu2  ;;  %v1003_v32 = vsub.f32 %v987_v2, %v4568_v33 }
 0x19e   : > { %v986_v23 = vmul.f32 2.0, %v932_v12  ;;  %v1059_v17 = vpack.c.b16 %v1048_v61, %v1047_v10  ;;  %v1272_v24 = vpop.f32.mrf.mxu0 }
 0x19f   : > { %v1019_v13 = vpack.c.bf16 %v1003_v32, %v1003_v32 }
 0x1a0   : > { %v1002_v39 = vsub.f32 %v986_v23, %v4563_v31 }
 0x1a1   : > { %v970_v30 = vpop.f32.mrf.mxu1  ;;  %v1051_v42 = vunpack.c.l.b16 %v1019_v13 }
 0x1a2   : > { %v1018_v29 = vpack.c.bf16 %v1002_v39, %v1002_v39  ;;  %v952_v4 = vpop.f32.mrf.mxu3  ;;  %v989_v48 = vmul.f32 2.0, %v970_v30 }
 0x1a3   : > { %v988_v0 = vmul.f32 2.0, %v952_v4 }
 0x1a4   : > { %1384 = vmatmul.bf16.gmra.mxu1 %v1058_v16  ;;  %v1050_v62 = vunpack.c.l.b16 %v1018_v29  ;;  %v1005_v14 = vsub.f32 %v989_v48, %v4640_v6  ;;  %v4829_v29 = vld [vmem:[#allocation11] ss:$0 sm:$0xff] }
 0x1a5   : > { %v1004_v22 = vsub.f32 %v988_v0, %v4575_v37 }
 0x1a6   : > { %v1060_v25 = vpack.c.b16 %v1050_v62, %v1049_v60  ;;  %v1274_v26 = vpop.f32.mrf.mxu0  ;;  %v1021_v63 = vpack.c.bf16 %v1005_v14, %v1005_v14 }
 0x1a7   : > { %v1020_v31 = vpack.c.bf16 %v1004_v22, %v1004_v22 }
 0x1a8   : > { %v1053_v37 = vunpack.c.l.b16 %v1021_v63 }
 0x1a9   : > { %v1052_v45 = vunpack.c.l.b16 %v1020_v31  ;;  %v972_v5 = vpop.f32.mrf.mxu1 }
 0x1aa   : > { %v990_v9 = vmul.f32 2.0, %v972_v5 }
 0x1ab   : > { %v1061_v8 = vpack.c.b16 %v1052_v45, %v1051_v42 }
 0x1ac   : > { %v1006_v58 = vsub.f32 %v990_v9, %v4643_v7 }
 0x1ae   : > { %v1277_v47 = vpop.f32.mrf.mxu0  ;;  %v1022_v33 = vpack.c.bf16 %v1006_v58, %v1006_v58 }
 0x1b0   : > { %v1054_v44 = vunpack.c.l.b16 %v1022_v33 }
 0x1b1   : > { %v1282_v16 = vpop.f32.mrf.mxu2 }
 0x1b2   : > { %v1062_v51 = vpack.c.b16 %v1054_v44, %v1053_v37 }
 0x1b4   : > { %1389 = vmatmul.bf16.gmra.mxu1 %v1059_v17 }
 0x1b6   : > { %v1279_v15 = vpop.f32.mrf.mxu0 }
 0x1b9   : > { %v1284_v27 = vpop.f32.mrf.mxu2 }
 0x1ba   : > { %v1331_v55 = vpop.f32.mrf.mxu3 }
 0x1bb   : > { %v1332_v4 = vadd.f32 %v1331_v55, %v1282_v16 }
 0x1be   : > { %v1321_v54 = vpop.f32.mrf.mxu0 }
 0x1bf   : > { %v1322_v1 = vadd.f32 %v1321_v54, %v1272_v24 }
 0x1c1   : > { %v1287_v53 = vpop.f32.mrf.mxu2 }
 0x1c2   : > { %v1333_v21 = vpop.f32.mrf.mxu3 }
 0x1c3   : > { %v1334_v32 = vadd.f32 %v1333_v21, %v1284_v27 }
 0x1c4   : > { %1394 = vmatmul.bf16.gmra.mxu1 %v1060_v25 }
 0x1c6   : > { %v1323_v19 = vpop.f32.mrf.mxu0 }
 0x1c7   : > { %v1324_v59 = vadd.f32 %v1323_v19, %v1274_v26 }
 0x1c9   : > { %v1289_v6 = vpop.f32.mrf.mxu2 }
 0x1ca   : > { %v1336_v61 = vpop.f32.mrf.mxu3 }
 0x1ce   : > { %v1326_v10 = vpop.f32.mrf.mxu0 }
 0x1cf   : > { %v1327_v14 = vadd.f32 %v1326_v10, %v1277_v47  ;;  %v1337_v10 = vadd.f32 %v1336_v61, %v1287_v53 }
 0x1d1   : > { %v4825_v23 = vpop.f32.mrf.mxu2 }
 0x1d2   : > { %v1338_v49 = vpop.f32.mrf.mxu3 }
 0x1d4   : > { %1399 = vmatmul.bf16.gmra.mxu1 %v1061_v8 }
 0x1d6   : > { %v1328_v12 = vpop.f32.mrf.mxu0 }
 0x1d9   : > { %v4831_v2 = vpop.f32.mrf.mxu2 }
 0x1da   : > { %v4827_v17 = vpop.f32.mrf.mxu3 }
 0x1e1   : > { %v4839_v58 = vpop.f32.mrf.mxu2 }
 0x1e2   : > { %v4835_v30 = vpop.f32.mrf.mxu3 }
 0x1e4   : > { %1404 = vmatmul.bf16.gmra.mxu1 %v1062_v51  ;;  %v1329_v51 = vadd.f32 %v1328_v12, %v1279_v15  ;;  %v1339_v12 = vadd.f32 %v1338_v49, %v1289_v6 }
 0x1ea   : > { %v4841_v37 = vpop.f32.mrf.mxu3 }
 0x1f2   : > { %v4855_v53 = vpop.f32.mrf.mxu3 }
 0x20a   : > { %v1370_v7 = vpop.f32.mrf.mxu0 }
 0x20b   : > { %v1371_v43 = vadd.f32 %v1370_v7, %v1322_v1 }
 0x20d   : > { %v1411_v0 = vadd.f32 %v4829_v29, %v1371_v43 }
 0x211   : > { %v1380_v39 = vpop.f32.mrf.mxu1 }
 0x212   : > { %v1372_v60 = vpop.f32.mrf.mxu0  ;;  %v1381_v22 = vadd.f32 %v1380_v39, %v1332_v4 }
 0x213   : > { %v1373_v62 = vadd.f32 %v1372_v60, %v1324_v59 }
 0x214   : > { %v1415_v45 = vadd.f32 %v4829_v29, %v1381_v22  ;;  %v4849_v22 = vpop.f32.mrf.mxu2 }
 0x215   : > { %v1412_v25 = vadd.f32 %v4829_v29, %v1373_v62 }
 0x217   : > { %v1429_v13 = vadd.f32 %v1412_v25, %v1411_v0 }
 0x219   : > { %v1382_v24 = vpop.f32.mrf.mxu1  ;;  %v1430_v31 = vrot.slane %v1429_v13, 4 }
 0x21a   : > { %v1383_v26 = vadd.f32 %v1382_v24, %v1334_v32  ;;  %v1375_v42 = vpop.f32.mrf.mxu0 }
 0x21b   : > { %v1431_v5 = vadd.f32 %v1430_v31, %v1429_v13  ;;  %v1376_v55 = vadd.f32 %v1375_v42, %v1327_v14 }
 0x21c   : > { %v1416_v48 = vadd.f32 %v4829_v29, %v1383_v26 }
 0x21d   : > { %v1432_v8 = vrot.slane %v1431_v5, 2  ;;  %v1413_v59 = vadd.f32 %v4829_v29, %v1376_v55 }
 0x21e   : > { %v1443_v9 = vadd.f32 %v1416_v48, %v1415_v45 }
 0x21f   : > { %v1433_v63 = vadd.f32 %v1432_v8, %v1431_v5 }
 0x220   : > { %v1444_v33 = vrot.slane %v1443_v9, 4 }
 0x221   : > { %v1385_v44 = vpop.f32.mrf.mxu1  ;;  %v1434_v16 = vrot.slane %v1433_v63, 1 }
 0x222   : > { %v1445_v54 = vadd.f32 %v1444_v33, %v1443_v9  ;;  %v1377_v27 = vpop.f32.mrf.mxu0  ;;  %v1386_v4 = vadd.f32 %v1385_v44, %v1337_v10  ;;  %v4869_v10 = vpop.f32.mrf.mxu3 }
 0x223   : > { %v1435_v19 = vadd.f32 %v1434_v16, %v1433_v63  ;;  %v1378_v7 = vadd.f32 %v1377_v27, %v1329_v51 }
 0x224   : > { %v1446_v21 = vrot.slane %v1445_v54, 2  ;;  %v1417_v6 = vadd.f32 %v4829_v29, %v1386_v4 }
 0x225   : > { %v1485_v1 = vmul.f32 0.0625, %v1435_v19  ;;  %v1414_v47 = vadd.f32 %v4829_v29, %v1378_v7 }
 0x226   : > { %v1447_v39 = vadd.f32 %v1446_v21, %v1445_v54 }
 0x227   : > { %v4845_v43 = vsub.f32 %v1411_v0, %v1485_v1  ;;  %v4847_v60 = vsub.f32 %v1412_v25, %v1485_v1  ;;  %v1436_v15 = vadd.f32 %v1414_v47, %v1413_v59 }
 0x228   : > { %v1448_v62 = vrot.slane %v1447_v39, 1 }
 0x229   : > { %v1387_v32 = vpop.f32.mrf.mxu1  ;;  %v1509_v13 = vmul.f32 %v4845_v43, %v4845_v43  ;;  %v1510_v24 = vmul.f32 %v4847_v60, %v4847_v60  ;;  %v1437_v26 = vrot.slane %v1436_v15, 4 }
 0x22a   : > { %v1449_v31 = vadd.f32 %v1448_v62, %v1447_v39  ;;  %v1388_v61 = vadd.f32 %v1387_v32, %v1339_v12  ;;  %v1342_v32 = vadd.f32 %v4827_v17, %v4825_v23 }
 0x22b   : > { %v1525_v0 = vadd.f32 %v1510_v24, %v1509_v13  ;;  %v1438_v42 = vadd.f32 %v1437_v26, %v1436_v15 }
 0x22c   : > { %v1487_v25 = vmul.f32 0.0625, %v1449_v31  ;;  %v1418_v49 = vadd.f32 %v4829_v29, %v1388_v61 }
 0x22d   : > { %v1526_v5 = vrot.slane %v1525_v0, 4  ;;  %v1439_v14 = vrot.slane %v1438_v42, 2 }
 0x22e   : > { %v4859_v8 = vsub.f32 %v1415_v45, %v1487_v25  ;;  %v4861_v9 = vsub.f32 %v1416_v48, %v1487_v25  ;;  %v1450_v63 = vadd.f32 %v1418_v49, %v1417_v6  ;;  %v4867_v45 = vpop.f32.mrf.mxu2 }
 0x22f   : > { %v1527_v33 = vadd.f32 %v1526_v5, %v1525_v0  ;;  %v1440_v16 = vadd.f32 %v1439_v14, %v1438_v42  ;;  %v1344_v0 = vadd.f32 %v4835_v30, %v4831_v2 }
 0x230   : > { %v1513_v44 = vmul.f32 %v4859_v8, %v4859_v8  ;;  %v1514_v51 = vmul.f32 %v4861_v9, %v4861_v9  ;;  %v1451_v54 = vrot.slane %v1450_v63, 4 }
 0x231   : > { %v1390_v55 = vpop.f32.mrf.mxu1  ;;  %v1528_v27 = vrot.slane %v1527_v33, 2  ;;  %v1441_v21 = vrot.slane %v1440_v16, 1 }
 0x232   : > { %v1539_v19 = vadd.f32 %v1514_v51, %v1513_v44  ;;  %v1452_v7 = vadd.f32 %v1451_v54, %v1450_v63  ;;  %v1391_v42 = vadd.f32 %v1390_v55, %v1342_v32 }
 0x233   : > { %v1529_v48 = vadd.f32 %v1528_v27, %v1527_v33  ;;  %v1442_v39 = vadd.f32 %v1441_v21, %v1440_v16 }
 0x234   : > { %v1540_v1 = vrot.slane %v1539_v19, 4  ;;  %v1453_v62 = vrot.slane %v1452_v7, 2  ;;  %v4884_v54 = vadd.f32 %v4829_v29, %v1391_v42 }
 0x235   : > { %v1530_v15 = vrot.slane %v1529_v48, 1  ;;  %v1486_v4 = vmul.f32 0.0625, %v1442_v39 }
 0x236   : > { %v1541_v12 = vadd.f32 %v1540_v1, %v1539_v19  ;;  %v1454_v13 = vadd.f32 %v1453_v62, %v1452_v7  ;;  %v4889_v30 = vpop.f32.mrf.mxu2  ;;  %v4891_v19 = vpop.f32.mrf.mxu3 }
 0x237   : > { %v1531_v24 = vadd.f32 %v1530_v15, %v1529_v48  ;;  %v4873_v26 = vsub.f32 %v1413_v59, %v1486_v4  ;;  %v4875_v61 = vsub.f32 %v1414_v47, %v1486_v4 }
 0x238   : > { %v1542_v31 = vrot.slane %v1541_v12, 2  ;;  %v1455_v25 = vrot.slane %v1454_v13, 1 }
 0x239   : > { %v1392_v5 = vpop.f32.mrf.mxu1  ;;  %v1581_v14 = vmul.f32 0.0625, %v1531_v24  ;;  %v1511_v33 = vmul.f32 %v4873_v26, %v4873_v26  ;;  %v1512_v23 = vmul.f32 %v4875_v61, %v4875_v61 }
 0x23a   : > { %v1543_v63 = vadd.f32 %v1542_v31, %v1541_v12  ;;  %v1456_v17 = vadd.f32 %v1455_v25, %v1454_v13  ;;  %v1393_v44 = vadd.f32 %v1392_v5, %v1344_v0  ;;  %v1347_v5 = vadd.f32 %v4841_v37, %v4839_v58 }
 0x23b   : > { %v1589_v59 = vadd.f32 1e-05, %v1581_v14  ;;  %v1532_v47 = vadd.f32 %v1512_v23, %v1511_v33 }
 0x23c   : > { %v1544_v51 = vrot.slane %v1543_v63, 1  ;;  %v1488_v16 = vmul.f32 0.0625, %v1456_v17  ;;  %v4887_v2 = vadd.f32 %v4829_v29, %v1393_v44  ;;  %v1349_v17 = vadd.f32 %v4855_v53, %v4849_v22 }
 0x23d   : > { %3940 = vrsqrt.f32 %v1589_v59  ;;  %v1533_v27 = vrot.slane %v1532_v47, 4  ;;  %vm1603_vm2 = vweird.f32 %v1589_v59 }
 0x23e   : > { %v1545_v55 = vadd.f32 %v1544_v51, %v1543_v63  ;;  %v4893_v21 = vsub.f32 %v1417_v6, %v1488_v16  ;;  %v4895_v7 = vsub.f32 %v1418_v49, %v1488_v16  ;;  %v1457_v48 = vadd.f32 %v4887_v2, %v4884_v54  ;;  %v1307_v44 = vpop.f32.mrf.mxu2  ;;  %v1356_v16 = vpop.f32.mrf.mxu3 }
 0x23f   : > { %v1534_v39 = vadd.f32 %v1533_v27, %v1532_v47 }
 0x240   : > { %v1583_v1 = vmul.f32 0.0625, %v1545_v55  ;;  %v1515_v62 = vmul.f32 %v4893_v21, %v4893_v21  ;;  %v1516_v15 = vmul.f32 %v4895_v7, %v4895_v7  ;;  %v1458_v12 = vrot.slane %v1457_v48, 4 }
 0x241   : > { %v1395_v4 = vpop.f32.mrf.mxu1  ;;  %v1535_v13 = vrot.slane %v1534_v39, 2 }
 0x242   : > { %v4903_v32 = vadd.f32 1e-05, %v1583_v1  ;;  %v1546_v6 = vadd.f32 %v1516_v15, %v1515_v62  ;;  %v1459_v24 = vadd.f32 %v1458_v12, %v1457_v48  ;;  %v1396_v47 = vadd.f32 %v1395_v4, %v1347_v5 }
 0x243   : > { %v3941_v49 = vpop.eup %3940  ;;  %v1536_v31 = vadd.f32 %v1535_v13, %v1534_v39  ;;  %v1352_v5 = vadd.f32 %v4869_v10, %v4867_v45 }
 0x244   : > { %3942 = vrsqrt.f32 %v4903_v32  ;;  %v1598_v0 = vmul.f32 %v3941_v49, %v1589_v59  ;;  %v1547_v25 = vrot.slane %v1546_v6, 4  ;;  %v1460_v42 = vrot.slane %v1459_v24, 2 }
 0x245   : > { %v1537_v14 = vrot.slane %v1536_v31, 1  ;;  %vm1604_vm1 = vweird.f32 %v3941_v49  ;;  %v4914_v22 = vadd.f32 %v4829_v29, %v1396_v47  ;;  %vm1623_vm5 = vweird.f32 %v4903_v32 }
 0x246   : > { %v1599_v63 = vmul.f32 %v3941_v49, %v1598_v0  ;;  %v1548_v33 = vadd.f32 %v1547_v25, %v1546_v6  ;;  %v1461_v23 = vadd.f32 %v1460_v42, %v1459_v24  ;;  %vm1605_vm3 = vmor %vm1603_vm2, %vm1604_vm1  ;;  %v4919_v0 = vld [vmem:[#allocation11 + $0x1] ss:$0 sm:$0xff] }
 0x247   : > { %v1538_v51 = vadd.f32 %v1537_v14, %v1536_v31 }
 0x248   : > { %v1600_v55 = vmul.f32 0.5, %v1599_v63  ;;  %v1549_v27 = vrot.slane %v1548_v33, 2  ;;  %v1462_v48 = vrot.slane %v1461_v23, 1 }
 0x249   : > { %v1397_v1 = vpop.f32.mrf.mxu1  ;;  %v1582_v62 = vmul.f32 0.0625, %v1538_v51 }
 0x24a   : > { %v3943_v39 = vpop.eup %3942  ;;  %v1398_v15 = vadd.f32 %v1397_v1, %v1349_v17  ;;  %v1601_v12 = vsub.f32 1.5, %v1600_v55  ;;  %v1550_v37 = vadd.f32 %v1549_v27, %v1548_v33  ;;  %v1463_v6 = vadd.f32 %v1462_v48, %v1461_v23  ;;  %v4928_v17 = vld [vmem:[#allocation11 + $0x2] ss:$0 sm:$0xff]  ;;  %v1358_v1 = vpop.f32.mrf.mxu3 }
 0x24b   : > { %v1618_v58 = vmul.f32 %v3943_v39, %v4903_v32  ;;  %v4911_v13 = vadd.f32 1e-05, %v1582_v62  ;;  %vm1624_vm4 = vweird.f32 %v3943_v39 }
 0x24c   : > { %v4917_v53 = vadd.f32 %v4829_v29, %v1398_v15  ;;  %v1602_v4 = vmul.f32 %v3941_v49, %v1601_v12  ;;  %v1551_v31 = vrot.slane %v1550_v37, 1  ;;  %v1489_v25 = vmul.f32 0.0625, %v1463_v6  ;;  %vm1625_vm6 = vmor %vm1623_vm5, %vm1624_vm4 }
 0x24d   : > { %v1619_v24 = vmul.f32 %v3943_v39, %v1618_v58  ;;  %3944 = vrsqrt.f32 %v4911_v13  ;;  %v1354_v58 = vadd.f32 %v4891_v19, %v4889_v30  ;;  %vm1613_vm7 = vweird.f32 %v4911_v13 }
 0x24e   : > { %v1464_v42 = vadd.f32 %v4917_v53, %v4914_v22  ;;  %v1606_v14 = vsel %vm1605_vm3, %v3941_v49, %v1602_v4  ;;  %v1552_v33 = vadd.f32 %v1551_v31, %v1550_v37  ;;  %v4931_v51 = vsub.f32 %v4884_v54, %v1489_v25  ;;  %v1309_v54 = vpop.f32.mrf.mxu2 }
 0x24f   : > { %v1620_v63 = vmul.f32 0.5, %v1619_v24  ;;  %v1677_v23 = vmul.f32 %v1606_v14, %v4845_v43  ;;  %v1678_v59 = vmul.f32 %v1606_v14, %v4847_v60  ;;  %v4934_v47 = vsub.f32 %v4887_v2, %v1489_v25 }
 0x250   : > { %v1584_v27 = vmul.f32 0.0625, %v1552_v33  ;;  %v1465_v48 = vrot.slane %v1464_v42, 4  ;;  %v1517_v43 = vmul.f32 %v4931_v51, %v4931_v51  ;;  %v4950_v24 = vadd.f32 %v1356_v16, %v1307_v44 }
 0x251   : > { %v1621_v55 = vsub.f32 1.5, %v1620_v63  ;;  %v1400_v45 = vpop.f32.mrf.mxu1  ;;  %v1694_v10 = vmul.f32 %v4919_v0, %v1677_v23  ;;  %v1695_v49 = vmul.f32 %v4919_v0, %v1678_v59  ;;  %v1518_v60 = vmul.f32 %v4934_v47, %v4934_v47 }
 0x252   : > { %v4943_v2 = vadd.f32 1e-05, %v1584_v27  ;;  %v1466_v15 = vadd.f32 %v1465_v48, %v1464_v42  ;;  %v4954_v32 = vadd.f32 %v1358_v1, %v1309_v54  ;;  %v1401_v16 = vadd.f32 %v1400_v45, %v1352_v5 }
 0x253   : > { %v1622_v62 = vmul.f32 %v3943_v39, %v1621_v55  ;;  %v3945_v12 = vpop.eup %3944  ;;  %v1712_v37 = vadd.f32 %v4928_v17, %v1695_v49  ;;  %v1553_v6 = vadd.f32 %v1518_v60, %v1517_v43  ;;  %v1711_v4 = vadd.f32 %v4928_v17, %v1694_v10 }
 0x254   : > { %v1608_v25 = vmul.f32 %v3945_v12, %v4911_v13  ;;  %3946 = vrsqrt.f32 %v4943_v2  ;;  %v1467_v33 = vrot.slane %v1466_v15, 2  ;;  %vm1614_vm8 = vweird.f32 %v3945_v12 }
 0x255   : > { %v1626_v31 = vsel %vm1625_vm6, %v3943_v39, %v1622_v62  ;;  %v4956_v42 = vmax.f32 %v1712_v37, 0.0  ;;  %v1554_v63 = vrot.slane %v1553_v6, 4  ;;  %v4962_v39 = vmax.f32 %v1711_v4, 0.0  ;;  %vm1615_vm9 = vmor %vm1613_vm7, %vm1614_vm8 }
 0x256   : > { %v1681_v30 = vmul.f32 %v1626_v31, %v4859_v8  ;;  %v1682_v19 = vmul.f32 %v1626_v31, %v4861_v9  ;;  %v1609_v14 = vmul.f32 %v3945_v12, %v1608_v25  ;;  %v1468_v8 = vadd.f32 %v1467_v33, %v1466_v15 }
 0x257   : > { %v1745_v23 = vpack.c.bf16 %v4956_v42, %v4956_v42  ;;  %v1555_v27 = vadd.f32 %v1554_v63, %v1553_v6  ;;  %v1744_v10 = vpack.c.bf16 %v4962_v39, %v4962_v39  ;;  %v4972_v62 = vadd.f32 %v4829_v29, %v1401_v16 }
 0x258   : > { %v1698_v44 = vmul.f32 %v4919_v0, %v1681_v30  ;;  %v1699_v59 = vmul.f32 %v4919_v0, %v1682_v19  ;;  %v1610_v55 = vmul.f32 0.5, %v1609_v14  ;;  %v1469_v45 = vrot.slane %v1468_v8, 1 }
 0x259   : > { %v1402_v48 = vpop.f32.mrf.mxu1  ;;  %v1763_v49 = vunpack.c.l.b16 %v1745_v23  ;;  %v1556_v5 = vrot.slane %v1555_v27, 2  ;;  %v1762_v37 = vunpack.c.l.b16 %v1744_v10  ;;  %vm1633_vm11 = vweird.f32 %v4943_v2 }
 0x25a   : > { %v1403_v9 = vadd.f32 %v1402_v48, %v1354_v58  ;;  %v3947_v43 = vpop.eup %3946  ;;  %v1611_v60 = vsub.f32 1.5, %v1610_v55  ;;  %v1715_v54 = vadd.f32 %v4928_v17, %v1698_v44  ;;  %v1716_v58 = vadd.f32 %v4928_v17, %v1699_v59 }
 0x25b   : > { %v1628_v1 = vmul.f32 %v3947_v43, %v4943_v2  ;;  %v1557_v4 = vadd.f32 %v1556_v5, %v1555_v27  ;;  %v1470_v31 = vadd.f32 %v1469_v45, %v1468_v8  ;;  %vm1634_vm10 = vweird.f32 %v3947_v43 }
 0x25c   : > { %v4975_v15 = vadd.f32 %v4829_v29, %v1403_v9  ;;  %v1612_v6 = vmul.f32 %v3945_v12, %v1611_v60  ;;  %v4983_v19 = vpack.c.b16 %v1763_v49, %v1762_v37  ;;  %v4985_v44 = vmax.f32 %v1715_v54, 0.0  ;;  %vm1635_vm12 = vmor %vm1633_vm11, %vm1634_vm10 }
 0x25d   : > { %v1629_v25 = vmul.f32 %v3947_v43, %v1628_v1  ;;  %v1558_v63 = vrot.slane %v1557_v4, 1  ;;  %v1490_v33 = vmul.f32 0.0625, %v1470_v31  ;;  %v4996_v48 = vmax.f32 %v1716_v58, 0.0 }
 0x25e   : > { %v1471_v30 = vadd.f32 %v4975_v15, %v4972_v62  ;;  %v1616_v14 = vsel %vm1615_vm9, %v3945_v12, %v1612_v6  ;;  %1773 = vmatpush.bf16.msra.mxu0 %v4983_v19  ;;  %v1748_v58 = vpack.c.bf16 %v4985_v44, %v4985_v44 }
 0x25f   : > { %v1679_v16 = vmul.f32 %v1616_v14, %v4873_v26  ;;  %v1680_v23 = vmul.f32 %v1616_v14, %v4875_v61  ;;  %v1630_v59 = vmul.f32 0.5, %v1629_v25  ;;  %v1559_v55 = vadd.f32 %v1558_v63, %v1557_v4 }
 0x260   : > { %v1472_v13 = vrot.slane %v1471_v30, 4  ;;  %v4991_v27 = vsub.f32 %v4914_v22, %v1490_v33  ;;  %v4994_v8 = vsub.f32 %v4917_v53, %v1490_v33  ;;  %v5006_v53 = vld [vmem:[%s4481_s30] sm:$0xff]  ;;  %v1749_v6 = vpack.c.bf16 %v4996_v48, %v4996_v48 }
 0x261   : > { %v1405_v12 = vpop.f32.mrf.mxu1  ;;  %v1696_v9 = vmul.f32 %v4919_v0, %v1679_v16  ;;  %v1697_v26 = vmul.f32 %v4919_v0, %v1680_v23  ;;  %v1631_v61 = vsub.f32 1.5, %v1630_v59  ;;  %v1585_v49 = vmul.f32 0.0625, %v1559_v55  ;;  %3620 = vmatmul.msk.bf16.vlgmr.msra.gmra.mxu0 %vm585_vm0, %v5006_v53 }
 0x262   : > { %v1473_v10 = vadd.f32 %v1472_v13, %v1471_v30  ;;  %v1519_v60 = vmul.f32 %v4991_v27, %v4991_v27  ;;  %v1520_v22 = vmul.f32 %v4994_v8, %v4994_v8  ;;  %v1406_v33 = vadd.f32 %v1405_v12, %v4950_v24 }
 0x263   : > { %v1714_v5 = vadd.f32 %v4928_v17, %v1697_v26  ;;  %v1632_v45 = vmul.f32 %v3947_v43, %v1631_v61  ;;  %v1713_v1 = vadd.f32 %v4928_v17, %v1696_v9  ;;  %v5013_v2 = vadd.f32 1e-05, %v1585_v49 }
 0x264   : > { %v1474_v54 = vrot.slane %v1473_v10, 2  ;;  %v1560_v37 = vadd.f32 %v1520_v22, %v1519_v60  ;;  %v1803_v26 = vunpack.c.l.b16 %v1749_v6 }
 0x265   : > { %v5019_v4 = vmax.f32 %v1714_v5, 0.0  ;;  %v1636_v31 = vsel %vm1635_vm12, %v3947_v43, %v1632_v45  ;;  %v5021_v30 = vmax.f32 %v1713_v1, 0.0  ;;  %3948 = vrsqrt.f32 %v5013_v2 }
 0x266   : > { %v1475_v25 = vadd.f32 %v1474_v54, %v1473_v10  ;;  %v1683_v14 = vmul.f32 %v1636_v31, %v4893_v21  ;;  %v1684_v63 = vmul.f32 %v1636_v31, %v4895_v7  ;;  %v1561_v16 = vrot.slane %v1560_v37, 4 }
 0x267   : > { %v1746_v59 = vpack.c.bf16 %v5021_v30, %v5021_v30  ;;  %v1747_v13 = vpack.c.bf16 %v5019_v4, %v5019_v4  ;;  %v1802_v21 = vunpack.c.l.b16 %v1748_v58  ;;  %v1425_v1 = vadd.f32 %v4829_v29, %v1406_v33 }
 0x268   : > { %v1476_v23 = vrot.slane %v1475_v25, 1  ;;  %v1700_v43 = vmul.f32 %v4919_v0, %v1683_v14  ;;  %v1701_v55 = vmul.f32 %v4919_v0, %v1684_v63  ;;  %v1562_v7 = vadd.f32 %v1561_v16, %v1560_v37 }
 0x269   : > { %v1407_v9 = vpop.f32.mrf.mxu1  ;;  %v1782_v24 = vunpack.c.l.b16 %v1746_v59  ;;  %v1783_v49 = vunpack.c.l.b16 %v1747_v13  ;;  %v5048_v14 = vpack.c.b16 %v1803_v26, %v1802_v21  ;;  %vm1643_vm14 = vweird.f32 %v5013_v2 }
 0x26a   : > { %v1477_v61 = vadd.f32 %v1476_v23, %v1475_v25  ;;  %v1408_v10 = vadd.f32 %v1407_v9, %v4954_v32  ;;  %v1718_v12 = vadd.f32 %v4928_v17, %v1701_v55  ;;  %v1717_v60 = vadd.f32 %v4928_v17, %v1700_v43 }
 0x26b   : > { %v1563_v22 = vrot.slane %v1562_v7, 2  ;;  %v3949_v54 = vpop.eup %3948  ;;  %v5038_v31 = vpack.c.b16 %v1783_v49, %v1782_v24 }
 0x26c   : > { %v1491_v5 = vmul.f32 0.0625, %v1477_v61  ;;  %v1426_v45 = vadd.f32 %v4829_v29, %v1408_v10  ;;  %v5040_v58 = vmax.f32 %v1717_v60, 0.0  ;;  %v5042_v37 = vmax.f32 %v1718_v12, 0.0  ;;  %v5064_v61 = vld [vmem:[%s4481_s30 + $0x8] sm:$0xff] }
 0x26d   : > { %v1638_v32 = vmul.f32 %v3949_v54, %v5013_v2  ;;  %v1564_v6 = vadd.f32 %v1563_v22, %v1562_v7  ;;  %1793 = vmatpush.bf16.msrb.mxu0 %v5038_v31  ;;  %vm1644_vm13 = vweird.f32 %v3949_v54 }
 0x26e   : > { %v5046_v25 = vsub.f32 %v4972_v62, %v1491_v5  ;;  %v5051_v63 = vsub.f32 %v4975_v15, %v1491_v5  ;;  %v1478_v16 = vadd.f32 %v1426_v45, %v1425_v1  ;;  %v1750_v29 = vpack.c.bf16 %v5040_v58, %v5040_v58  ;;  %vm1645_vm15 = vmor %vm1643_vm14, %vm1644_vm13 }
 0x26f   : > { %v1751_v33 = vpack.c.bf16 %v5042_v37, %v5042_v37  ;;  %v1639_v23 = vmul.f32 %v3949_v54, %v1638_v32  ;;  %v1565_v59 = vrot.slane %v1564_v6, 1 }
 0x270   : > { %v1521_v62 = vmul.f32 %v5046_v25, %v5046_v25  ;;  %v1522_v15 = vmul.f32 %v5051_v63, %v5051_v63  ;;  %v1479_v13 = vrot.slane %v1478_v16, 4  ;;  %v1822_v43 = vunpack.c.l.b16 %v1750_v29 }
 0x271   : > { %1813 = vmatpush.bf16.msra.mxu0 %v5048_v14  ;;  %v1823_v55 = vunpack.c.l.b16 %v1751_v33  ;;  %v1640_v9 = vmul.f32 0.5, %v1639_v23  ;;  %v1566_v21 = vadd.f32 %v1565_v59, %v1564_v6 }
 0x272   : > { %v1567_v26 = vadd.f32 %v1522_v15, %v1521_v62  ;;  %v1480_v7 = vadd.f32 %v1479_v13, %v1478_v16  ;;  %3621 = vmatmul.msk.bf16.vlgmr.msrb.gmra.mxu0 %vm585_vm0, %v5064_v61 }
 0x273   : > { %v5068_v10 = vpack.c.b16 %v1823_v55, %v1822_v43  ;;  %v1641_v24 = vsub.f32 1.5, %v1640_v9  ;;  %v1586_v12 = vmul.f32 0.0625, %v1566_v21 }
 0x274   : > { %v1568_v49 = vrot.slane %v1567_v26, 4  ;;  %v1481_v60 = vrot.slane %v1480_v7, 2 }
 0x275   : > { %1833 = vmatpush.bf16.msrb.mxu0 %v5068_v10  ;;  %v1642_v22 = vmul.f32 %v3949_v54, %v1641_v24  ;;  %v1594_v5 = vadd.f32 1e-05, %v1586_v12 }
 0x276   : > { %v1569_v32 = vadd.f32 %v1568_v49, %v1567_v26  ;;  %v1482_v6 = vadd.f32 %v1481_v60, %v1480_v7 }
 0x277   : > { %v1646_v16 = vsel %vm1645_vm15, %v3949_v54, %v1642_v22  ;;  %3950 = vrsqrt.f32 %v1594_v5  ;;  %vm1653_vm2 = vweird.f32 %v1594_v5 }
 0x278   : > { %v1685_v29 = vmul.f32 %v1646_v16, %v4931_v51  ;;  %v1686_v33 = vmul.f32 %v1646_v16, %v4934_v47  ;;  %v1570_v23 = vrot.slane %v1569_v32, 2  ;;  %v1483_v59 = vrot.slane %v1482_v6, 1 }
 0x27a   : > { %v1702_v62 = vmul.f32 %v4919_v0, %v1685_v29  ;;  %v1703_v15 = vmul.f32 %v4919_v0, %v1686_v33  ;;  %v1571_v13 = vadd.f32 %v1570_v23, %v1569_v32  ;;  %v1484_v43 = vadd.f32 %v1483_v59, %v1482_v6  ;;  %v5095_v29 = vld [vmem:[%s4481_s30 + $0x10] sm:$0xff] }
 0x27c   : > { %v1720_v2 = vadd.f32 %v4928_v17, %v1703_v15  ;;  %v1572_v55 = vrot.slane %v1571_v13, 1  ;;  %v1492_v9 = vmul.f32 0.0625, %v1484_v43  ;;  %v1719_v21 = vadd.f32 %v4928_v17, %v1702_v62 }
 0x27d   : > { %v3951_v54 = vpop.eup %3950 }
 0x27e   : > { %v1648_v26 = vmul.f32 %v3951_v54, %v1594_v5  ;;  %v1573_v51 = vadd.f32 %v1572_v55, %v1571_v13  ;;  %v5078_v7 = vsub.f32 %v1425_v1, %v1492_v9  ;;  %v5080_v47 = vsub.f32 %v1426_v45, %v1492_v9 }
 0x27f   : > { %v5082_v24 = vmax.f32 %v1719_v21, 0.0  ;;  %v5084_v12 = vmax.f32 %v1720_v2, 0.0  ;;  %vm1654_vm1 = vweird.f32 %v3951_v54 }
 0x280   : > { %v1649_v49 = vmul.f32 %v3951_v54, %v1648_v26  ;;  %v1587_v60 = vmul.f32 0.0625, %v1573_v51  ;;  %v1523_v22 = vmul.f32 %v5078_v7, %v5078_v7  ;;  %v1524_v32 = vmul.f32 %v5080_v47, %v5080_v47  ;;  %vm1655_vm3 = vmor %vm1653_vm2, %vm1654_vm1 }
 0x281   : > { %v1752_v6 = vpack.c.bf16 %v5082_v24, %v5082_v24  ;;  %v1753_v1 = vpack.c.bf16 %v5084_v12, %v5084_v12 }
 0x282   : > { %v1650_v45 = vmul.f32 0.5, %v1649_v49  ;;  %v1595_v16 = vadd.f32 1e-05, %v1587_v60  ;;  %3622 = vmatmul.msk.bf16.vlgmr.msra.gmra.mxu0 %vm585_vm0, %v5095_v29  ;;  %v1574_v33 = vadd.f32 %v1524_v32, %v1523_v22 }
 0x283   : > { %v1842_v23 = vunpack.c.l.b16 %v1752_v6  ;;  %v1843_v59 = vunpack.c.l.b16 %v1753_v1 }
 0x284   : > { %v1651_v62 = vsub.f32 1.5, %v1650_v45  ;;  %3952 = vrsqrt.f32 %v1595_v16  ;;  %v1575_v15 = vrot.slane %v1574_v33, 4  ;;  %vm1663_vm5 = vweird.f32 %v1595_v16 }
 0x285   : > { %v5099_v13 = vpack.c.b16 %v1843_v59, %v1842_v23 }
 0x286   : > { %v1652_v43 = vmul.f32 %v3951_v54, %v1651_v62  ;;  %v1576_v2 = vadd.f32 %v1575_v15, %v1574_v33 }
 0x287   : > { %1853 = vmatpush.bf16.msra.mxu0 %v5099_v13 }
 0x288   : > { %v1656_v55 = vsel %vm1655_vm3, %v3951_v54, %v1652_v43  ;;  %v1577_v26 = vrot.slane %v1576_v2, 2  ;;  %v5117_v43 = vld [vmem:[%s4481_s30 + $0x18] sm:$0xff] }
 0x289   : > { %v1687_v9 = vmul.f32 %v1656_v55, %v4991_v27  ;;  %v1688_v21 = vmul.f32 %v1656_v55, %v4994_v8 }
 0x28a   : > { %v3953_v51 = vpop.eup %3952  ;;  %v1578_v32 = vadd.f32 %v1577_v26, %v1576_v2 }
 0x28b   : > { %v1704_v49 = vmul.f32 %v4919_v0, %v1687_v9  ;;  %v1705_v60 = vmul.f32 %v4919_v0, %v1688_v21  ;;  %v1658_v22 = vmul.f32 %v3953_v51, %v1595_v16  ;;  %vm1664_vm4 = vweird.f32 %v3953_v51 }
 0x28c   : > { %v1579_v45 = vrot.slane %v1578_v32, 1  ;;  %vm1665_vm6 = vmor %vm1663_vm5, %vm1664_vm4 }
 0x28d   : > { %v1722_v5 = vadd.f32 %v4928_v17, %v1705_v60  ;;  %v1659_v6 = vmul.f32 %v3953_v51, %v1658_v22  ;;  %v1721_v1 = vadd.f32 %v4928_v17, %v1704_v49 }
 0x28e   : > { %v1580_v8 = vadd.f32 %v1579_v45, %v1578_v32 }
 0x28f   : > { %v1660_v54 = vmul.f32 0.5, %v1659_v6  ;;  %v5108_v33 = vmax.f32 %v1721_v1, 0.0  ;;  %v5110_v27 = vmax.f32 %v1722_v5, 0.0  ;;  %v5130_v6 = vld [vmem:[%s4481_s30 + $0x28] sm:$0xff] }
 0x290   : > { %v1588_v15 = vmul.f32 0.0625, %v1580_v8 }
 0x291   : > { %v1661_v23 = vsub.f32 1.5, %v1660_v54  ;;  %v1754_v59 = vpack.c.bf16 %v5108_v33, %v5108_v33  ;;  %v1755_v62 = vpack.c.bf16 %v5110_v27, %v5110_v27 }
 0x292   : > { %3623 = vmatmul.msk.bf16.vlgmr.msrb.gmra.mxu0 %vm585_vm0, %v5117_v43  ;;  %v1596_v21 = vadd.f32 1e-05, %v1588_v15 }
 0x293   : > { %v1662_v2 = vmul.f32 %v3953_v51, %v1661_v23  ;;  %v1862_v55 = vunpack.c.l.b16 %v1754_v59  ;;  %v1863_v9 = vunpack.c.l.b16 %v1755_v62 }
 0x294   : > { %3954 = vrsqrt.f32 %v1596_v21  ;;  %vm1673_vm8 = vweird.f32 %v1596_v21 }
 0x295   : > { %v1666_v26 = vsel %vm1665_vm6, %v3953_v51, %v1662_v2  ;;  %v5121_v49 = vpack.c.b16 %v1863_v9, %v1862_v55  ;;  %v5144_v2 = vld [vmem:[%s4481_s30 + $0x20] sm:$0xff] }
 0x296   : > { %v1689_v60 = vmul.f32 %v1666_v26, %v5046_v25  ;;  %v1690_v22 = vmul.f32 %v1666_v26, %v5051_v63 }
 0x297   : > { %1873 = vmatpush.bf16.msra.mxu2 %v5121_v49 }
 0x298   : > { %v1706_v32 = vmul.f32 %v4919_v0, %v1689_v60  ;;  %v1707_v5 = vmul.f32 %v4919_v0, %v1690_v22  ;;  %v5152_v22 = vld [vmem:[%s4481_s30 + $0x30] sm:$0xff] }
 0x29a   : > { %v1724_v16 = vadd.f32 %v4928_v17, %v1707_v5  ;;  %3625 = vmatmul.msk.bf16.vlgmr.msra.gmra.mxu2 %vm585_vm0, %v5130_v6  ;;  %v1723_v51 = vadd.f32 %v4928_v17, %v1706_v32  ;;  %v3955_v25 = vpop.eup %3954 }
 0x29b   : > { %v1668_v45 = vmul.f32 %v3955_v25, %v1596_v21  ;;  %vm1674_vm7 = vweird.f32 %v3955_v25 }
 0x29c   : > { %v5135_v1 = vmax.f32 %v1724_v16, 0.0  ;;  %v5137_v63 = vmax.f32 %v1723_v51, 0.0  ;;  %vm1675_vm9 = vmor %vm1673_vm8, %vm1674_vm7 }
 0x29d   : > { %v1669_v23 = vmul.f32 %v3955_v25, %v1668_v45 }
 0x29e   : > { %v1756_v54 = vpack.c.bf16 %v5137_v63, %v5137_v63  ;;  %v1757_v8 = vpack.c.bf16 %v5135_v1, %v5135_v1 }
 0x29f   : > { %v1670_v15 = vmul.f32 0.5, %v1669_v23 }
 0x2a0   : > { %v1882_v59 = vunpack.c.l.b16 %v1756_v54  ;;  %v1883_v62 = vunpack.c.l.b16 %v1757_v8 }
 0x2a1   : > { %v1671_v9 = vsub.f32 1.5, %v1670_v15 }
 0x2a2   : > { %3624 = vmatmul.msk.bf16.vlgmr.msra.gmra.mxu0 %vm585_vm0, %v5144_v2  ;;  %v5148_v55 = vpack.c.b16 %v1883_v62, %v1882_v59 }
 0x2a3   : > { %v1672_v26 = vmul.f32 %v3955_v25, %v1671_v9 }
 0x2a4   : > { %1893 = vmatpush.bf16.msra.mxu3 %v5148_v55 }
 0x2a5   : > { %v1676_v60 = vsel %vm1675_vm9, %v3955_v25, %v1672_v26 }
 0x2a6   : > { %v1691_v32 = vmul.f32 %v1676_v60, %v5078_v7  ;;  %v1692_v5 = vmul.f32 %v1676_v60, %v5080_v47 }
 0x2a7   : > { %3626 = vmatmul.msk.bf16.vlgmr.msra.gmra.mxu3 %vm585_vm0, %v5152_v22 }
 0x2a8   : > { %v1708_v16 = vmul.f32 %v4919_v0, %v1691_v32  ;;  %v1709_v51 = vmul.f32 %v4919_v0, %v1692_v5  ;;  %v5174_v0 = vld [vmem:[%s4481_s30 + $0x38] sm:$0xff] }
 0x2aa   : > { %v1726_v45 = vadd.f32 %v4928_v17, %v1709_v51  ;;  %v1725_v21 = vadd.f32 %v4928_v17, %v1708_v16 }
 0x2ac   : > { %v5162_v54 = vmax.f32 %v1726_v45, 0.0  ;;  %v5164_v25 = vmax.f32 %v1725_v21, 0.0 }
 0x2ae   : > { %v1758_v8 = vpack.c.bf16 %v5164_v25, %v5164_v25  ;;  %v1759_v7 = vpack.c.bf16 %v5162_v54, %v5162_v54 }
 0x2b0   : > { %v1902_v23 = vunpack.c.l.b16 %v1758_v8  ;;  %v1903_v47 = vunpack.c.l.b16 %v1759_v7 }
 0x2b2   : > { %v5170_v59 = vpack.c.b16 %v1903_v47, %v1902_v23 }
 0x2b4   : > { %1913 = vmatpush.bf16.msrb.mxu0 %v5170_v59 }
 0x2b7   : > { %3627 = vmatmul.msk.bf16.vlgmr.msrb.gmra.mxu0 %vm585_vm0, %v5174_v0 }
 0x2de   : > { %v1775_v17 = vpop.f32.mrf.mxu0 }
 0x2df   : > { %v1920_v62 = vpack.c.bf16 %v1775_v17, %v1775_v17 }
 0x2e1   : > { %v1938_v26 = vunpack.c.l.b16 %v1920_v62 }
 0x2e6   : > { %v1777_v15 = vpop.f32.mrf.mxu0 }
 0x2e7   : > { %v1921_v9 = vpack.c.bf16 %v1777_v15, %v1777_v15 }
 0x2e9   : > { %v1939_v60 = vunpack.c.l.b16 %v1921_v9 }
 0x2eb   : > { %v5178_v32 = vpack.c.b16 %v1939_v60, %v1938_v26 }
 0x2ed   : > { %1949 = vmatpush.bf16.msrb.mxu1 %v5178_v32 }
 0x2ef   : > { %v1795_v5 = vpop.f32.mrf.mxu0 }
 0x2f0   : > { %3628 = vmatmul.msk.bf16.vlgmr.msrb.gmra.mxu1 %vm585_vm0, %v5006_v53  ;;  %v1922_v16 = vpack.c.bf16 %v1795_v5, %v1795_v5 }
 0x2f2   : > { %v1958_v21 = vunpack.c.l.b16 %v1922_v16 }
 0x2f7   : > { %v1797_v51 = vpop.f32.mrf.mxu0 }
 0x2f8   : > { %v1923_v45 = vpack.c.bf16 %v1797_v51, %v1797_v51 }
 0x2fa   : > { %v1959_v8 = vunpack.c.l.b16 %v1923_v45 }
 0x2fc   : > { %v5183_v7 = vpack.c.b16 %v1959_v8, %v1958_v21 }
 0x2fe   : > { %1969 = vmatpush.bf16.msrb.mxu2 %v5183_v7 }
 0x2ff   : > { %v1815_v23 = vpop.f32.mrf.mxu0 }
 0x300   : > { %v1924_v47 = vpack.c.bf16 %v1815_v23, %v1815_v23 }
 0x301   : > { %3629 = vmatmul.msk.bf16.vlgmr.msrb.gmra.mxu2 %vm585_vm0, %v5064_v61 }
 0x302   : > { %v1978_v15 = vunpack.c.l.b16 %v1924_v47 }
 0x307   : > { %v1817_v17 = vpop.f32.mrf.mxu0 }
 0x308   : > { %v1925_v62 = vpack.c.bf16 %v1817_v17, %v1817_v17 }
 0x30a   : > { %v1979_v9 = vunpack.c.l.b16 %v1925_v62 }
 0x30c   : > { %v5188_v26 = vpack.c.b16 %v1979_v9, %v1978_v15 }
 0x30e   : > { %1989 = vmatpush.bf16.msrb.mxu3 %v5188_v26 }
 0x30f   : > { %v1835_v53 = vpop.f32.mrf.mxu0 }
 0x310   : > { %v1926_v60 = vpack.c.bf16 %v1835_v53, %v1835_v53 }
 0x311   : > { %3630 = vmatmul.msk.bf16.vlgmr.msrb.gmra.mxu3 %vm585_vm0, %v5095_v29 }
 0x312   : > { %v1998_v51 = vunpack.c.l.b16 %v1926_v60 }
 0x317   : > { %v1837_v5 = vpop.f32.mrf.mxu0 }
 0x318   : > { %v1927_v16 = vpack.c.bf16 %v1837_v5, %v1837_v5  ;;  %v3797_v5 = vld [vmem:[#allocation8 + $0x78] sm:$0xff] }
 0x31a   : > { %v1999_v45 = vunpack.c.l.b16 %v1927_v16 }
 0x31c   : > { %v5193_v21 = vpack.c.b16 %v1999_v45, %v1998_v51 }
 0x31d   : > { %v1875_v61 = vpop.f32.mrf.mxu2 }
 0x31e   : > { %2009 = vmatpush.bf16.msra.mxu0 %v5193_v21  ;;  %v1930_v23 = vpack.c.bf16 %v1875_v61, %v1875_v61 }
 0x31f   : > { %v1855_v8 = vpop.f32.mrf.mxu0 }
 0x320   : > { %v2038_v17 = vunpack.c.l.b16 %v1930_v23  ;;  %v1928_v62 = vpack.c.bf16 %v1855_v8, %v1855_v8  ;;  %v3788_v8 = vld [vmem:[#allocation8 + $0x30] sm:$0xff]  ;;  %v3795_v23 = vld [vmem:[#allocation8 + $0x68] sm:$0xff] }
 0x321   : > { %3631 = vmatmul.msk.bf16.vlgmr.msra.gmra.mxu0 %vm585_vm0, %v5117_v43  ;;  %v3796_v43 = vld [vmem:[#allocation8 + $0x70] sm:$0xff] }
 0x322   : > { %v2018_v60 = vunpack.c.l.b16 %v1928_v62 }
 0x325   : > { %v1877_v47 = vpop.f32.mrf.mxu2 }
 0x326   : > { %v1931_v15 = vpack.c.bf16 %v1877_v47, %v1877_v47 }
 0x327   : > { %v1857_v29 = vpop.f32.mrf.mxu0 }
 0x328   : > { %v2039_v9 = vunpack.c.l.b16 %v1931_v15  ;;  %v1929_v53 = vpack.c.bf16 %v1857_v29, %v1857_v29  ;;  %v3787_v15 = vld [vmem:[#allocation8 + $0x28] sm:$0xff] }
 0x32a   : > { %v5198_v16 = vpack.c.b16 %v2039_v9, %v2038_v17  ;;  %v2019_v51 = vunpack.c.l.b16 %v1929_v53  ;;  %v1895_v45 = vpop.f32.mrf.mxu3  ;;  %v3794_v9 = vld [vmem:[#allocation8 + $0x60] sm:$0xff] }
 0x32b   : > { %v1932_v61 = vpack.c.bf16 %v1895_v45, %v1895_v45 }
 0x32c   : > { %v5200_v3 = vpack.c.b16 %v2019_v51, %v2018_v60  ;;  %2049 = vmatpush.bf16.msra.mxu2 %v5198_v16  ;;  %v3792_v51 = vld [vmem:[#allocation8 + $0x50] sm:$0xff] }
 0x32d   : > { %v2058_v17 = vunpack.c.l.b16 %v1932_v61 }
 0x32e   : > { %2029 = vmatpush.bf16.msra.mxu1 %v5200_v3 }
 0x32f   : > { %3633 = vmatmul.msk.bf16.vlgmr.msra.gmra.mxu2 %vm585_vm0, %v5130_v6  ;;  %v3786_v6 = vld [vmem:[#allocation8 + $0x20] sm:$0xff] }
 0x330   : > { %2433 = vmatpush.bf16.msrb.mxu2 %v3797_v5 }
 0x331   : > { %3632 = vmatmul.msk.bf16.vlgmr.msra.gmra.mxu1 %vm585_vm0, %v5144_v2  ;;  %v3785_v2 = vld [vmem:[#allocation8 + $0x18] sm:$0xff] }
 0x332   : > { %2384 = vmatpush.bf16.msrb.mxu1 %v3789_v18  ;;  %v1897_v47 = vpop.f32.mrf.mxu3  ;;  %v3793_v18 = vld [vmem:[#allocation8 + $0x58] sm:$0xff] }
 0x333   : > { %v1933_v62 = vpack.c.bf16 %v1897_v47, %v1897_v47  ;;  %v3804_v47 = vld [vmem:[#allocation8 + $0xb0] sm:$0xff] }
 0x334   : > { %2434 = vmatpush.bf16.msrb.mxu2 %v3796_v43  ;;  %v1915_v53 = vpop.f32.mrf.mxu0  ;;  %v3805_v43 = vld [vmem:[#allocation8 + $0xb8] sm:$0xff] }
 0x335   : > { %v2059_v29 = vunpack.c.l.b16 %v1933_v62  ;;  %v1934_v60 = vpack.c.bf16 %v1915_v53, %v1915_v53  ;;  %v3791_v62 = vld [vmem:[#allocation8 + $0x48] sm:$0xff] }
 0x336   : > { %2385 = vmatpush.bf16.msrb.mxu1 %v3788_v8  ;;  %v3803_v53 = vld [vmem:[#allocation8 + $0xa8] sm:$0xff] }
 0x337   : > { %v5208_v5 = vpack.c.b16 %v2059_v29, %v2058_v17  ;;  %v2078_v61 = vunpack.c.l.b16 %v1934_v60  ;;  %v3783_v29 = vld [vmem:[#allocation8 + $0x8] sm:$0xff]  ;;  %v3800_v60 = vld [vmem:[#allocation8 + $0x90] sm:$0xff] }
 0x338   : > { %2435 = vmatpush.bf16.msrb.mxu2 %v3795_v23  ;;  %v3784_v23 = vld [vmem:[#allocation8 + $0x10] sm:$0xff] }
 0x339   : > { %2069 = vmatpush.bf16.msra.mxu3 %v5208_v5 }
 0x33a   : > { %2386 = vmatpush.bf16.msrb.mxu1 %v3787_v15 }
 0x33c   : > { %2436 = vmatpush.bf16.msrb.mxu2 %v3794_v9  ;;  %3634 = vmatmul.msk.bf16.vlgmr.msra.gmra.mxu3 %vm585_vm0, %v5152_v22  ;;  %v1917_v45 = vpop.f32.mrf.mxu0  ;;  %v3790_v22 = vld [vmem:[#allocation8 + $0x40] sm:$0xff] }
 0x33d   : > { %v1935_v8 = vpack.c.bf16 %v1917_v45, %v1917_v45  ;;  %2482 = vmatpush.bf16.msrb.mxu3 %v3805_v43  ;;  %v3782_v9 = vld [vmem:[#allocation8] sm:$0xff] }
 0x33e   : > { %2387 = vmatpush.bf16.msrb.mxu1 %v3786_v6  ;;  %v3802_v6 = vld [vmem:[#allocation8 + $0xa0] sm:$0xff] }
 0x33f   : > { %v2079_v17 = vunpack.c.l.b16 %v1935_v8 }
 0x340   : > { %2437 = vmatpush.bf16.msrb.mxu2 %v3793_v18  ;;  %v3801_v18 = vld [vmem:[#allocation8 + $0x98] sm:$0xff] }
 0x341   : > { %v5213_v15 = vpack.c.b16 %v2079_v17, %v2078_v61  ;;  %2483 = vmatpush.bf16.msrb.mxu3 %v3804_v47 }
 0x342   : > { %2388 = vmatpush.bf16.msrb.mxu1 %v3785_v2  ;;  %v3799_v2 = vld [vmem:[#allocation8 + $0x88] sm:$0xff] }
 0x343   : > { %2089 = vmatpush.bf16.msrb.mxu0 %v5213_v15 }
 0x344   : > { %2438 = vmatpush.bf16.msrb.mxu2 %v3792_v51 }
 0x345   : > { %2484 = vmatpush.bf16.msrb.mxu3 %v3803_v53 }
 0x346   : > { %2389 = vmatpush.bf16.msrb.mxu1 %v3784_v23  ;;  %3635 = vmatmul.msk.bf16.vlgmr.msrb.gmra.mxu0 %vm585_vm0, %v5174_v0  ;;  %v3798_v0 = vld [vmem:[#allocation8 + $0x80] sm:$0xff] }
 0x348   : > { %2439 = vmatpush.bf16.msrb.mxu2 %v3791_v62 }
 0x349   : > { %2485 = vmatpush.bf16.msrb.mxu3 %v3802_v6 }
 0x34a   : > { %2390 = vmatpush.bf16.msrb.mxu1 %v3783_v29 }
 0x34c   : > { %2440 = vmatpush.bf16.msrb.mxu2 %v3790_v22 }
 0x34d   : > { %2486 = vmatpush.bf16.msrb.mxu3 %v3801_v18 }
 0x34e   : > { %2391 = vmatpush.bf16.msrb.mxu1 %v3782_v9 }
 0x34f   : > { %2441 = vmatmul.bf16.vlgmr.msrb.gmra.mxu2 %v5178_v32 }
 0x351   : > { %2392 = vmatmul.bf16.vlgmr.msrb.gmra.mxu1 %v4983_v19  ;;  %2487 = vmatpush.bf16.msrb.mxu3 %v3800_v60 }
 0x355   : > { %2488 = vmatpush.bf16.msrb.mxu3 %v3799_v2 }
 0x359   : > { %2489 = vmatpush.bf16.msrb.mxu3 %v3798_v0 }
 0x35f   : > { %2446 = vmatmul.bf16.gmra.mxu2 %v5183_v7 }
 0x361   : > { %2397 = vmatmul.bf16.gmra.mxu1 %v5038_v31 }
 0x36d   : > { %v1951_v32 = vpop.f32.mrf.mxu1 }
 0x36e   : > { %v2096_v19 = vmul.f32 2.0, %v1951_v32 }
 0x36f   : > { %2451 = vmatmul.bf16.gmra.mxu2 %v5188_v26 }
 0x370   : > { %v2112_v51 = vsub.f32 %v2096_v19, %v4962_v39 }
 0x371   : > { %2402 = vmatmul.bf16.gmra.mxu1 %v5048_v14 }
 0x372   : > { %v2128_v61 = vpack.c.bf16 %v2112_v51, %v2112_v51 }
 0x374   : > { %v2160_v31 = vunpack.c.l.b16 %v2128_v61 }
 0x375   : > { %v1953_v45 = vpop.f32.mrf.mxu1 }
 0x376   : > { %v2097_v43 = vmul.f32 2.0, %v1953_v45 }
 0x378   : > { %v2113_v7 = vsub.f32 %v2097_v43, %v4956_v42 }
 0x37a   : > { %v2129_v8 = vpack.c.bf16 %v2113_v7, %v2113_v7 }
 0x37c   : > { %v2161_v23 = vunpack.c.l.b16 %v2129_v8 }
 0x37e   : > { %v2176_v47 = vpack.c.b16 %v2161_v23, %v2160_v31 }
 0x37f   : > { %2456 = vmatmul.bf16.gmra.mxu2 %v5193_v21 }
 0x380   : > { %2490 = vmatmul.bf16.vlgmr.msrb.gmra.mxu3 %v2176_v47 }
 0x381   : > { %2407 = vmatmul.bf16.gmra.mxu1 %v5068_v10 }
 0x384   : > { %v1971_v26 = vpop.f32.mrf.mxu2 }
 0x385   : > { %v2098_v17 = vmul.f32 2.0, %v1971_v26 }
 0x387   : > { %v2114_v14 = vsub.f32 %v2098_v17, %v5021_v30 }
 0x389   : > { %v2130_v42 = vpack.c.bf16 %v2114_v14, %v2114_v14 }
 0x38b   : > { %v2162_v22 = vunpack.c.l.b16 %v2130_v42 }
 0x38c   : > { %v1973_v39 = vpop.f32.mrf.mxu2 }
 0x38d   : > { %v2099_v62 = vmul.f32 2.0, %v1973_v39 }
 0x38f   : > { %2461 = vmatmul.bf16.gmra.mxu2 %v5200_v3  ;;  %v2115_v29 = vsub.f32 %v2099_v62, %v5019_v4 }
 0x391   : > { %2412 = vmatmul.bf16.gmra.mxu1 %v5099_v13  ;;  %v2131_v21 = vpack.c.bf16 %v2115_v29, %v2115_v29 }
 0x393   : > { %v2163_v9 = vunpack.c.l.b16 %v2131_v21 }
 0x394   : > { %v1991_v53 = vpop.f32.mrf.mxu3 }
 0x395   : > { %v2177_v10 = vpack.c.b16 %v2163_v9, %v2162_v22  ;;  %v2100_v6 = vmul.f32 2.0, %v1991_v53 }
 0x397   : > { %2495 = vmatmul.bf16.gmra.mxu3 %v2177_v10  ;;  %v2116_v18 = vsub.f32 %v2100_v6, %v4985_v44 }
 0x399   : > { %v2132_v13 = vpack.c.bf16 %v2116_v18, %v2116_v18 }
 0x39b   : > { %v2164_v0 = vunpack.c.l.b16 %v2132_v13 }
 0x39c   : > { %v1993_v30 = vpop.f32.mrf.mxu3 }
 0x39d   : > { %v2101_v3 = vmul.f32 2.0, %v1993_v30 }
 0x39e   : > { %v2011_v60 = vpop.f32.mrf.mxu0 }
 0x39f   : > { %2466 = vmatmul.bf16.gmra.mxu2 %v5198_v16  ;;  %v2117_v2 = vsub.f32 %v2101_v3, %v4996_v48  ;;  %v2102_v45 = vmul.f32 2.0, %v2011_v60 }
 0x3a1   : > { %2417 = vmatmul.bf16.gmra.mxu1 %v5121_v49  ;;  %v2133_v4 = vpack.c.bf16 %v2117_v2, %v2117_v2  ;;  %v2118_v16 = vsub.f32 %v2102_v45, %v5040_v58 }
 0x3a3   : > { %v2165_v32 = vunpack.c.l.b16 %v2133_v4  ;;  %v2134_v49 = vpack.c.bf16 %v2118_v16, %v2118_v16 }
 0x3a5   : > { %v2178_v19 = vpack.c.b16 %v2165_v32, %v2164_v0  ;;  %v2166_v8 = vunpack.c.l.b16 %v2134_v49 }
 0x3a6   : > { %v2013_v51 = vpop.f32.mrf.mxu0 }
 0x3a7   : > { %v2103_v43 = vmul.f32 2.0, %v2013_v51  ;;  %2500 = vmatmul.bf16.gmra.mxu3 %v2178_v19 }
 0x3a9   : > { %v2119_v44 = vsub.f32 %v2103_v43, %v5042_v37 }
 0x3ab   : > { %v2135_v61 = vpack.c.bf16 %v2119_v44, %v2119_v44 }
 0x3ad   : > { %v2167_v48 = vunpack.c.l.b16 %v2135_v61 }
 0x3ae   : > { %v2031_v7 = vpop.f32.mrf.mxu1 }
 0x3af   : > { %2471 = vmatmul.bf16.gmra.mxu2 %v5208_v5  ;;  %v2179_v31 = vpack.c.b16 %v2167_v48, %v2166_v8  ;;  %v2104_v47 = vmul.f32 2.0, %v2031_v7 }
 0x3b1   : > { %2422 = vmatmul.bf16.gmra.mxu1 %v5148_v55  ;;  %v2120_v37 = vsub.f32 %v2104_v47, %v5082_v24 }
 0x3b2   : > { %v2051_v17 = vpop.f32.mrf.mxu2 }
 0x3b3   : > { %v2136_v5 = vpack.c.bf16 %v2120_v37, %v2120_v37  ;;  %v2106_v21 = vmul.f32 2.0, %v2051_v17 }
 0x3b5   : > { %v2168_v62 = vunpack.c.l.b16 %v2136_v5 }
 0x3b6   : > { %v2033_v23 = vpop.f32.mrf.mxu1 }
 0x3b7   : > { %v2105_v26 = vmul.f32 2.0, %v2033_v23  ;;  %2505 = vmatmul.bf16.gmra.mxu3 %v2179_v31 }
 0x3b9   : > { %v2121_v14 = vsub.f32 %v2105_v26, %v5084_v12  ;;  %v2122_v12 = vsub.f32 %v2106_v21, %v5108_v33 }
 0x3ba   : > { %v2053_v39 = vpop.f32.mrf.mxu2 }
 0x3bb   : > { %v2137_v58 = vpack.c.bf16 %v2121_v14, %v2121_v14  ;;  %v2107_v42 = vmul.f32 2.0, %v2053_v39  ;;  %v2138_v24 = vpack.c.bf16 %v2122_v12, %v2122_v12 }
 0x3bd   : > { %v2169_v55 = vunpack.c.l.b16 %v2137_v58  ;;  %v2123_v9 = vsub.f32 %v2107_v42, %v5110_v27  ;;  %v2170_v6 = vunpack.c.l.b16 %v2138_v24 }
 0x3bf   : > { %2476 = vmatmul.bf16.gmra.mxu2 %v5213_v15  ;;  %v2180_v29 = vpack.c.b16 %v2169_v55, %v2168_v62  ;;  %v2071_v22 = vpop.f32.mrf.mxu3  ;;  %v2139_v53 = vpack.c.bf16 %v2123_v9, %v2123_v9 }
 0x3c0   : > { %v2108_v30 = vmul.f32 2.0, %v2071_v22 }
 0x3c1   : > { %2427 = vmatmul.bf16.gmra.mxu1 %v5170_v59  ;;  %v2171_v10 = vunpack.c.l.b16 %v2139_v53 }
 0x3c2   : > { %v2124_v13 = vsub.f32 %v2108_v30, %v5137_v63 }
 0x3c3   : > { %v2181_v59 = vpack.c.b16 %v2171_v10, %v2170_v6  ;;  %v2091_v3 = vpop.f32.mrf.mxu0 }
 0x3c4   : > { %v2140_v4 = vpack.c.bf16 %v2124_v13, %v2124_v13  ;;  %v2110_v51 = vmul.f32 2.0, %v2091_v3 }
 0x3c6   : > { %v2172_v32 = vunpack.c.l.b16 %v2140_v4  ;;  %v2126_v16 = vsub.f32 %v2110_v51, %v5164_v25 }
 0x3c7   : > { %2510 = vmatmul.bf16.gmra.mxu3 %v2180_v29  ;;  %v2073_v15 = vpop.f32.mrf.mxu3 }
 0x3c8   : > { %v2109_v18 = vmul.f32 2.0, %v2073_v15  ;;  %v2142_v7 = vpack.c.bf16 %v2126_v16, %v2126_v16 }
 0x3ca   : > { %v2125_v60 = vsub.f32 %v2109_v18, %v5135_v1  ;;  %v2174_v63 = vunpack.c.l.b16 %v2142_v7 }
 0x3cb   : > { %v2093_v27 = vpop.f32.mrf.mxu0 }
 0x3cc   : > { %v2141_v2 = vpack.c.bf16 %v2125_v60, %v2125_v60  ;;  %v2111_v33 = vmul.f32 2.0, %v2093_v27 }
 0x3ce   : > { %v2173_v0 = vunpack.c.l.b16 %v2141_v2  ;;  %v2127_v43 = vsub.f32 %v2111_v33, %v5162_v54  ;;  %v2393_v44 = vpop.f32.mrf.mxu1  ;;  %v5250_v54 = vld [vmem:[#allocation11 + $0x3] ss:$0 sm:$0xff] }
 0x3d0   : > { %v2182_v19 = vpack.c.b16 %v2173_v0, %v2172_v32  ;;  %v2143_v61 = vpack.c.bf16 %v2127_v43, %v2127_v43 }
 0x3d2   : > { %v2442_v45 = vpop.f32.mrf.mxu2  ;;  %v2175_v1 = vunpack.c.l.b16 %v2143_v61 }
 0x3d3   : > { %v2443_v14 = vadd.f32 %v2442_v45, %v2393_v44 }
 0x3d4   : > { %v2183_v8 = vpack.c.b16 %v2175_v1, %v2174_v63 }
 0x3d6   : > { %v2395_v48 = vpop.f32.mrf.mxu1 }
 0x3d7   : > { %2515 = vmatmul.bf16.gmra.mxu3 %v2181_v59 }
 0x3da   : > { %v2444_v49 = vpop.f32.mrf.mxu2 }
 0x3db   : > { %v2445_v37 = vadd.f32 %v2444_v49, %v2395_v48 }
 0x3de   : > { %v2398_v23 = vpop.f32.mrf.mxu1 }
 0x3e2   : > { %v2447_v31 = vpop.f32.mrf.mxu2 }
 0x3e3   : > { %v2448_v18 = vadd.f32 %v2447_v31, %v2398_v23 }
 0x3e6   : > { %v2400_v17 = vpop.f32.mrf.mxu1 }
 0x3e7   : > { %2520 = vmatmul.bf16.gmra.mxu3 %v2182_v19 }
 0x3ea   : > { %v2449_v26 = vpop.f32.mrf.mxu2 }
 0x3eb   : > { %v2450_v30 = vadd.f32 %v2449_v26, %v2400_v17 }
 0x3ee   : > { %v2403_v29 = vpop.f32.mrf.mxu1 }
 0x3f2   : > { %v2452_v62 = vpop.f32.mrf.mxu2 }
 0x3f6   : > { %v2405_v15 = vpop.f32.mrf.mxu1 }
 0x3f7   : > { %2525 = vmatmul.bf16.gmra.mxu3 %v2183_v8 }
 0x3fa   : > { %v2454_v53 = vpop.f32.mrf.mxu2 }
 0x3fb   : > { %v2455_v17 = vadd.f32 %v2454_v53, %v2405_v15 }
 0x3fe   : > { %v2408_v45 = vpop.f32.mrf.mxu1 }
 0x402   : > { %v2457_v32 = vpop.f32.mrf.mxu2 }
 0x403   : > { %v2491_v47 = vpop.f32.mrf.mxu3 }
 0x404   : > { %v2492_v58 = vadd.f32 %v2491_v47, %v2443_v14  ;;  %v2453_v47 = vadd.f32 %v2452_v62, %v2403_v29 }
 0x406   : > { %v2532_v55 = vadd.f32 %v5250_v54, %v2492_v58  ;;  %v2410_v26 = vpop.f32.mrf.mxu1 }
 0x40a   : > { %v2459_v8 = vpop.f32.mrf.mxu2 }
 0x40b   : > { %v2493_v5 = vpop.f32.mrf.mxu3 }
 0x40c   : > { %v2494_v25 = vadd.f32 %v2493_v5, %v2445_v37 }
 0x40e   : > { %v2533_v39 = vadd.f32 %v5250_v54, %v2494_v25  ;;  %v2413_v15 = vpop.f32.mrf.mxu1 }
 0x410   : > { %v2550_v42 = vadd.f32 %v2533_v39, %v2532_v55 }
 0x412   : > { %v2551_v21 = vrot.slane %v2550_v42, 4  ;;  %v5270_v62 = vpop.f32.mrf.mxu2 }
 0x414   : > { %v2552_v22 = vadd.f32 %v2551_v21, %v2550_v42 }
 0x416   : > { %v2553_v9 = vrot.slane %v2552_v22, 2 }
 0x418   : > { %v2554_v12 = vadd.f32 %v2553_v9, %v2552_v22 }
 0x41a   : > { %v2496_v24 = vpop.f32.mrf.mxu3  ;;  %v2555_v10 = vrot.slane %v2554_v12, 1 }
 0x41b   : > { %v2497_v13 = vadd.f32 %v2496_v24, %v2448_v18 }
 0x41c   : > { %v2556_v6 = vadd.f32 %v2555_v10, %v2554_v12 }
 0x41d   : > { %v2534_v19 = vadd.f32 %v5250_v54, %v2497_v13 }
 0x41e   : > { %v2606_v59 = vmul.f32 0.0625, %v2556_v6 }
 0x420   : > { %v5254_v3 = vsub.f32 %v2532_v55, %v2606_v59  ;;  %v5256_v60 = vsub.f32 %v2533_v39, %v2606_v59 }
 0x422   : > { %v2498_v2 = vpop.f32.mrf.mxu3  ;;  %v2630_v4 = vmul.f32 %v5254_v3, %v5254_v3  ;;  %v2631_v0 = vmul.f32 %v5256_v60, %v5256_v60 }
 0x423   : > { %v2499_v27 = vadd.f32 %v2498_v2, %v2450_v30 }
 0x424   : > { %v2646_v33 = vadd.f32 %v2631_v0, %v2630_v4 }
 0x425   : > { %v2535_v51 = vadd.f32 %v5250_v54, %v2499_v27  ;;  %v2458_v27 = vadd.f32 %v2457_v32, %v2408_v45 }
 0x426   : > { %v2647_v43 = vrot.slane %v2646_v33, 4 }
 0x427   : > { %v2557_v44 = vadd.f32 %v2535_v51, %v2534_v19 }
 0x428   : > { %v2648_v16 = vadd.f32 %v2647_v43, %v2646_v33  ;;  %v2460_v43 = vadd.f32 %v2459_v8, %v2410_v26 }
 0x429   : > { %v2558_v61 = vrot.slane %v2557_v44, 4 }
 0x42a   : > { %v2501_v7 = vpop.f32.mrf.mxu3  ;;  %v2649_v1 = vrot.slane %v2648_v16, 2 }
 0x42b   : > { %v2559_v49 = vadd.f32 %v2558_v61, %v2557_v44  ;;  %v2502_v58 = vadd.f32 %v2501_v7, %v2453_v47  ;;  %v2464_v7 = vpop.f32.mrf.mxu2 }
 0x42c   : > { %v2650_v63 = vadd.f32 %v2649_v1, %v2648_v16 }
 0x42d   : > { %v2560_v48 = vrot.slane %v2559_v49, 2  ;;  %v2536_v9 = vadd.f32 %v5250_v54, %v2502_v58  ;;  %v5278_v58 = vld [vmem:[#allocation11 + $0x4] ss:$0 sm:$0xff] }
 0x42e   : > { %v2651_v31 = vrot.slane %v2650_v63, 1 }
 0x42f   : > { %v2561_v23 = vadd.f32 %v2560_v48, %v2559_v49 }
 0x430   : > { %v2652_v14 = vadd.f32 %v2651_v31, %v2650_v63 }
 0x431   : > { %v2562_v37 = vrot.slane %v2561_v23, 1 }
 0x432   : > { %v2503_v5 = vpop.f32.mrf.mxu3  ;;  %v2702_v25 = vmul.f32 0.0625, %v2652_v14 }
 0x433   : > { %v2563_v55 = vadd.f32 %v2562_v37, %v2561_v23  ;;  %v2504_v39 = vadd.f32 %v2503_v5, %v2455_v17  ;;  %v2415_v23 = vpop.f32.mrf.mxu1 }
 0x434   : > { %v2710_v42 = vadd.f32 1e-05, %v2702_v25 }
 0x435   : > { %v2607_v21 = vmul.f32 0.0625, %v2563_v55  ;;  %v2537_v22 = vadd.f32 %v5250_v54, %v2504_v39 }
 0x436   : > { %3956 = vrsqrt.f32 %v2710_v42  ;;  %vm2724_vm10 = vweird.f32 %v2710_v42 }
 0x437   : > { %v5266_v12 = vsub.f32 %v2534_v19, %v2607_v21  ;;  %v5268_v24 = vsub.f32 %v2535_v51, %v2607_v21  ;;  %v2564_v29 = vadd.f32 %v2537_v22, %v2536_v9 }
 0x439   : > { %v2632_v53 = vmul.f32 %v5266_v12, %v5266_v12  ;;  %v2633_v10 = vmul.f32 %v5268_v24, %v5268_v24  ;;  %v2565_v6 = vrot.slane %v2564_v29, 4 }
 0x43a   : > { %v2506_v18 = vpop.f32.mrf.mxu3 }
 0x43b   : > { %v2653_v59 = vadd.f32 %v2633_v10, %v2632_v53  ;;  %v2566_v30 = vadd.f32 %v2565_v6, %v2564_v29  ;;  %v2507_v16 = vadd.f32 %v2506_v18, %v2458_v27  ;;  %v5285_v53 = vld [vmem:[#allocation11 + $0x8] ss:$0 sm:$0xff]  ;;  %v5291_v18 = vld [vmem:[#allocation11 + $0x5] ss:$0 sm:$0xff] }
 0x43c   : > { %v3957_v13 = vpop.eup %3956 }
 0x43d   : > { %v2654_v2 = vrot.slane %v2653_v59, 4  ;;  %v2719_v4 = vmul.f32 %v3957_v13, %v2710_v42  ;;  %v2567_v0 = vrot.slane %v2566_v30, 2  ;;  %vm2725_vm0 = vweird.f32 %v3957_v13 }
 0x43e   : > { %v2538_v14 = vadd.f32 %v5250_v54, %v2507_v16  ;;  %vm2726_vm11 = vmor %vm2724_vm10, %vm2725_vm0 }
 0x43f   : > { %v2655_v33 = vadd.f32 %v2654_v2, %v2653_v59  ;;  %v2720_v19 = vmul.f32 %v3957_v13, %v2719_v4  ;;  %v2568_v51 = vadd.f32 %v2567_v0, %v2566_v30  ;;  %v541_v4 = vadd.f32 %v5285_v53, %v4755_v40  ;;  %v2418_v0 = vpop.f32.mrf.mxu1 }
 0x441   : > { %v2656_v44 = vrot.slane %v2655_v33, 2  ;;  %v2721_v61 = vmul.f32 0.5, %v2720_v19  ;;  %v2569_v1 = vrot.slane %v2568_v51, 1  ;;  %v2463_v19 = vadd.f32 %v5270_v62, %v2413_v15 }
 0x442   : > { %v2508_v49 = vpop.f32.mrf.mxu3 }
 0x443   : > { %v2657_v63 = vadd.f32 %v2656_v44, %v2655_v33  ;;  %v2509_v48 = vadd.f32 %v2508_v49, %v2460_v43  ;;  %v2722_v31 = vsub.f32 1.5, %v2721_v61  ;;  %v2570_v47 = vadd.f32 %v2569_v1, %v2568_v51 }
 0x445   : > { %v2658_v17 = vrot.slane %v2657_v63, 1  ;;  %v2539_v32 = vadd.f32 %v5250_v54, %v2509_v48  ;;  %v2723_v45 = vmul.f32 %v3957_v13, %v2722_v31  ;;  %v2608_v8 = vmul.f32 0.0625, %v2570_v47 }
 0x447   : > { %v2659_v26 = vadd.f32 %v2658_v17, %v2657_v63  ;;  %v2571_v37 = vadd.f32 %v2539_v32, %v2538_v14  ;;  %v2727_v5 = vsel %vm2726_vm11, %v3957_v13, %v2723_v45  ;;  %v5280_v25 = vsub.f32 %v2536_v9, %v2608_v8  ;;  %v2467_v13 = vpop.f32.mrf.mxu2 }
 0x448   : > { %v5282_v55 = vsub.f32 %v2537_v22, %v2608_v8  ;;  %v2798_v29 = vmul.f32 %v2727_v5, %v5254_v3  ;;  %v2799_v30 = vmul.f32 %v2727_v5, %v5256_v60  ;;  %v2465_v60 = vadd.f32 %v2464_v7, %v2415_v23 }
 0x449   : > { %v2703_v39 = vmul.f32 0.0625, %v2659_v26  ;;  %v2572_v21 = vrot.slane %v2571_v37, 4  ;;  %v2634_v42 = vmul.f32 %v5280_v25, %v5280_v25  ;;  %v542_v7 = vadd.f32 %v5285_v53, %v4763_v28 }
 0x44a   : > { %v2635_v10 = vmul.f32 %v5282_v55, %v5282_v55  ;;  %v2511_v6 = vpop.f32.mrf.mxu3  ;;  %v2815_v22 = vmul.f32 %v5278_v58, %v2798_v29  ;;  %v2816_v16 = vmul.f32 %v5278_v58, %v2799_v30 }
 0x44b   : > { %v2711_v59 = vadd.f32 1e-05, %v2703_v39  ;;  %v2573_v9 = vadd.f32 %v2572_v21, %v2571_v37  ;;  %v2512_v1 = vadd.f32 %v2511_v6, %v2463_v19 }
 0x44c   : > { %v2660_v2 = vadd.f32 %v2635_v10, %v2634_v42  ;;  %v2832_v33 = vadd.f32 %v5291_v18, %v2815_v22  ;;  %v2833_v62 = vadd.f32 %v5291_v18, %v2816_v16  ;;  %v2420_v42 = vpop.f32.mrf.mxu1 }
 0x44d   : > { %3958 = vrsqrt.f32 %v2711_v59  ;;  %v2574_v3 = vrot.slane %v2573_v9, 2  ;;  %v2540_v45 = vadd.f32 %v5250_v54, %v2512_v1  ;;  %vm2734_vm13 = vweird.f32 %v2711_v59 }
 0x44e   : > { %v2661_v27 = vrot.slane %v2660_v2, 4  ;;  %v5299_v44 = vadd.f32 %v2832_v33, %v541_v4  ;;  %v5312_v6 = vadd.f32 %v2833_v62, %v542_v7 }
 0x44f   : > { %v2575_v51 = vadd.f32 %v2574_v3, %v2573_v9  ;;  %v2469_v26 = vpop.f32.mrf.mxu2 }
 0x450   : > { %v2662_v43 = vadd.f32 %v2661_v27, %v2660_v2  ;;  %2865 = vadd.xlane.f32.xlu0 %v5299_v44 }
 0x451   : > { %v2576_v61 = vrot.slane %v2575_v51, 1 }
 0x452   : > { %v2663_v49 = vrot.slane %v2662_v43, 2  ;;  %v2513_v63 = vpop.f32.mrf.mxu3 }
 0x453   : > { %v3959_v40 = vpop.eup %3958  ;;  %v2577_v48 = vadd.f32 %v2576_v61, %v2575_v51  ;;  %v2514_v31 = vadd.f32 %v2513_v63, %v2465_v60  ;;  %v2468_v61 = vadd.f32 %v2467_v13, %v2418_v0 }
 0x454   : > { %v2729_v47 = vmul.f32 %v3959_v40, %v2711_v59  ;;  %v2664_v17 = vadd.f32 %v2663_v49, %v2662_v43  ;;  %vm2735_vm12 = vweird.f32 %v3959_v40  ;;  %v2470_v49 = vadd.f32 %v2469_v26, %v2420_v42  ;;  %v2423_v59 = vpop.f32.mrf.mxu1 }
 0x455   : > { %v2609_v15 = vmul.f32 0.0625, %v2577_v48  ;;  %v2541_v8 = vadd.f32 %v5250_v54, %v2514_v31  ;;  %vm2736_vm14 = vmor %vm2734_vm13, %vm2735_vm12 }
 0x456   : > { %v2730_v23 = vmul.f32 %v3959_v40, %v2729_v47  ;;  %v2665_v37 = vrot.slane %v2664_v17, 1 }
 0x457   : > { %v5308_v5 = vsub.f32 %v2538_v14, %v2609_v15  ;;  %v5310_v39 = vsub.f32 %v2539_v32, %v2609_v15  ;;  %v2578_v21 = vadd.f32 %v2541_v8, %v2540_v45  ;;  %v2472_v1 = vpop.f32.mrf.mxu2 }
 0x458   : > { %v2731_v29 = vmul.f32 0.5, %v2730_v23  ;;  %v2666_v10 = vadd.f32 %v2665_v37, %v2664_v17  ;;  %2867 = vadd.xlane.f32.xlu0 %v5312_v6 }
 0x459   : > { %v2636_v9 = vmul.f32 %v5308_v5, %v5308_v5  ;;  %v2637_v22 = vmul.f32 %v5310_v39, %v5310_v39  ;;  %v2579_v28 = vrot.slane %v2578_v21, 4 }
 0x45a   : > { %v2732_v30 = vsub.f32 1.5, %v2731_v29  ;;  %v2704_v2 = vmul.f32 0.0625, %v2666_v10  ;;  %v2516_v14 = vpop.f32.mrf.mxu3 }
 0x45b   : > { %v2667_v32 = vadd.f32 %v2637_v22, %v2636_v9  ;;  %v2580_v3 = vadd.f32 %v2579_v28, %v2578_v21  ;;  %v2517_v17 = vadd.f32 %v2516_v14, %v2468_v61 }
 0x45c   : > { %v2733_v4 = vmul.f32 %v3959_v40, %v2732_v30  ;;  %v2712_v27 = vadd.f32 1e-05, %v2704_v2 }
 0x45d   : > { %v2668_v33 = vrot.slane %v2667_v32, 4  ;;  %v2581_v19 = vrot.slane %v2580_v3, 2  ;;  %v5326_v21 = vadd.f32 %v5250_v54, %v2517_v17 }
 0x45e   : > { %v2737_v51 = vsel %vm2736_vm14, %v3959_v40, %v2733_v4  ;;  %3960 = vrsqrt.f32 %v2712_v27  ;;  %vm2744_vm1 = vweird.f32 %v2712_v27 }
 0x45f   : > { %v2669_v43 = vadd.f32 %v2668_v33, %v2667_v32  ;;  %v2582_v16 = vadd.f32 %v2581_v19, %v2580_v3  ;;  %v2800_v60 = vmul.f32 %v2737_v51, %v5266_v12  ;;  %v2801_v47 = vmul.f32 %v2737_v51, %v5268_v24  ;;  %v2474_v3 = vpop.f32.mrf.mxu2 }
 0x460   : > { %v543_v12 = vadd.f32 %v5285_v53, %v4772_v34 }
 0x461   : > { %v2670_v63 = vrot.slane %v2669_v43, 2  ;;  %v2583_v48 = vrot.slane %v2582_v16, 1  ;;  %v2817_v31 = vmul.f32 %v5278_v58, %v2800_v60  ;;  %v2818_v42 = vmul.f32 %v5278_v58, %v2801_v47 }
 0x462   : > { %v2518_v62 = vpop.f32.mrf.mxu3 }
 0x463   : > { %v2671_v15 = vadd.f32 %v2670_v63, %v2669_v43  ;;  %v2584_v7 = vadd.f32 %v2583_v48, %v2582_v16  ;;  %v2519_v40 = vadd.f32 %v2518_v62, %v2470_v49  ;;  %v2834_v23 = vadd.f32 %v5291_v18, %v2817_v31  ;;  %v2425_v16 = vpop.f32.mrf.mxu1 }
 0x464   : > { %v3961_v37 = vpop.eup %3960  ;;  %v544_v43 = vadd.f32 %v5285_v53, %v4776_v35  ;;  %v2473_v31 = vadd.f32 %v2472_v1, %v2423_v59  ;;  %v545_v1 = vadd.f32 %v5285_v53, %v4779_v38 }
 0x465   : > { %v2739_v13 = vmul.f32 %v3961_v37, %v2712_v27  ;;  %v2672_v0 = vrot.slane %v2671_v15, 1  ;;  %v2610_v26 = vmul.f32 0.0625, %v2584_v7  ;;  %v5329_v24 = vadd.f32 %v5250_v54, %v2519_v40 }
 0x466   : > { %v5331_v29 = vadd.f32 %v2834_v23, %v543_v12  ;;  %vm2745_vm15 = vweird.f32 %v3961_v37  ;;  %v2475_v7 = vadd.f32 %v2474_v3, %v2425_v16 }
 0x467   : > { %v2740_v10 = vmul.f32 %v3961_v37, %v2739_v13  ;;  %v2673_v9 = vadd.f32 %v2672_v0, %v2671_v15  ;;  %v5334_v22 = vsub.f32 %v2540_v45, %v2610_v26  ;;  %v5336_v28 = vsub.f32 %v2541_v8, %v2610_v26  ;;  %vm2746_vm2 = vmor %vm2744_vm1, %vm2745_vm15  ;;  %v2477_v59 = vpop.f32.mrf.mxu2 }
 0x468   : > { %v2585_v34 = vadd.f32 %v5329_v24, %v5326_v21  ;;  %2869 = vadd.xlane.f32.xlu1 %v5331_v29  ;;  %v2835_v45 = vadd.f32 %v5291_v18, %v2818_v42 }
 0x469   : > { %v2741_v30 = vmul.f32 0.5, %v2740_v10  ;;  %v2705_v2 = vmul.f32 0.0625, %v2673_v9  ;;  %v2638_v14 = vmul.f32 %v5334_v22, %v5334_v22  ;;  %v2639_v32 = vmul.f32 %v5336_v28, %v5336_v28 }
 0x46a   : > { %v2586_v4 = vrot.slane %v2585_v34, 4  ;;  %v2521_v33 = vpop.f32.mrf.mxu3  ;;  %v5348_v48 = vadd.f32 %v2835_v45, %v544_v43 }
 0x46b   : > { %v2742_v8 = vsub.f32 1.5, %v2741_v30  ;;  %v2713_v19 = vadd.f32 1e-05, %v2705_v2  ;;  %v2674_v51 = vadd.f32 %v2639_v32, %v2638_v14  ;;  %v2522_v40 = vadd.f32 %v2521_v33, %v2473_v31  ;;  %v2428_v30 = vpop.f32.mrf.mxu1 }
 0x46c   : > { %v2587_v60 = vadd.f32 %v2586_v4, %v2585_v34 }
 0x46d   : > { %v2743_v61 = vmul.f32 %v3961_v37, %v2742_v8  ;;  %3962 = vrsqrt.f32 %v2713_v19  ;;  %v2675_v49 = vrot.slane %v2674_v51, 4  ;;  %v5358_v34 = vadd.f32 %v5250_v54, %v2522_v40 }
 0x46e   : > { %v2588_v63 = vrot.slane %v2587_v60, 2  ;;  %vm2754_vm4 = vweird.f32 %v2713_v19 }
 0x46f   : > { %v2747_v47 = vsel %vm2746_vm2, %v3961_v37, %v2743_v61  ;;  %v2676_v17 = vadd.f32 %v2675_v49, %v2674_v51 }
 0x470   : > { %v2589_v62 = vadd.f32 %v2588_v63, %v2587_v60  ;;  %2871 = vadd.xlane.f32.xlu1 %v5348_v48  ;;  %v2802_v15 = vmul.f32 %v2747_v47, %v5280_v25  ;;  %v2803_v23 = vmul.f32 %v2747_v47, %v5282_v55 }
 0x471   : > { %v2677_v35 = vrot.slane %v2676_v17, 2 }
 0x472   : > { %v2590_v27 = vrot.slane %v2589_v62, 1  ;;  %v2523_v12 = vpop.f32.mrf.mxu3  ;;  %v2819_v13 = vmul.f32 %v5278_v58, %v2802_v15  ;;  %v2820_v3 = vmul.f32 %v5278_v58, %v2803_v23  ;;  %v2478_v15 = vadd.f32 %v2477_v59, %v2428_v30 }
 0x473   : > { %v3963_v0 = vpop.eup %3962  ;;  %v2678_v26 = vadd.f32 %v2677_v35, %v2676_v17  ;;  %v2524_v42 = vadd.f32 %v2523_v12, %v2475_v7  ;;  %v2479_v35 = vpop.f32.mrf.mxu2  ;;  %v547_v59 = vadd.f32 %v5285_v53, %v4784_v46 }
 0x474   : > { %v2749_v37 = vmul.f32 %v3963_v0, %v2713_v19  ;;  %v2591_v10 = vadd.f32 %v2590_v27, %v2589_v62  ;;  %v2836_v25 = vadd.f32 %v5291_v18, %v2819_v13  ;;  %vm2755_vm3 = vweird.f32 %v3963_v0 }
 0x475   : > { %v2679_v9 = vrot.slane %v2678_v26, 1  ;;  %v5361_v55 = vadd.f32 %v5250_v54, %v2524_v42  ;;  %v2837_v63 = vadd.f32 %v5291_v18, %v2820_v3  ;;  %vm2756_vm5 = vmor %vm2754_vm4, %vm2755_vm3 }
 0x476   : > { %v2750_v2 = vmul.f32 %v3963_v0, %v2749_v37  ;;  %v2611_v14 = vmul.f32 0.0625, %v2591_v10  ;;  %v5363_v32 = vadd.f32 %v2836_v25, %v545_v1 }
 0x477   : > { %v2680_v38 = vadd.f32 %v2679_v9, %v2678_v26  ;;  %v2592_v4 = vadd.f32 %v5361_v55, %v5358_v34  ;;  %v2430_v26 = vpop.f32.mrf.mxu1 }
 0x478   : > { %v2751_v33 = vmul.f32 0.5, %v2750_v2  ;;  %v5369_v45 = vsub.f32 %v5326_v21, %v2611_v14  ;;  %v5372_v8 = vsub.f32 %v5329_v24, %v2611_v14  ;;  %2873 = vadd.xlane.f32.xlu2 %v5363_v32  ;;  %v546_v24 = vadd.f32 %v5285_v53, %v4782_v41 }
 0x479   : > { %v2706_v51 = vmul.f32 0.0625, %v2680_v38  ;;  %v2593_v43 = vrot.slane %v2592_v4, 4  ;;  %v2480_v19 = vadd.f32 %v2479_v35, %v2430_v26 }
 0x47a   : > { %v2752_v16 = vsub.f32 1.5, %v2751_v33  ;;  %v2640_v60 = vmul.f32 %v5369_v45, %v5369_v45  ;;  %v2641_v61 = vmul.f32 %v5372_v8, %v5372_v8  ;;  %v2526_v49 = vpop.f32.mrf.mxu3  ;;  %v5382_v23 = vadd.f32 %v2837_v63, %v546_v24 }
 0x47b   : > { %v2714_v21 = vadd.f32 1e-05, %v2706_v51  ;;  %v2594_v31 = vadd.f32 %v2593_v43, %v2592_v4  ;;  %v2527_v41 = vadd.f32 %v2526_v49, %v2478_v15 }
 0x47c   : > { %v2753_v47 = vmul.f32 %v3963_v0, %v2752_v16  ;;  %v2681_v17 = vadd.f32 %v2641_v61, %v2640_v60 }
 0x47d   : > { %3964 = vrsqrt.f32 %v2714_v21  ;;  %v2595_v62 = vrot.slane %v2594_v31, 2  ;;  %v2546_v4 = vadd.f32 %v5250_v54, %v2527_v41  ;;  %vm2764_vm7 = vweird.f32 %v2714_v21 }
 0x47e   : > { %v2757_v7 = vsel %vm2756_vm5, %v3963_v0, %v2753_v47  ;;  %v2682_v40 = vrot.slane %v2681_v17, 4 }
 0x47f   : > { %v2805_v27 = vmul.f32 %v2757_v7, %v5310_v39  ;;  %v2596_v12 = vadd.f32 %v2595_v62, %v2594_v31  ;;  %v2804_v13 = vmul.f32 %v2757_v7, %v5308_v5  ;;  %v548_v39 = vadd.f32 %v5285_v53, %v4787_v57 }
 0x480   : > { %v2683_v42 = vadd.f32 %v2682_v40, %v2681_v17  ;;  %2875 = vadd.xlane.f32.xlu2 %v5382_v23 }
 0x481   : > { %v2597_v1 = vrot.slane %v2596_v12, 1  ;;  %v2822_v37 = vmul.f32 %v5278_v58, %v2805_v27  ;;  %v2821_v0 = vmul.f32 %v5278_v58, %v2804_v13 }
 0x482   : > { %v2684_v10 = vrot.slane %v2683_v42, 2  ;;  %v2528_v25 = vpop.f32.mrf.mxu3 }
 0x483   : > { %v3965_v5 = vpop.eup %3964  ;;  %v2598_v9 = vadd.f32 %v2597_v1, %v2596_v12  ;;  %v2529_v30 = vadd.f32 %v2528_v25, %v2480_v19  ;;  %v2839_v2 = vadd.f32 %v5291_v18, %v2822_v37  ;;  %v2838_v14 = vadd.f32 %v5291_v18, %v2821_v0 }
 0x484   : > { %v2759_v3 = vmul.f32 %v3965_v5, %v2714_v21  ;;  %v2685_v38 = vadd.f32 %v2684_v10, %v2683_v42  ;;  %vm2765_vm6 = vweird.f32 %v3965_v5  ;;  %v550_v25 = vadd.f32 %v5285_v53, %v4794_v36 }
 0x485   : > { %v2612_v33 = vmul.f32 0.0625, %v2598_v9  ;;  %v2547_v51 = vadd.f32 %v5250_v54, %v2529_v30  ;;  %v5397_v46 = vadd.f32 %v2839_v2, %v548_v39  ;;  %v5399_v43 = vadd.f32 %v2838_v14, %v547_v59  ;;  %vm2766_vm8 = vmor %vm2764_vm7, %vm2765_vm6 }
 0x486   : > { %v2760_v57 = vmul.f32 %v3965_v5, %v2759_v3  ;;  %v2686_v16 = vrot.slane %v2685_v38, 1 }
 0x487   : > { %v5402_v60 = vsub.f32 %v5358_v34, %v2612_v33  ;;  %v5405_v61 = vsub.f32 %v5361_v55, %v2612_v33  ;;  %v2599_v49 = vadd.f32 %v2547_v51, %v2546_v4  ;;  %2879 = vadd.xlane.f32.xlu1 %v5397_v46  ;;  %2877 = vadd.xlane.f32.xlu0 %v5399_v43 }
 0x488   : > { %v2761_v63 = vmul.f32 0.5, %v2760_v57  ;;  %v2687_v31 = vadd.f32 %v2686_v16, %v2685_v38 }
 0x489   : > { %v2642_v54 = vmul.f32 %v5402_v60, %v5402_v60  ;;  %v2643_v24 = vmul.f32 %v5405_v61, %v5405_v61  ;;  %v2600_v47 = vrot.slane %v2599_v49, 4 }
 0x48a   : > { %v2762_v17 = vsub.f32 1.5, %v2761_v63  ;;  %v2707_v34 = vmul.f32 0.0625, %v2687_v31 }
 0x48b   : > { %v2688_v62 = vadd.f32 %v2643_v24, %v2642_v54  ;;  %v2601_v55 = vadd.f32 %v2600_v47, %v2599_v49 }
 0x48c   : > { %v2763_v15 = vmul.f32 %v3965_v5, %v2762_v17  ;;  %v2715_v7 = vadd.f32 1e-05, %v2707_v34 }
 0x48d   : > { %v2689_v35 = vrot.slane %v2688_v62, 4  ;;  %v2602_v40 = vrot.slane %v2601_v55, 2 }
 0x48e   : > { %v2767_v27 = vsel %vm2766_vm8, %v3965_v5, %v2763_v15  ;;  %3966 = vrsqrt.f32 %v2715_v7  ;;  %vm2774_vm0 = vweird.f32 %v2715_v7 }
 0x48f   : > { %v2807_v12 = vmul.f32 %v2767_v27, %v5336_v28  ;;  %v2690_v13 = vadd.f32 %v2689_v35, %v2688_v62  ;;  %v2603_v26 = vadd.f32 %v2602_v40, %v2601_v55  ;;  %v2806_v42 = vmul.f32 %v2767_v27, %v5334_v22 }
 0x490   : > { %v549_v28 = vadd.f32 %v5285_v53, %v4791_v52  ;;  %v551_v35 = vadd.f32 %v5285_v53, %v4797_v20 }
 0x491   : > { %v2691_v41 = vrot.slane %v2690_v13, 2  ;;  %v2604_v19 = vrot.slane %v2603_v26, 1  ;;  %v2823_v1 = vmul.f32 %v5278_v58, %v2806_v42  ;;  %v2824_v37 = vmul.f32 %v5278_v58, %v2807_v12 }
 0x493   : > { %v2692_v0 = vadd.f32 %v2691_v41, %v2690_v13  ;;  %v2605_v21 = vadd.f32 %v2604_v19, %v2603_v26  ;;  %v2840_v59 = vadd.f32 %v5291_v18, %v2823_v1  ;;  %v2841_v39 = vadd.f32 %v5291_v18, %v2824_v37 }
 0x494   : > { %v3967_v10 = vpop.eup %3966 }
 0x495   : > { %v2769_v22 = vmul.f32 %v3967_v10, %v2715_v7  ;;  %v2693_v5 = vrot.slane %v2692_v0, 1  ;;  %v2613_v9 = vmul.f32 0.0625, %v2605_v21  ;;  %v5423_v30 = vadd.f32 %v2840_v59, %v549_v28 }
 0x496   : > { %v5425_v2 = vadd.f32 %v2841_v39, %v550_v25  ;;  %vm2775_vm9 = vweird.f32 %v3967_v10  ;;  %v552_v7 = vadd.f32 %v5285_v53, %v4802_v11  ;;  %v553_v25 = vadd.f32 %v5285_v53, %v4808_v56 }
 0x497   : > { %v2770_v14 = vmul.f32 %v3967_v10, %v2769_v22  ;;  %v2694_v3 = vadd.f32 %v2693_v5, %v2692_v0  ;;  %v5427_v38 = vsub.f32 %v2546_v4, %v2613_v9  ;;  %v5429_v33 = vsub.f32 %v2547_v51, %v2613_v9  ;;  %2881 = vadd.xlane.f32.xlu2 %v5423_v30  ;;  %vm2776_vm10 = vmor %vm2774_vm0, %vm2775_vm9 }
 0x498   : > { %2883 = vadd.xlane.f32.xlu0 %v5425_v2  ;;  %v554_v22 = vadd.f32 %v5285_v53, %v4811_v50 }
 0x499   : > { %v2771_v52 = vmul.f32 0.5, %v2770_v14  ;;  %v2708_v57 = vmul.f32 0.0625, %v2694_v3  ;;  %v2644_v36 = vmul.f32 %v5427_v38, %v5427_v38  ;;  %v2645_v16 = vmul.f32 %v5429_v33, %v5429_v33 }
 0x49b   : > { %v2772_v49 = vsub.f32 1.5, %v2771_v52  ;;  %v2716_v63 = vadd.f32 1e-05, %v2708_v57  ;;  %v2695_v31 = vadd.f32 %v2645_v16, %v2644_v36 }
 0x49d   : > { %v2773_v4 = vmul.f32 %v3967_v10, %v2772_v49  ;;  %3968 = vrsqrt.f32 %v2716_v63  ;;  %v2696_v51 = vrot.slane %v2695_v31, 4  ;;  %vm2784_vm12 = vweird.f32 %v2716_v63 }
 0x49f   : > { %v2777_v54 = vsel %vm2776_vm10, %v3967_v10, %v2773_v4  ;;  %v2697_v24 = vadd.f32 %v2696_v51, %v2695_v31  ;;  %v5722_v31 = vld [vmem:[#allocation21_spill] sm:$0xff]  ;;  %v5723_v51 = vld [vmem:[#allocation22_spill] sm:$0xff] }
 0x4a0   : > { %v2809_v47 = vmul.f32 %v2777_v54, %v5372_v8  ;;  %v2808_v17 = vmul.f32 %v2777_v54, %v5369_v45  ;;  %v555_v4 = vadd.f32 %v5285_v53, %v5722_v31  ;;  %v556_v54 = vadd.f32 %v5285_v53, %v5723_v51 }
 0x4a1   : > { %v2698_v34 = vrot.slane %v2697_v24, 2 }
 0x4a2   : > { %v2826_v62 = vmul.f32 %v5278_v58, %v2809_v47  ;;  %v2825_v55 = vmul.f32 %v5278_v58, %v2808_v17 }
 0x4a3   : > { %v3969_v15 = vpop.eup %3968  ;;  %v2699_v40 = vadd.f32 %v2698_v34, %v2697_v24 }
 0x4a4   : > { %v2779_v27 = vmul.f32 %v3969_v15, %v2716_v63  ;;  %v2843_v12 = vadd.f32 %v5291_v18, %v2826_v62  ;;  %v2842_v8 = vadd.f32 %v5291_v18, %v2825_v55  ;;  %vm2785_vm11 = vweird.f32 %v3969_v15  ;;  %v5483_v62 = vld [vmem:[#allocation11 + $0x9] ss:$0 sm:$0xff] }
 0x4a5   : > { %v2700_v13 = vrot.slane %v2699_v40, 1  ;;  %vm2786_vm13 = vmor %vm2784_vm12, %vm2785_vm11 }
 0x4a6   : > { %v2780_v45 = vmul.f32 %v3969_v15, %v2779_v27  ;;  %v5447_v26 = vadd.f32 %v2843_v12, %v552_v7  ;;  %v5449_v42 = vadd.f32 %v2842_v8, %v551_v35 }
 0x4a7   : > { %v2701_v41 = vadd.f32 %v2700_v13, %v2699_v40 }
 0x4a8   : > { %v2781_v19 = vmul.f32 0.5, %v2780_v45  ;;  %2887 = vadd.xlane.f32.xlu2 %v5447_v26  ;;  %2885 = vadd.xlane.f32.xlu1 %v5449_v42 }
 0x4a9   : > { %v2709_v20 = vmul.f32 0.0625, %v2701_v41 }
 0x4aa   : > { %v2782_v1 = vsub.f32 1.5, %v2781_v19 }
 0x4ab   : > { %v2717_v11 = vadd.f32 1e-05, %v2709_v20 }
 0x4ac   : > { %v2783_v37 = vmul.f32 %v3969_v15, %v2782_v1 }
 0x4ad   : > { %3970 = vrsqrt.f32 %v2717_v11  ;;  %vm2794_vm15 = vweird.f32 %v2717_v11 }
 0x4ae   : > { %v2787_v0 = vsel %vm2786_vm13, %v3969_v15, %v2783_v37 }
 0x4af   : > { %v2811_v21 = vmul.f32 %v2787_v0, %v5405_v61  ;;  %v2810_v59 = vmul.f32 %v2787_v0, %v5402_v60 }
 0x4b1   : > { %v2828_v39 = vmul.f32 %v5278_v58, %v2811_v21  ;;  %v2827_v10 = vmul.f32 %v5278_v58, %v2810_v59 }
 0x4b3   : > { %v3971_v28 = vpop.eup %3970  ;;  %v2845_v5 = vadd.f32 %v5291_v18, %v2828_v39  ;;  %v2844_v9 = vadd.f32 %v5291_v18, %v2827_v10 }
 0x4b4   : > { %v2789_v14 = vmul.f32 %v3971_v28, %v2717_v11  ;;  %vm2795_vm14 = vweird.f32 %v3971_v28 }
 0x4b5   : > { %v5463_v3 = vadd.f32 %v2845_v5, %v554_v22  ;;  %v5465_v61 = vadd.f32 %v2844_v9, %v553_v25  ;;  %vm2796_vm1 = vmor %vm2794_vm15, %vm2795_vm14 }
 0x4b6   : > { %v2790_v60 = vmul.f32 %v3971_v28, %v2789_v14 }
 0x4b7   : > { %2891 = vadd.xlane.f32.xlu1 %v5463_v3  ;;  %2889 = vadd.xlane.f32.xlu0 %v5465_v61 }
 0x4b8   : > { %v2791_v52 = vmul.f32 0.5, %v2790_v60 }
 0x4ba   : > { %v2792_v57 = vsub.f32 1.5, %v2791_v52 }
 0x4bc   : > { %v2793_v56 = vmul.f32 %v3971_v28, %v2792_v57 }
 0x4be   : > { %v2797_v50 = vsel %vm2796_vm1, %v3971_v28, %v2793_v56 }
 0x4bf   : > { %v2813_v36 = vmul.f32 %v2797_v50, %v5429_v33  ;;  %v2812_v16 = vmul.f32 %v2797_v50, %v5427_v38 }
 0x4c1   : > { %v2829_v49 = vmul.f32 %v5278_v58, %v2812_v16  ;;  %v2830_v63 = vmul.f32 %v5278_v58, %v2813_v36 }
 0x4c3   : > { %v2846_v24 = vadd.f32 %v5291_v18, %v2829_v49  ;;  %v2847_v47 = vadd.f32 %v5291_v18, %v2830_v63  ;;  %v2866_v17 = vpop.xlane.xlu0 %2865 }
 0x4c4   : > { %v2897_v38 = vmul.f32 0.05, %v2866_v17 }
 0x4c5   : > { %v5479_v34 = vadd.f32 %v2846_v24, %v555_v4  ;;  %v5481_v33 = vadd.f32 %v2847_v47, %v556_v54 }
 0x4c6   : > { %v2913_v58 = vsub.f32 %v5299_v44, %v2897_v38 }
 0x4c7   : > { %2893 = vadd.xlane.f32.xlu2 %v5479_v34  ;;  %2895 = vadd.xlane.f32.xlu0 %v5481_v33 }
 0x4c8   : > { %v5489_v53 = vmul.f32 %v5483_v62, %v2913_v58 }
 0x4ca   : > { %v2946_v18 = vmul.f32 %v5489_v53, %v5489_v53 }
 0x4cb   : > { %v2868_v55 = vpop.xlane.xlu0 %2867 }
 0x4cc   : > { %v2898_v15 = vmul.f32 0.05, %v2868_v55  ;;  %2962 = vadd.xlane.f32.xlu1 %v2946_v18 }
 0x4ce   : > { %v2914_v35 = vsub.f32 %v5312_v6, %v2898_v15 }
 0x4d0   : > { %v5495_v40 = vmul.f32 %v5483_v62, %v2914_v35 }
 0x4d2   : > { %v2947_v7 = vmul.f32 %v5495_v40, %v5495_v40 }
 0x4d4   : > { %2964 = vadd.xlane.f32.xlu2 %v2947_v7 }
 0x4db   : > { %v2870_v27 = vpop.xlane.xlu1 %2869 }
 0x4dc   : > { %v2899_v44 = vmul.f32 0.05, %v2870_v27 }
 0x4de   : > { %v2915_v12 = vsub.f32 %v5331_v29, %v2899_v44 }
 0x4e0   : > { %v5501_v8 = vmul.f32 %v5483_v62, %v2915_v12 }
 0x4e2   : > { %v2948_v13 = vmul.f32 %v5501_v8, %v5501_v8 }
 0x4e3   : > { %v2872_v45 = vpop.xlane.xlu1 %2871 }
 0x4e4   : > { %v2900_v41 = vmul.f32 0.05, %v2872_v45  ;;  %2966 = vadd.xlane.f32.xlu0 %v2948_v13 }
 0x4e6   : > { %v2916_v6 = vsub.f32 %v5348_v48, %v2900_v41 }
 0x4e8   : > { %v5507_v19 = vmul.f32 %v5483_v62, %v2916_v6 }
 0x4ea   : > { %v2949_v20 = vmul.f32 %v5507_v19, %v5507_v19 }
 0x4eb   : > { %v2874_v1 = vpop.xlane.xlu2 %2873 }
 0x4ec   : > { %v2901_v11 = vmul.f32 0.05, %v2874_v1  ;;  %2968 = vadd.xlane.f32.xlu1 %v2949_v20 }
 0x4ee   : > { %v2917_v29 = vsub.f32 %v5363_v32, %v2901_v11 }
 0x4f0   : > { %v5513_v37 = vmul.f32 %v5483_v62, %v2917_v29 }
 0x4f2   : > { %v2950_v0 = vmul.f32 %v5513_v37, %v5513_v37 }
 0x4f3   : > { %v2876_v21 = vpop.xlane.xlu2 %2875 }
 0x4f4   : > { %v2902_v59 = vmul.f32 0.05, %v2876_v21  ;;  %2970 = vadd.xlane.f32.xlu2 %v2950_v0 }
 0x4f6   : > { %v2918_v48 = vsub.f32 %v5382_v23, %v2902_v59 }
 0x4f8   : > { %v5519_v39 = vmul.f32 %v5483_v62, %v2918_v48 }
 0x4fa   : > { %v2880_v10 = vpop.xlane.xlu1 %2879  ;;  %v2878_v28 = vpop.xlane.xlu0 %2877  ;;  %v2951_v25 = vmul.f32 %v5519_v39, %v5519_v39 }
 0x4fb   : > { %v2904_v32 = vmul.f32 0.05, %v2880_v10  ;;  %v2903_v22 = vmul.f32 0.05, %v2878_v28 }
 0x4fc   : > { %2972 = vadd.xlane.f32.xlu0 %v2951_v25 }
 0x4fd   : > { %v2920_v5 = vsub.f32 %v5397_v46, %v2904_v32  ;;  %v2919_v9 = vsub.f32 %v5399_v43, %v2903_v22 }
 0x4ff   : > { %v5526_v14 = vmul.f32 %v5483_v62, %v2920_v5  ;;  %v5529_v23 = vmul.f32 %v5483_v62, %v2919_v9 }
 0x501   : > { %v2953_v60 = vmul.f32 %v5526_v14, %v5526_v14  ;;  %v2952_v52 = vmul.f32 %v5529_v23, %v5529_v23 }
 0x503   : > { %2976 = vadd.xlane.f32.xlu2 %v2953_v60  ;;  %2974 = vadd.xlane.f32.xlu1 %v2952_v52  ;;  %v5583_v60 = vld [vmem:[#allocation11 + $0x6] ss:$0 sm:$0xff] }
 0x50a   : > { %v2882_v57 = vpop.xlane.xlu2 %2881 }
 0x50b   : > { %v2884_v56 = vpop.xlane.xlu0 %2883  ;;  %v2905_v50 = vmul.f32 0.05, %v2882_v57 }
 0x50c   : > { %v2906_v46 = vmul.f32 0.05, %v2884_v56 }
 0x50d   : > { %v2921_v43 = vsub.f32 %v5423_v30, %v2905_v50  ;;  %v5585_v50 = vld [vmem:[#allocation11 + $0x7] ss:$0 sm:$0xff] }
 0x50e   : > { %v2922_v36 = vsub.f32 %v5425_v2, %v2906_v46 }
 0x50f   : > { %v5541_v49 = vmul.f32 %v5483_v62, %v2921_v43 }
 0x510   : > { %v5538_v16 = vmul.f32 %v5483_v62, %v2922_v36 }
 0x511   : > { %v2954_v31 = vmul.f32 %v5541_v49, %v5541_v49 }
 0x512   : > { %v2955_v63 = vmul.f32 %v5538_v16, %v5538_v16 }
 0x513   : > { %2978 = vadd.xlane.f32.xlu0 %v2954_v31 }
 0x514   : > { %2980 = vadd.xlane.f32.xlu1 %v2955_v63 }
 0x51b   : > { %v2888_v4 = vpop.xlane.xlu2 %2887  ;;  %v2886_v51 = vpop.xlane.xlu1 %2885 }
 0x51c   : > { %v2908_v54 = vmul.f32 0.05, %v2888_v4  ;;  %v2907_v30 = vmul.f32 0.05, %v2886_v51 }
 0x51e   : > { %v2924_v2 = vsub.f32 %v5447_v26, %v2908_v54  ;;  %v2923_v24 = vsub.f32 %v5449_v42, %v2907_v30 }
 0x520   : > { %v5550_v47 = vmul.f32 %v5483_v62, %v2923_v24  ;;  %v5553_v17 = vmul.f32 %v5483_v62, %v2924_v2 }
 0x522   : > { %v2956_v38 = vmul.f32 %v5550_v47, %v5550_v47  ;;  %v2957_v58 = vmul.f32 %v5553_v17, %v5553_v17 }
 0x524   : > { %2982 = vadd.xlane.f32.xlu2 %v2956_v38  ;;  %2984 = vadd.xlane.f32.xlu0 %v2957_v58 }
 0x52a   : > { %v2892_v18 = vpop.xlane.xlu1 %2891  ;;  %v2890_v55 = vpop.xlane.xlu0 %2889 }
 0x52b   : > { %v2910_v15 = vmul.f32 0.05, %v2892_v18  ;;  %v2909_v26 = vmul.f32 0.05, %v2890_v55 }
 0x52d   : > { %v2926_v42 = vsub.f32 %v5463_v3, %v2910_v15  ;;  %v2925_v35 = vsub.f32 %v5465_v61, %v2909_v26 }
 0x52f   : > { %v5562_v7 = vmul.f32 %v5483_v62, %v2926_v42  ;;  %v5565_v27 = vmul.f32 %v5483_v62, %v2925_v35 }
 0x531   : > { %v2959_v44 = vmul.f32 %v5562_v7, %v5562_v7  ;;  %v2958_v12 = vmul.f32 %v5565_v27, %v5565_v27 }
 0x533   : > { %2988 = vadd.xlane.f32.xlu2 %v2959_v44  ;;  %2986 = vadd.xlane.f32.xlu1 %v2958_v12 }
 0x53a   : > { %v2894_v13 = vpop.xlane.xlu2 %2893  ;;  %v2896_v45 = vpop.xlane.xlu0 %2895 }
 0x53b   : > { %v2911_v41 = vmul.f32 0.05, %v2894_v13  ;;  %v2912_v3 = vmul.f32 0.05, %v2896_v45 }
 0x53d   : > { %v2927_v61 = vsub.f32 %v5479_v34, %v2911_v41  ;;  %v2928_v6 = vsub.f32 %v5481_v33, %v2912_v3 }
 0x53f   : > { %v5574_v20 = vmul.f32 %v5483_v62, %v2927_v61  ;;  %v5577_v1 = vmul.f32 %v5483_v62, %v2928_v6  ;;  %v2963_v11 = vpop.xlane.xlu1 %2962 }
 0x540   : > { %v2994_v21 = vmul.f32 0.05, %v2963_v11 }
 0x541   : > { %v2960_v29 = vmul.f32 %v5574_v20, %v5574_v20  ;;  %v2961_v0 = vmul.f32 %v5577_v1, %v5577_v1 }
 0x542   : > { %v3010_v59 = vadd.f32 1e-05, %v2994_v21 }
 0x543   : > { %2990 = vadd.xlane.f32.xlu0 %v2960_v29  ;;  %2992 = vadd.xlane.f32.xlu1 %v2961_v0 }
 0x544   : > { %3972 = vrsqrt.f32 %v3010_v59  ;;  %vm3032_vm3 = vweird.f32 %v3010_v59 }
 0x547   : > { %v2965_v34 = vpop.xlane.xlu2 %2964 }
 0x548   : > { %v2995_v33 = vmul.f32 0.05, %v2965_v34 }
 0x54a   : > { %v3973_v48 = vpop.eup %3972  ;;  %v3011_v10 = vadd.f32 1e-05, %v2995_v33 }
 0x54b   : > { %v3027_v28 = vmul.f32 %v3973_v48, %v3010_v59  ;;  %vm3033_vm2 = vweird.f32 %v3973_v48 }
 0x54c   : > { %3974 = vrsqrt.f32 %v3011_v10  ;;  %vm3034_vm4 = vmor %vm3032_vm3, %vm3033_vm2  ;;  %vm3042_vm6 = vweird.f32 %v3011_v10 }
 0x54d   : > { %v3028_v62 = vmul.f32 %v3973_v48, %v3027_v28 }
 0x54f   : > { %v3029_v25 = vmul.f32 0.5, %v3028_v62 }
 0x551   : > { %v3030_v32 = vsub.f32 1.5, %v3029_v25 }
 0x552   : > { %v3975_v22 = vpop.eup %3974 }
 0x553   : > { %v3031_v5 = vmul.f32 %v3973_v48, %v3030_v32  ;;  %v3037_v9 = vmul.f32 %v3975_v22, %v3011_v10  ;;  %vm3043_vm5 = vweird.f32 %v3975_v22 }
 0x554   : > { %vm3044_vm7 = vmor %vm3042_vm6, %vm3043_vm5 }
 0x555   : > { %v3035_v52 = vsel %vm3034_vm4, %v3973_v48, %v3031_v5  ;;  %v3038_v57 = vmul.f32 %v3975_v22, %v3037_v9 }
 0x556   : > { %v3186_v46 = vmul.f32 %v3035_v52, %v5489_v53 }
 0x557   : > { %v2967_v56 = vpop.xlane.xlu0 %2966  ;;  %v3039_v36 = vmul.f32 0.5, %v3038_v57 }
 0x558   : > { %v2996_v43 = vmul.f32 0.05, %v2967_v56  ;;  %v3204_v63 = vmul.f32 %v5583_v60, %v3186_v46 }
 0x559   : > { %v3040_v4 = vsub.f32 1.5, %v3039_v36 }
 0x55a   : > { %v3012_v31 = vadd.f32 1e-05, %v2996_v43  ;;  %v3222_v51 = vadd.f32 %v5585_v50, %v3204_v63 }
 0x55b   : > { %v3041_v54 = vmul.f32 %v3975_v22, %v3040_v4 }
 0x55c   : > { %3976 = vrsqrt.f32 %v3012_v31  ;;  %v3238_v30 = vmax.f32 %v3222_v51, 0.0  ;;  %vm3052_vm9 = vweird.f32 %v3012_v31 }
 0x55d   : > { %v3045_v2 = vsel %vm3044_vm7, %v3975_v22, %v3041_v54 }
 0x55e   : > { %3254 = vst [vmem:[%s5592_s27] sm:$0xff] %v3238_v30  ;;  %v3187_v53 = vmul.f32 %v3045_v2, %v5495_v40 }
 0x55f   : > { %v2969_v24 = vpop.xlane.xlu1 %2968 }
 0x560   : > { %v2997_v38 = vmul.f32 0.05, %v2969_v24  ;;  %v3205_v18 = vmul.f32 %v5583_v60, %v3187_v53 }
 0x562   : > { %v3977_v58 = vpop.eup %3976  ;;  %v3013_v55 = vadd.f32 1e-05, %v2997_v38  ;;  %v3223_v26 = vadd.f32 %v5585_v50, %v3205_v18 }
 0x563   : > { %v3047_v15 = vmul.f32 %v3977_v58, %v3012_v31  ;;  %vm3053_vm8 = vweird.f32 %v3977_v58 }
 0x564   : > { %3978 = vrsqrt.f32 %v3013_v55  ;;  %v3239_v35 = vmax.f32 %v3223_v26, 0.0  ;;  %vm3054_vm0 = vmor %vm3052_vm9, %vm3053_vm8  ;;  %vm3062_vm11 = vweird.f32 %v3013_v55 }
 0x565   : > { %v3048_v42 = vmul.f32 %v3977_v58, %v3047_v15 }
 0x566   : > { %3255 = vst [vmem:[%s5592_s27 + $0x8] sm:$0xff] %v3239_v35 }
 0x567   : > { %v3049_v44 = vmul.f32 0.5, %v3048_v42  ;;  %v2971_v12 = vpop.xlane.xlu2 %2970 }
 0x568   : > { %v2998_v13 = vmul.f32 0.05, %v2971_v12 }
 0x569   : > { %v3050_v45 = vsub.f32 1.5, %v3049_v44 }
 0x56a   : > { %v3979_v41 = vpop.eup %3978  ;;  %v3014_v3 = vadd.f32 1e-05, %v2998_v13 }
 0x56b   : > { %v3051_v40 = vmul.f32 %v3977_v58, %v3050_v45  ;;  %v3057_v61 = vmul.f32 %v3979_v41, %v3013_v55  ;;  %vm3063_vm10 = vweird.f32 %v3979_v41 }
 0x56c   : > { %3980 = vrsqrt.f32 %v3014_v3  ;;  %vm3064_vm12 = vmor %vm3062_vm11, %vm3063_vm10  ;;  %vm3072_vm14 = vweird.f32 %v3014_v3 }
 0x56d   : > { %v3055_v6 = vsel %vm3054_vm0, %v3977_v58, %v3051_v40  ;;  %v3058_v11 = vmul.f32 %v3979_v41, %v3057_v61 }
 0x56e   : > { %v3188_v29 = vmul.f32 %v3055_v6, %v5501_v8 }
 0x56f   : > { %v3059_v0 = vmul.f32 0.5, %v3058_v11  ;;  %v2973_v21 = vpop.xlane.xlu0 %2972 }
 0x570   : > { %v3206_v59 = vmul.f32 %v5583_v60, %v3188_v29  ;;  %v2999_v34 = vmul.f32 0.05, %v2973_v21 }
 0x571   : > { %v3060_v33 = vsub.f32 1.5, %v3059_v0 }
 0x572   : > { %v3981_v48 = vpop.eup %3980  ;;  %v3224_v10 = vadd.f32 %v5585_v50, %v3206_v59  ;;  %v3015_v28 = vadd.f32 1e-05, %v2999_v34 }
 0x573   : > { %v3061_v62 = vmul.f32 %v3979_v41, %v3060_v33  ;;  %v3067_v25 = vmul.f32 %v3981_v48, %v3014_v3  ;;  %vm3073_vm13 = vweird.f32 %v3981_v48 }
 0x574   : > { %v3240_v32 = vmax.f32 %v3224_v10, 0.0  ;;  %3982 = vrsqrt.f32 %v3015_v28  ;;  %vm3074_vm15 = vmor %vm3072_vm14, %vm3073_vm13  ;;  %vm3082_vm2 = vweird.f32 %v3015_v28 }
 0x575   : > { %v3065_v22 = vsel %vm3064_vm12, %v3979_v41, %v3061_v62  ;;  %v3068_v8 = vmul.f32 %v3981_v48, %v3067_v25 }
 0x576   : > { %3256 = vst [vmem:[%s5592_s27 + $0x10] sm:$0xff] %v3240_v32  ;;  %v3189_v5 = vmul.f32 %v3065_v22, %v5507_v19  ;;  %v2977_v9 = vpop.xlane.xlu2 %2976  ;;  %v2975_v52 = vpop.xlane.xlu1 %2974 }
 0x577   : > { %v3069_v57 = vmul.f32 0.5, %v3068_v8  ;;  %v3001_v56 = vmul.f32 0.05, %v2977_v9  ;;  %v3000_v46 = vmul.f32 0.05, %v2975_v52 }
 0x578   : > { %v3207_v43 = vmul.f32 %v5583_v60, %v3189_v5 }
 0x579   : > { %v3070_v36 = vsub.f32 1.5, %v3069_v57  ;;  %v3017_v63 = vadd.f32 1e-05, %v3001_v56  ;;  %v3016_v31 = vadd.f32 1e-05, %v3000_v46 }
 0x57a   : > { %v3983_v4 = vpop.eup %3982  ;;  %v3225_v51 = vadd.f32 %v5585_v50, %v3207_v43 }
 0x57b   : > { %v3071_v54 = vmul.f32 %v3981_v48, %v3070_v36  ;;  %v3077_v30 = vmul.f32 %v3983_v4, %v3015_v28  ;;  %3984 = vrsqrt.f32 %v3017_v63  ;;  %vm3083_vm1 = vweird.f32 %v3983_v4 }
 0x57c   : > { %v3241_v19 = vmax.f32 %v3225_v51, 0.0  ;;  %3986 = vrsqrt.f32 %v3016_v31  ;;  %vm3084_vm3 = vmor %vm3082_vm2, %vm3083_vm1  ;;  %vm3102_vm5 = vweird.f32 %v3017_v63  ;;  %vm3092_vm8 = vweird.f32 %v3016_v31 }
 0x57d   : > { %v3075_v2 = vsel %vm3074_vm15, %v3981_v48, %v3071_v54  ;;  %v3078_v24 = vmul.f32 %v3983_v4, %v3077_v30 }
 0x57e   : > { %3257 = vst [vmem:[%s5592_s27 + $0x18] sm:$0xff] %v3241_v19  ;;  %v3190_v53 = vmul.f32 %v3075_v2, %v5513_v37 }
 0x57f   : > { %v3079_v38 = vmul.f32 0.5, %v3078_v24 }
 0x580   : > { %v3208_v58 = vmul.f32 %v5583_v60, %v3190_v53 }
 0x581   : > { %v3985_v18 = vpop.eup %3984  ;;  %v3080_v55 = vsub.f32 1.5, %v3079_v38 }
 0x582   : > { %v3987_v15 = vpop.eup %3986  ;;  %v3226_v26 = vadd.f32 %v5585_v50, %v3208_v58  ;;  %v3097_v42 = vmul.f32 %v3985_v18, %v3017_v63  ;;  %vm3103_vm4 = vweird.f32 %v3985_v18 }
 0x583   : > { %v3081_v35 = vmul.f32 %v3983_v4, %v3080_v55  ;;  %v3087_v44 = vmul.f32 %v3987_v15, %v3016_v31  ;;  %vm3093_vm6 = vweird.f32 %v3987_v15  ;;  %vm3104_vm7 = vmor %vm3102_vm5, %vm3103_vm4 }
 0x584   : > { %v3242_v12 = vmax.f32 %v3226_v26, 0.0  ;;  %v3098_v13 = vmul.f32 %v3985_v18, %v3097_v42  ;;  %vm3094_vm9 = vmor %vm3092_vm8, %vm3093_vm6 }
 0x585   : > { %v3085_v45 = vsel %vm3084_vm3, %v3983_v4, %v3081_v35  ;;  %v3088_v41 = vmul.f32 %v3987_v15, %v3087_v44 }
 0x586   : > { %3258 = vst [vmem:[%s5592_s27 + $0x20] sm:$0xff] %v3242_v12  ;;  %v3191_v37 = vmul.f32 %v3085_v45, %v5519_v39  ;;  %v3099_v3 = vmul.f32 0.5, %v3098_v13  ;;  %v2979_v6 = vpop.xlane.xlu0 %2978 }
 0x587   : > { %v3089_v40 = vmul.f32 0.5, %v3088_v41  ;;  %v2981_v61 = vpop.xlane.xlu1 %2980  ;;  %v3002_v21 = vmul.f32 0.05, %v2979_v6 }
 0x588   : > { %v3209_v11 = vmul.f32 %v5583_v60, %v3191_v37  ;;  %v3100_v29 = vsub.f32 1.5, %v3099_v3  ;;  %v3003_v0 = vmul.f32 0.05, %v2981_v61 }
 0x589   : > { %v3090_v59 = vsub.f32 1.5, %v3089_v40  ;;  %v3018_v10 = vadd.f32 1e-05, %v3002_v21 }
 0x58a   : > { %v3227_v34 = vadd.f32 %v5585_v50, %v3209_v11  ;;  %v3101_v33 = vmul.f32 %v3985_v18, %v3100_v29  ;;  %v3019_v48 = vadd.f32 1e-05, %v3003_v0 }
 0x58b   : > { %v3091_v39 = vmul.f32 %v3987_v15, %v3090_v59  ;;  %vm3112_vm13 = vweird.f32 %v3018_v10 }
 0x58c   : > { %v3243_v28 = vmax.f32 %v3227_v34, 0.0  ;;  %v3105_v62 = vsel %vm3104_vm7, %v3985_v18, %v3101_v33  ;;  %3988 = vrsqrt.f32 %v3019_v48  ;;  %vm3122_vm11 = vweird.f32 %v3019_v48 }
 0x58d   : > { %v3193_v25 = vmul.f32 %v3105_v62, %v5526_v14  ;;  %v3095_v32 = vsel %vm3094_vm9, %v3987_v15, %v3091_v39  ;;  %3990 = vrsqrt.f32 %v3018_v10 }
 0x58e   : > { %3259 = vst [vmem:[%s5592_s27 + $0x28] sm:$0xff] %v3243_v28  ;;  %v3192_v22 = vmul.f32 %v3095_v32, %v5529_v23 }
 0x58f   : > { %v3211_v8 = vmul.f32 %v5583_v60, %v3193_v25 }
 0x590   : > { %v3210_v5 = vmul.f32 %v5583_v60, %v3192_v22 }
 0x591   : > { %v3229_v9 = vadd.f32 %v5585_v50, %v3211_v8 }
 0x592   : > { %v3989_v52 = vpop.eup %3988  ;;  %v3228_v57 = vadd.f32 %v5585_v50, %v3210_v5 }
 0x593   : > { %v3991_v56 = vpop.eup %3990  ;;  %v3245_v46 = vmax.f32 %v3229_v9, 0.0  ;;  %v3117_v43 = vmul.f32 %v3989_v52, %v3019_v48  ;;  %vm3123_vm0 = vweird.f32 %v3989_v52 }
 0x594   : > { %v3244_v36 = vmax.f32 %v3228_v57, 0.0  ;;  %v3107_v14 = vmul.f32 %v3991_v56, %v3018_v10  ;;  %vm3113_vm10 = vweird.f32 %v3991_v56  ;;  %vm3124_vm12 = vmor %vm3122_vm11, %vm3123_vm0 }
 0x595   : > { %3261 = vst [vmem:[%s5592_s27 + $0x38] sm:$0xff] %v3245_v46  ;;  %v3118_v63 = vmul.f32 %v3989_v52, %v3117_v43  ;;  %vm3114_vm14 = vmor %vm3112_vm13, %vm3113_vm10 }
 0x596   : > { %3260 = vst [vmem:[%s5592_s27 + $0x30] sm:$0xff] %v3244_v36  ;;  %v3108_v31 = vmul.f32 %v3991_v56, %v3107_v14 }
 0x597   : > { %v3119_v4 = vmul.f32 0.5, %v3118_v63  ;;  %v2983_v23 = vpop.xlane.xlu2 %2982  ;;  %v2985_v51 = vpop.xlane.xlu0 %2984 }
 0x598   : > { %v3109_v54 = vmul.f32 0.5, %v3108_v31  ;;  %v3004_v30 = vmul.f32 0.05, %v2983_v23  ;;  %v3005_v19 = vmul.f32 0.05, %v2985_v51 }
 0x599   : > { %v3120_v2 = vsub.f32 1.5, %v3119_v4 }
 0x59a   : > { %v3110_v24 = vsub.f32 1.5, %v3109_v54  ;;  %v3020_v53 = vadd.f32 1e-05, %v3004_v30  ;;  %v3021_v38 = vadd.f32 1e-05, %v3005_v19 }
 0x59b   : > { %v3121_v58 = vmul.f32 %v3989_v52, %v3120_v2 }
 0x59c   : > { %v3111_v18 = vmul.f32 %v3991_v56, %v3110_v24  ;;  %3992 = vrsqrt.f32 %v3020_v53  ;;  %vm3132_vm2 = vweird.f32 %v3020_v53  ;;  %vm3142_vm4 = vweird.f32 %v3021_v38 }
 0x59d   : > { %v3125_v55 = vsel %vm3124_vm12, %v3989_v52, %v3121_v58  ;;  %3994 = vrsqrt.f32 %v3021_v38 }
 0x59e   : > { %v3195_v15 = vmul.f32 %v3125_v55, %v5538_v16  ;;  %v3115_v26 = vsel %vm3114_vm14, %v3991_v56, %v3111_v18 }
 0x59f   : > { %v3194_v42 = vmul.f32 %v3115_v26, %v5541_v49 }
 0x5a0   : > { %v3213_v35 = vmul.f32 %v5583_v60, %v3195_v15 }
 0x5a1   : > { %v3212_v44 = vmul.f32 %v5583_v60, %v3194_v42 }
 0x5a2   : > { %v3993_v12 = vpop.eup %3992  ;;  %v3231_v13 = vadd.f32 %v5585_v50, %v3213_v35 }
 0x5a3   : > { %v3995_v45 = vpop.eup %3994  ;;  %v3230_v41 = vadd.f32 %v5585_v50, %v3212_v44  ;;  %v3127_v37 = vmul.f32 %v3993_v12, %v3020_v53  ;;  %vm3133_vm15 = vweird.f32 %v3993_v12 }
 0x5a4   : > { %v3247_v3 = vmax.f32 %v3231_v13, 0.0  ;;  %v3137_v40 = vmul.f32 %v3995_v45, %v3021_v38  ;;  %vm3143_vm1 = vweird.f32 %v3995_v45  ;;  %vm3134_vm3 = vmor %vm3132_vm2, %vm3133_vm15 }
 0x5a5   : > { %v3246_v61 = vmax.f32 %v3230_v41, 0.0  ;;  %v3128_v6 = vmul.f32 %v3993_v12, %v3127_v37  ;;  %vm3144_vm5 = vmor %vm3142_vm4, %vm3143_vm1 }
 0x5a6   : > { %3263 = vst [vmem:[%s5592_s27 + $0x48] sm:$0xff] %v3247_v3  ;;  %v3138_v16 = vmul.f32 %v3995_v45, %v3137_v40  ;;  %v2989_v11 = vpop.xlane.xlu2 %2988  ;;  %v2987_v49 = vpop.xlane.xlu1 %2986 }
 0x5a7   : > { %3262 = vst [vmem:[%s5592_s27 + $0x40] sm:$0xff] %v3246_v61  ;;  %v3129_v29 = vmul.f32 0.5, %v3128_v6  ;;  %v3007_v0 = vmul.f32 0.05, %v2989_v11  ;;  %v3006_v21 = vmul.f32 0.05, %v2987_v49 }
 0x5a8   : > { %v3139_v59 = vmul.f32 0.5, %v3138_v16 }
 0x5a9   : > { %v3130_v34 = vsub.f32 1.5, %v3129_v29  ;;  %v3023_v33 = vadd.f32 1e-05, %v3007_v0  ;;  %v3022_v48 = vadd.f32 1e-05, %v3006_v21 }
 0x5aa   : > { %v3140_v10 = vsub.f32 1.5, %v3139_v59 }
 0x5ab   : > { %v3131_v39 = vmul.f32 %v3993_v12, %v3130_v34  ;;  %3996 = vrsqrt.f32 %v3023_v33  ;;  %vm3162_vm8 = vweird.f32 %v3023_v33  ;;  %vm3152_vm0 = vweird.f32 %v3022_v48 }
 0x5ac   : > { %v3141_v28 = vmul.f32 %v3995_v45, %v3140_v10  ;;  %3998 = vrsqrt.f32 %v3022_v48 }
 0x5ad   : > { %v3135_v62 = vsel %vm3134_vm3, %v3993_v12, %v3131_v39 }
 0x5ae   : > { %v3196_v25 = vmul.f32 %v3135_v62, %v5550_v47  ;;  %v3145_v32 = vsel %vm3144_vm5, %v3995_v45, %v3141_v28 }
 0x5af   : > { %v3197_v22 = vmul.f32 %v3145_v32, %v5553_v17 }
 0x5b0   : > { %v3214_v8 = vmul.f32 %v5583_v60, %v3196_v25 }
 0x5b1   : > { %v3997_v5 = vpop.eup %3996  ;;  %v3215_v9 = vmul.f32 %v5583_v60, %v3197_v22 }
 0x5b2   : > { %v3999_v52 = vpop.eup %3998  ;;  %v3232_v57 = vadd.f32 %v5585_v50, %v3214_v8  ;;  %v3157_v56 = vmul.f32 %v3997_v5, %v3023_v33  ;;  %vm3163_vm6 = vweird.f32 %v3997_v5 }
 0x5b3   : > { %v3233_v46 = vadd.f32 %v5585_v50, %v3215_v9  ;;  %v3147_v43 = vmul.f32 %v3999_v52, %v3022_v48  ;;  %vm3153_vm7 = vweird.f32 %v3999_v52  ;;  %vm3164_vm9 = vmor %vm3162_vm8, %vm3163_vm6 }
 0x5b4   : > { %v3248_v36 = vmax.f32 %v3232_v57, 0.0  ;;  %v3158_v14 = vmul.f32 %v3997_v5, %v3157_v56  ;;  %vm3154_vm10 = vmor %vm3152_vm0, %vm3153_vm7 }
 0x5b5   : > { %v3249_v63 = vmax.f32 %v3233_v46, 0.0  ;;  %v3148_v47 = vmul.f32 %v3999_v52, %v3147_v43 }
 0x5b6   : > { %3264 = vst [vmem:[%s5592_s27 + $0x50] sm:$0xff] %v3248_v36  ;;  %v3159_v31 = vmul.f32 0.5, %v3158_v14  ;;  %v2993_v17 = vpop.xlane.xlu1 %2992  ;;  %v2991_v4 = vpop.xlane.xlu0 %2990 }
 0x5b7   : > { %3265 = vst [vmem:[%s5592_s27 + $0x58] sm:$0xff] %v3249_v63  ;;  %v3149_v23 = vmul.f32 0.5, %v3148_v47  ;;  %v3009_v51 = vmul.f32 0.05, %v2993_v17  ;;  %v3008_v54 = vmul.f32 0.05, %v2991_v4 }
 0x5b8   : > { %v3160_v30 = vsub.f32 1.5, %v3159_v31 }
 0x5b9   : > { %v3150_v19 = vsub.f32 1.5, %v3149_v23  ;;  %v3025_v2 = vadd.f32 1e-05, %v3009_v51  ;;  %v3024_v24 = vadd.f32 1e-05, %v3008_v54 }
 0x5ba   : > { %v3161_v53 = vmul.f32 %v3997_v5, %v3160_v30 }
 0x5bb   : > { %v3151_v38 = vmul.f32 %v3999_v52, %v3150_v19  ;;  %4000 = vrsqrt.f32 %v3025_v2  ;;  %vm3182_vm13 = vweird.f32 %v3025_v2  ;;  %vm3172_vm15 = vweird.f32 %v3024_v24 }
 0x5bc   : > { %v3165_v58 = vsel %vm3164_vm9, %v3997_v5, %v3161_v53  ;;  %4002 = vrsqrt.f32 %v3024_v24 }
 0x5bd   : > { %v3199_v18 = vmul.f32 %v3165_v58, %v5562_v7  ;;  %v3155_v55 = vsel %vm3154_vm10, %v3999_v52, %v3151_v38 }
 0x5be   : > { %v3198_v15 = vmul.f32 %v3155_v55, %v5565_v27 }
 0x5bf   : > { %v3217_v26 = vmul.f32 %v5583_v60, %v3199_v18 }
 0x5c0   : > { %v3216_v42 = vmul.f32 %v5583_v60, %v3198_v15 }
 0x5c1   : > { %v4001_v35 = vpop.eup %4000  ;;  %v3235_v44 = vadd.f32 %v5585_v50, %v3217_v26 }
 0x5c2   : > { %v4003_v12 = vpop.eup %4002  ;;  %v3234_v13 = vadd.f32 %v5585_v50, %v3216_v42  ;;  %v3177_v45 = vmul.f32 %v4001_v35, %v3025_v2  ;;  %vm3183_vm11 = vweird.f32 %v4001_v35 }
 0x5c3   : > { %v3251_v41 = vmax.f32 %v3235_v44, 0.0  ;;  %v3167_v37 = vmul.f32 %v4003_v12, %v3024_v24  ;;  %vm3173_vm12 = vweird.f32 %v4003_v12  ;;  %vm3184_vm14 = vmor %vm3182_vm13, %vm3183_vm11 }
 0x5c4   : > { %v3250_v3 = vmax.f32 %v3234_v13, 0.0  ;;  %v3178_v7 = vmul.f32 %v4001_v35, %v3177_v45  ;;  %vm3174_vm1 = vmor %vm3172_vm15, %vm3173_vm12 }
 0x5c5   : > { %3267 = vst [vmem:[%s5592_s27 + $0x68] sm:$0xff] %v3251_v41  ;;  %v3168_v40 = vmul.f32 %v4003_v12, %v3167_v37 }
 0x5c6   : > { %3266 = vst [vmem:[%s5592_s27 + $0x60] sm:$0xff] %v3250_v3  ;;  %v3179_v27 = vmul.f32 0.5, %v3178_v7 }
 0x5c7   : > { %v3169_v61 = vmul.f32 0.5, %v3168_v40 }
 0x5c8   : > { %v3180_v6 = vsub.f32 1.5, %v3179_v27 }
 0x5c9   : > { %v3170_v16 = vsub.f32 1.5, %v3169_v61 }
 0x5ca   : > { %v3181_v11 = vmul.f32 %v4001_v35, %v3180_v6 }
 0x5cb   : > { %v3171_v49 = vmul.f32 %v4003_v12, %v3170_v16 }
 0x5cc   : > { %v3185_v29 = vsel %vm3184_vm14, %v4001_v35, %v3181_v11 }
 0x5cd   : > { %v3201_v0 = vmul.f32 %v3185_v29, %v5577_v1  ;;  %v3175_v21 = vsel %vm3174_vm1, %v4003_v12, %v3171_v49 }
 0x5ce   : > { %v3200_v59 = vmul.f32 %v3175_v21, %v5574_v20 }
 0x5cf   : > { %v3219_v34 = vmul.f32 %v5583_v60, %v3201_v0 }
 0x5d0   : > { %v3218_v33 = vmul.f32 %v5583_v60, %v3200_v59 }
 0x5d1   : > { %v3237_v48 = vadd.f32 %v5585_v50, %v3219_v34 }
 0x5d2   : > { %v3236_v10 = vadd.f32 %v5585_v50, %v3218_v33 }
 0x5d3   : > { %v3253_v1 = vmax.f32 %v3237_v48, 0.0 }
 0x5d4   : > { %v3252_v39 = vmax.f32 %v3236_v10, 0.0 }
 0x5d5   : > { %3269 = vst [vmem:[%s5592_s27 + $0x78] sm:$0xff] %v3253_v1 }
 0x5d6   : > { %3268 = vst [vmem:[%s5592_s27 + $0x70] sm:$0xff] %v3252_v39 }
 0x5d7   : > { %4219 = shalt.err (!%p4216_p9)
}
 0x5d8   : > { %s4284_s26 = smov 128   ;;  %s4285_s30 = smov 8  }
 0x5d9   : > { %3852 = dma.vmem_to_hbm [thread:$0]  (%p4420_p5), %s3285_s25, 2048, %s3287_s16, %s3271_s19, %s4284_s26, %s4284_s26, %s4285_s30  }
 0x5da PF: > { %s3301_s8 = sand.u32 1, %s4262_s21   ;;  %p5724_p12 = scmp.ge.s32.totalorder %s4274_s24, 2 }
 0x5db   : > { %s3302_s14 = scalar_lea.sflag [#allocation4], %s3301_s8 }
 0x5dc   : > { %p3875_p13 = pnand %p5724_p12, %p4356_p6 }
 0x5de   : > { %p3876_p0 = pneg %p3875_p13 }
 0x5e0   : > { %4257 = dma.done.wait (%p3876_p0), %s3302_s14, 2048  }
 0x5e1   : > { %4259 = vsyncadd (%p3876_p0), %s3302_s14, 4294965248  ;;  %s5725_s7 = sld [smem:[#allocation20_spill]]  ;;  %p24_p3 = scmp.ge.s32.totalorder %s4407_s18, 4  }
 0x5e2   : > { %s5726_s21 = smov %s4266_s22  ;;  %s5727_s22 = smov %s4270_s23 }
 0x5e3   : > { %s5729_s24 = smov %s4407_s18  ;;  %26 = sbr.rel (!%p24_p3) target bundleno = 14 (0xe), region = 118 }
 0x5e7   : > { %s5728_s23 = smov %s5725_s7 }
 0x5e8   :  { %3308 = vsyncpa [#allocation3], 1 }
 0x5e9   :  { %3310 = vsyncpa [#allocation3 + $0x1], 1 }
 0x5ea   :  { %3311 = vsyncpa [#allocation6], 1 }
 0x5eb   :  { %3313 = vsyncpa [#allocation6 + $0x1], 1 }
 0x5ec   :  { %3314 = vsyncpa [#allocation9], 1 }
 0x5ed   :  { %3315 = vsyncpa [#allocation12], 1 }
 0x5ee   :  { %3316 = vsyncpa [#allocation4], 1 }
 0x5ef   :  { %3318 = vsyncpa [#allocation4 + $0x1], 1 }

</bundles_post_ra>
